<compile_context>
chip_gen: v7x
topology: tpu7x:2x2x1
jax: 0.10.0
libtpu: 0.0.40
codegen_flags: <defaults>
</compile_context>

<pallas_src>
import functools
import numpy as np

import jax
import jax.numpy as jnp
from jax.experimental import pallas as pl
from jax.experimental.pallas import tpu as pltpu

EPS_BLOCK = 1e-6   # partial(nn.LayerNorm, eps=1e-6): norm1/norm2/Spatial_norm/Temporal_norm
EPS_HEAD = 1e-5    # default nn.LayerNorm eps inside self.head
O_PAD = 128        # lane-dense padding of the 3-wide head output

# per-block parameter stacks, in canonical order (softmax scale is folded into wq/bq)
_BLOCK_KEYS = ("ln1", "wq", "bq", "wk", "bk", "wv", "bv",
               "wproj", "bproj", "ln2", "w1", "b1", "w2", "b2")


# ----------------------------- shared math (kernel and pure-JAX reference) ----
def _matmul(a, b):
    # bf16 MXU operands, f32 accumulation.  Elementwise math elsewhere stays f32.
    return jnp.dot(a.astype(jnp.bfloat16), b.astype(jnp.bfloat16),
                   preferred_element_type=jnp.float32)


def _layer_norm(x, ln, eps):
    g, b = ln[0:1], ln[1:2]
    mu = jnp.mean(x, axis=-1, keepdims=True)
    xc = x - mu
    var = jnp.mean(xc * xc, axis=-1, keepdims=True)
    return xc * jax.lax.rsqrt(var + eps) * g + b


def _gelu_exact(x):
    # torch.nn.GELU default = exact erf-based GELU
    return 0.5 * x * (1.0 + jax.lax.erf(x * 0.7071067811865475))


def _recip_fast(x):
    return pl.reciprocal(x, approx=True)      # EUP slot (kernel path)


def _recip_exact(x):
    return 1.0 / x                            # reference path


def _transformer_block(x, prm, lnf, *, seqs, length, num_heads, recip):
    """One Block (pre-norm attn + MLP, comb=False, eval mode) followed by the shared
    post-block Spatial_norm / Temporal_norm.

    x: (seqs*length, C) rows ordered sequence-major; attention is batched over
    `seqs` independent sequences of `length` tokens.  Softmax scale is pre-folded
    into wq/bq."""
    (ln1, wq, bq, wk, bk, wv, bv, wproj, bproj, ln2, w1, b1, w2, b2) = prm
    R, C = x.shape
    dh = C // num_heads

    # --- attention ---
    xn = _layer_norm(x, ln1, EPS_BLOCK).astype(jnp.bfloat16)
    q = (_matmul(xn, wq) + bq).astype(jnp.bfloat16)   # scale already folded into wq/bq
    k = (_matmul(xn, wk) + bk).astype(jnp.bfloat16)
    v = (_matmul(xn, wv) + bv).astype(jnp.bfloat16)

    ctx_heads = []
    for h in range(num_heads):                        # static per-head loop
        s0 = h * dh
        qh = q[:, s0:s0 + dh].reshape(seqs, length, dh)
        kh = k[:, s0:s0 + dh].reshape(seqs, length, dh)
        vh = v[:, s0:s0 + dh].reshape(seqs, length, dh)
        sc = jnp.einsum('sld,smd->slm', qh, kh,
                        preferred_element_type=jnp.float32)   # (seqs, L, L)
        sc = sc - jnp.max(sc, axis=-1, keepdims=True)
        e = jnp.exp(sc)
        pa = e * recip(jnp.sum(e, axis=-1, keepdims=True))
        ctx = jnp.einsum('slm,smd->sld', pa.astype(jnp.bfloat16), vh,
                         preferred_element_type=jnp.float32)  # (seqs, L, dh)
        ctx_heads.append(ctx.reshape(R, dh))
    # ONE full-C projection matmul (full MXU depth fill) instead of per-head folds
    ctx_all = jnp.concatenate(ctx_heads, axis=-1)             # (R, C)
    x = x + _matmul(ctx_all, wproj) + bproj                   # drop_path == identity (eval)

    # --- MLP ---
    xn2 = _layer_norm(x, ln2, EPS_BLOCK)
    hid = _gelu_exact(_matmul(xn2, w1) + b1)
    x = x + _matmul(hid, w2) + b2

    # --- shared post-block Spatial_norm / Temporal_norm ---
    return _layer_norm(x, lnf, EPS_BLOCK)


# ----------------------------- Pallas kernels ---------------------------------
def _spatial_stack_kernel(x_ref, ew_ref, eb_ref, spos_ref, *rest,
                          f_tile, num_heads):
    """grid = (B, F-chunks, depth).  Per step: one STE block on FT frames
    (FT*N rows).  Activation carried in VMEM scratch across the block axis."""
    nb = len(_BLOCK_KEYS)
    blk = rest[:nb]
    lnf_ref = rest[nb]          # shared Spatial_norm
    o_ref = rest[nb + 1]
    act_ref = rest[nb + 2]

    FT = f_tile
    N, C = spos_ref.shape
    d = pl.program_id(2)

    # STE_forward prologue: Spatial_patch_to_embedding + Spatial_pos_embed
    @pl.when(d == 0)
    def _():
        x_in = x_ref[0].reshape(FT * N, x_ref.shape[-1])
        xs = _matmul(x_in, ew_ref[...]) + eb_ref[...]
        xs = xs.reshape(FT, N, C) + spos_ref[...]
        act_ref[...] = xs.reshape(FT * N, C)

    prm = tuple(r[0] for r in blk)                   # this step's streamed block
    xs = _transformer_block(act_ref[...], prm, lnf_ref[...],
                            seqs=FT, length=N, num_heads=num_heads,
                            recip=_recip_fast)
    act_ref[...] = xs

    @pl.when(d == pl.num_programs(2) - 1)
    def _():
        o_ref[0] = xs.reshape(FT, N, C)


def _temporal_stack_kernel(sched_ref, x_ref, tpos_ref, *rest,
                           n_tile, num_heads):
    """grid = (B, N-chunks, depth + 1).  Per step: one TTE block on NT joints
    (NT*F rows).  sched maps the grid step to the block index ([0,0,1,..,depth-1]
    — TTEblocks[0] runs twice, matching the reference).  Head applied at the
    last step (row-wise, so layout does not matter)."""
    nb = len(_BLOCK_KEYS)
    blk = rest[:nb]
    lnf_ref = rest[nb]          # shared Temporal_norm
    hln_ref = rest[nb + 1]
    hw_ref = rest[nb + 2]
    hb_ref = rest[nb + 3]
    o_ref = rest[nb + 4]
    act_ref = rest[nb + 5]
    del sched_ref               # consumed by the index_maps only

    NT = n_tile
    F, C = tpos_ref.shape
    t = pl.program_id(2)

    # TTE_foward prologue: Temporal_pos_embed
    @pl.when(t == 0)
    def _():
        xt = x_ref[0] + tpos_ref[...]                 # (NT, F, C) + (F, C)
        act_ref[...] = xt.reshape(NT * F, C)

    prm = tuple(r[0] for r in blk)
    xt = _transformer_block(act_ref[...], prm, lnf_ref[...],
                            seqs=NT, length=F, num_heads=num_heads,
                            recip=_recip_fast)
    act_ref[...] = xt

    # head = LayerNorm(eps=1e-5) -> Linear(dim, 3), lane-padded to O_PAD
    @pl.when(t == pl.num_programs(2) - 1)
    def _():
        hn = _layer_norm(xt, hln_ref[...], EPS_HEAD)
        out = _matmul(hn, hw_ref[...]) + hb_ref[...]
        o_ref[0] = out.reshape(NT, F, hw_ref.shape[-1])


# ----------------------------- parameter prep ----------------------------------
def _split_qkv_stack(stack, num_heads):
    """Split the fused wqkv/bqkv stacks into wq/wk/wv (+biases) and fold the
    softmax scale (head_dim**-0.5, a power of two at MixSTE sizes) into wq/bq.
    One-time constant transform — removes the per-block scale multiply and the
    (R, 3C) f32 live buffer inside the kernel."""
    wqkv, bqkv = stack["wqkv"], stack["bqkv"]
    C = stack["wproj"].shape[-1]
    scale = (C // num_heads) ** -0.5
    out = {k: v for k, v in stack.items() if k not in ("wqkv", "bqkv")}
    out["wq"] = (wqkv[:, :, 0:C].astype(jnp.float32) * scale).astype(jnp.bfloat16)
    out["wk"] = wqkv[:, :, C:2 * C]
    out["wv"] = wqkv[:, :, 2 * C:3 * C]
    out["bq"] = bqkv[:, :, 0:C] * scale
    out["bk"] = bqkv[:, :, C:2 * C]
    out["bv"] = bqkv[:, :, 2 * C:3 * C]
    return out


# ----------------------------- wrappers -----------------------------------------
def forward_pallas(x, p, *, depth, num_heads, f_tile=None, n_tile=None):
    B, F, N, Cin = x.shape
    C = p["ste"]["wproj"].shape[-1]
    f_tile = f_tile or F
    n_tile = n_tile or N
    assert F % f_tile == 0 and N % n_tile == 0
    FC, NC = F // f_tile, N // n_tile

    ste = _split_qkv_stack(p["ste"], num_heads)
    tte = _split_qkv_stack(p["tte"], num_heads)

    # lane-dense head output: pad the 3-wide head weights to O_PAD columns (zeros)
    hw = jnp.zeros((C, O_PAD), jnp.bfloat16).at[:, :p["head_w"].shape[1]].set(p["head_w"])
    hb = jnp.zeros((1, O_PAD), jnp.float32).at[:, :p["head_b"].shape[1]].set(p["head_b"])

    def const_spec_sp(arr):
        nd = arr.ndim
        return pl.BlockSpec(arr.shape, lambda b, fc, d, _nd=nd: (0,) * _nd)

    def blockwise_spec_sp(arr):
        nd = arr.ndim
        return pl.BlockSpec((1,) + arr.shape[1:],
                            lambda b, fc, d, _nd=nd: (d,) + (0,) * (_nd - 1))

    def const_spec_tp(arr):
        nd = arr.ndim
        return pl.BlockSpec(arr.shape, lambda b, nc, t, sched, _nd=nd: (0,) * _nd)

    def blockwise_spec_tp(arr):
        nd = arr.ndim
        return pl.BlockSpec((1,) + arr.shape[1:],
                            lambda b, nc, t, sched, _nd=nd: (sched[t],) + (0,) * (_nd - 1))

    # -------- spatial stack: grid (B, F-chunks, depth), weights streamed over d ----
    sp_consts = [p["embed_w"], p["embed_b"], p["spatial_pos"]]
    sp_blocks = [ste[k] for k in _BLOCK_KEYS]
    sp_kernel = functools.partial(_spatial_stack_kernel,
                                  f_tile=f_tile, num_heads=num_heads)
    xs = pl.pallas_call(
        sp_kernel,
        out_shape=jax.ShapeDtypeStruct((B, F, N, C), jnp.float32),
        grid_spec=pltpu.PrefetchScalarGridSpec(
            num_scalar_prefetch=0,
            grid=(B, FC, depth),
            in_specs=[pl.BlockSpec((1, f_tile, N, Cin), lambda b, fc, d: (b, fc, 0, 0))]
                     + [const_spec_sp(w) for w in sp_consts]
                     + [blockwise_spec_sp(w) for w in sp_blocks]
                     + [const_spec_sp(p["spatial_norm"])],
            out_specs=pl.BlockSpec((1, f_tile, N, C), lambda b, fc, d: (b, fc, 0, 0)),
            scratch_shapes=[pltpu.VMEM((f_tile * N, C), jnp.float32)]),
        compiler_params=pltpu.CompilerParams(
            dimension_semantics=("parallel", "parallel", "arbitrary")),
    )(x, *sp_consts, *sp_blocks, p["spatial_norm"])

    # 'b f n c -> (b n) f c' — wrapper-level layout plumbing on the small HBM
    # intermediate (no in-kernel sublane-store permutation, no staging scratch).
    xt_in = jnp.transpose(xs, (0, 2, 1, 3))          # (B, N, F, C)

    # -------- temporal stack + head: grid (B, N-chunks, depth + 1) -----------------
    sched = jnp.asarray([0] + list(range(depth)), dtype=jnp.int32)  # TTE[0] runs twice
    tp_blocks = [tte[k] for k in _BLOCK_KEYS]
    tp_kernel = functools.partial(_temporal_stack_kernel,
                                  n_tile=n_tile, num_heads=num_heads)
    out_t = pl.pallas_call(
        tp_kernel,
        out_shape=jax.ShapeDtypeStruct((B, N, F, O_PAD), jnp.float32),
        grid_spec=pltpu.PrefetchScalarGridSpec(
            num_scalar_prefetch=1,
            grid=(B, NC, depth + 1),
            in_specs=[pl.BlockSpec((1, n_tile, F, C), lambda b, nc, t, s: (b, nc, 0, 0)),
                      const_spec_tp(p["temporal_pos"])]
                     + [blockwise_spec_tp(w) for w in tp_blocks]
                     + [const_spec_tp(p["temporal_norm"]),
                        const_spec_tp(p["head_ln"]),
                        const_spec_tp(hw),
                        const_spec_tp(hb)],
            out_specs=pl.BlockSpec((1, n_tile, F, O_PAD), lambda b, nc, t, s: (b, nc, 0, 0)),
            scratch_shapes=[pltpu.VMEM((n_tile * F, C), jnp.float32)]),
        compiler_params=pltpu.CompilerParams(
            dimension_semantics=("parallel", "parallel", "arbitrary")),
    )(sched, xt_in, p["temporal_pos"], *tp_blocks,
      p["temporal_norm"], p["head_ln"], hw, hb)

    # '(b n) f c -> b f n c' + drop the lane padding
    return jnp.transpose(out_t, (0, 2, 1, 3))[..., :3]


# ----------------------------- pure-JAX reference path --------------------------
def forward_ref(x, p, *, depth, num_heads):
    B, F, N, Cin = x.shape
    C = p["ste"]["wproj"].shape[-1]
    ste = _split_qkv_stack(p["ste"], num_heads)
    tte = _split_qkv_stack(p["tte"], num_heads)

    def blk(stack, idx):
        return tuple(stack[k][idx] for k in _BLOCK_KEYS)

    def one(xb):                                     # xb: (F, N, Cin)
        xs = _matmul(xb.reshape(F * N, Cin), p["embed_w"]) + p["embed_b"]
        xs = (xs.reshape(F, N, C) + p["spatial_pos"]).reshape(F * N, C)
        for d in range(depth):
            xs = _transformer_block(xs, blk(ste, d), p["spatial_norm"],
                                    seqs=F, length=N, num_heads=num_heads,
                                    recip=_recip_exact)
        xt = jnp.transpose(xs.reshape(F, N, C), (1, 0, 2)).reshape(N * F, C)
        xt = (xt.reshape(N, F, C) + p["temporal_pos"]).reshape(N * F, C)
        for d in [0] + list(range(depth)):           # TTEblocks[0] runs twice
            xt = _transformer_block(xt, blk(tte, d), p["temporal_norm"],
                                    seqs=N, length=F, num_heads=num_heads,
                                    recip=_recip_exact)
        xf = jnp.transpose(xt.reshape(N, F, C), (1, 0, 2)).reshape(F * N, C)
        hn = _layer_norm(xf, p["head_ln"], EPS_HEAD)
        return (_matmul(hn, p["head_w"]) + p["head_b"]).reshape(F, N, 3)

    return jax.vmap(one)(x)


# ----------------------------- parameters ----------------------------------------
def init_params(key, *, num_frame, num_joints, in_chans, dim, depth, mlp_ratio):
    hidden = int(dim * mlp_ratio)
    kit = iter(jax.random.split(key, 32 * depth + 64))

    def linear(fan_in, fan_out):
        bound = 1.0 / (fan_in ** 0.5)
        w = jax.random.uniform(next(kit), (fan_in, fan_out), jnp.float32, -bound, bound)
        b = jax.random.uniform(next(kit), (1, fan_out), jnp.float32, -bound, bound)
        return w, b

    def ln(noise=0.1):
        g = 1.0 + noise * jax.random.normal(next(kit), (dim,), jnp.float32)
        b = noise * jax.random.normal(next(kit), (dim,), jnp.float32)
        return jnp.stack([g, b])                     # (2, dim)

    def block_stack():
        blocks = [dict(ln1=ln(), qkv=linear(dim, 3 * dim), proj=linear(dim, dim),
                       ln2=ln(), fc1=linear(dim, hidden), fc2=linear(hidden, dim))
                  for _ in range(depth)]

        def st(fn):
            return jnp.stack([fn(b) for b in blocks])

        return {
            "ln1":   st(lambda b: b["ln1"]),
            "wqkv":  st(lambda b: b["qkv"][0]).astype(jnp.bfloat16),
            "bqkv":  st(lambda b: b["qkv"][1]),
            "wproj": st(lambda b: b["proj"][0]).astype(jnp.bfloat16),
            "bproj": st(lambda b: b["proj"][1]),
            "ln2":   st(lambda b: b["ln2"]),
            "w1":    st(lambda b: b["fc1"][0]).astype(jnp.bfloat16),
            "b1":    st(lambda b: b["fc1"][1]),
            "w2":    st(lambda b: b["fc2"][0]).astype(jnp.bfloat16),
            "b2":    st(lambda b: b["fc2"][1]),
        }

    ew, eb = linear(in_chans, dim)
    hw, hb = linear(dim, 3)
    return {
        "embed_w": ew.astype(jnp.bfloat16), "embed_b": eb,
        # nn.Parameter(torch.zeros(...)); small noise so the adds are exercised
        "spatial_pos": 0.02 * jax.random.normal(next(kit), (num_joints, dim), jnp.float32),
        "temporal_pos": 0.02 * jax.random.normal(next(kit), (num_frame, dim), jnp.float32),
        "ste": block_stack(),
        "tte": block_stack(),
        "spatial_norm": ln(),        # shared across all STE blocks
        "temporal_norm": ln(),       # shared across all TTE blocks
        "head_ln": ln(),
        "head_w": hw.astype(jnp.bfloat16), "head_b": hb,
    }


# ----------------------------- main ----------------------------------------------
if __name__ == "__main__":
    B, F, N, C_IN = 2, 8, 16, 2          # batch, num_frame, num_joints, in_chans
    DIM, DEPTH, HEADS, MLP_RATIO = 32, 2, 8, 2.0

    key = jax.random.PRNGKey(0)
    kx, kp = jax.random.split(key)
    x = jax.random.normal(kx, (B, F, N, C_IN), jnp.float32)
    params = init_params(kp, num_frame=F, num_joints=N, in_chans=C_IN,
                         dim=DIM, depth=DEPTH, mlp_ratio=MLP_RATIO)

    # f_tile / n_tile exercise the extra "parallel" chunk axes (review #7).
    out = forward_pallas(x, params, depth=DEPTH, num_heads=HEADS, f_tile=4, n_tile=8)
    out = jax.block_until_ready(out)
    assert out.shape == (B, F, N, 3), out.shape

    ref = forward_ref(x, params, depth=DEPTH, num_heads=HEADS)
    ref = jax.block_until_ready(ref)

    # Kernel and reference share the same bf16-operand / f32-accumulate math; the
    # only intended divergence is the EUP approximate reciprocal in the softmax.
    np.testing.assert_allclose(np.asarray(out), np.asarray(ref), rtol=2e-2, atol=2e-2)

    print("KERNEL_OK")
</pallas_src>

<mosaic_0001>
module attributes {stable_mosaic.version = 11 : i64} {
  func.func @_spatial_stack_kernel(%arg0: i32, %arg1: i32, %arg2: i32, %arg3: memref<1x4x16x2xf32, #tpu.memory_space<vmem>>, %arg4: memref<2x32xbf16, #tpu.memory_space<vmem>>, %arg5: memref<1x32xf32, #tpu.memory_space<vmem>>, %arg6: memref<16x32xf32, #tpu.memory_space<vmem>>, %arg7: memref<1x2x32xf32, #tpu.memory_space<vmem>>, %arg8: memref<1x32x32xbf16, #tpu.memory_space<vmem>>, %arg9: memref<1x1x32xf32, #tpu.memory_space<vmem>>, %arg10: memref<1x32x32xbf16, #tpu.memory_space<vmem>>, %arg11: memref<1x1x32xf32, #tpu.memory_space<vmem>>, %arg12: memref<1x32x32xbf16, #tpu.memory_space<vmem>>, %arg13: memref<1x1x32xf32, #tpu.memory_space<vmem>>, %arg14: memref<1x32x32xbf16, #tpu.memory_space<vmem>>, %arg15: memref<1x1x32xf32, #tpu.memory_space<vmem>>, %arg16: memref<1x2x32xf32, #tpu.memory_space<vmem>>, %arg17: memref<1x32x64xbf16, #tpu.memory_space<vmem>>, %arg18: memref<1x1x64xf32, #tpu.memory_space<vmem>>, %arg19: memref<1x64x32xbf16, #tpu.memory_space<vmem>>, %arg20: memref<1x1x32xf32, #tpu.memory_space<vmem>>, %arg21: memref<2x32xf32, #tpu.memory_space<vmem>>, %arg22: memref<1x4x16x32xf32, #tpu.memory_space<vmem>>, %arg23: memref<64x32xf32, #tpu.memory_space<vmem>>) attributes {dimension_semantics = [#tpu.dimension_semantics<parallel>, #tpu.dimension_semantics<parallel>, #tpu.dimension_semantics<arbitrary>], iteration_bounds = array<i64: 2, 2, 2>, scalar_prefetch = 0 : i64, scratch_operands = 1 : i64, tpu.core_type = #tpu.core_type<tc>, window_params = [{transform_indices = @transform_0, window_bounds = array<i64: 1, 4, 16, 2>}, {pipeline_mode = #tpu.pipeline_mode<synchronous>, transform_indices = @transform_1, window_bounds = array<i64: 2, 32>}, {pipeline_mode = #tpu.pipeline_mode<synchronous>, transform_indices = @transform_2, window_bounds = array<i64: 1, 32>}, {pipeline_mode = #tpu.pipeline_mode<synchronous>, transform_indices = @transform_3, window_bounds = array<i64: 16, 32>}, {transform_indices = @transform_4, window_bounds = array<i64: 1, 2, 32>}, {transform_indices = @transform_5, window_bounds = array<i64: 1, 32, 32>}, {transform_indices = @transform_6, window_bounds = array<i64: 1, 1, 32>}, {transform_indices = @transform_7, window_bounds = array<i64: 1, 32, 32>}, {transform_indices = @transform_8, window_bounds = array<i64: 1, 1, 32>}, {transform_indices = @transform_9, window_bounds = array<i64: 1, 32, 32>}, {transform_indices = @transform_10, window_bounds = array<i64: 1, 1, 32>}, {transform_indices = @transform_11, window_bounds = array<i64: 1, 32, 32>}, {transform_indices = @transform_12, window_bounds = array<i64: 1, 1, 32>}, {transform_indices = @transform_13, window_bounds = array<i64: 1, 2, 32>}, {transform_indices = @transform_14, window_bounds = array<i64: 1, 32, 64>}, {transform_indices = @transform_15, window_bounds = array<i64: 1, 1, 64>}, {transform_indices = @transform_16, window_bounds = array<i64: 1, 64, 32>}, {transform_indices = @transform_17, window_bounds = array<i64: 1, 1, 32>}, {pipeline_mode = #tpu.pipeline_mode<synchronous>, transform_indices = @transform_18, window_bounds = array<i64: 2, 32>}, {transform_indices = @transform_19, window_bounds = array<i64: 1, 4, 16, 32>}]} {
    %c0_i32 = arith.constant 0 : i32
    %0 = arith.cmpi eq, %arg2, %c0_i32 : i32
    %1 = arith.extui %0 : i1 to i32
    %c0_i32_0 = arith.constant 0 : i32
    %2 = arith.cmpi ne, %1, %c0_i32_0 : i32
    scf.if %2 {
      %c0_104 = arith.constant 0 : index
      %c0_105 = arith.constant 0 : index
      %c0_106 = arith.constant 0 : index
      %c0_107 = arith.constant 0 : index
      %299 = vector.load %arg3[%c0_104, %c0_105, %c0_106, %c0_107] : memref<1x4x16x2xf32, #tpu.memory_space<vmem>>, vector<1x4x16x2xf32>
      %300 = vector.shape_cast %299 : vector<1x4x16x2xf32> to vector<4x16x2xf32>
      %301 = vector.shape_cast %300 : vector<4x16x2xf32> to vector<64x2xf32>
      %c0_108 = arith.constant 0 : index
      %c0_109 = arith.constant 0 : index
      %302 = vector.load %arg4[%c0_108, %c0_109] : memref<2x32xbf16, #tpu.memory_space<vmem>>, vector<2x32xbf16>
      %303 = arith.truncf %301 : vector<64x2xf32> to vector<64x2xbf16>
      %cst_110 = arith.constant dense<0.000000e+00> : vector<64x32xf32>
      %304 = tpu.matmul %303, %302, %cst_110 {dimension_numbers = #tpu.dot_dimension_numbers<[1], [0], [0], [1], [0, 0, 1, 1], [], []>} : vector<64x2xbf16>, vector<2x32xbf16>, vector<64x32xf32> -> vector<64x32xf32>
      %c0_111 = arith.constant 0 : index
      %c0_112 = arith.constant 0 : index
      %305 = vector.load %arg5[%c0_111, %c0_112] : memref<1x32xf32, #tpu.memory_space<vmem>>, vector<1x32xf32>
      %306 = vector.broadcast %305 : vector<1x32xf32> to vector<64x32xf32>
      %307 = arith.addf %304, %306 : vector<64x32xf32>
      %308 = vector.shape_cast %307 : vector<64x32xf32> to vector<4x16x32xf32>
      %c0_113 = arith.constant 0 : index
      %c0_114 = arith.constant 0 : index
      %309 = vector.load %arg6[%c0_113, %c0_114] : memref<16x32xf32, #tpu.memory_space<vmem>>, vector<16x32xf32>
      %310 = vector.shape_cast %309 : vector<16x32xf32> to vector<1x16x32xf32>
      %311 = vector.broadcast %310 : vector<1x16x32xf32> to vector<4x16x32xf32>
      %312 = arith.addf %308, %311 : vector<4x16x32xf32>
      %313 = vector.shape_cast %312 : vector<4x16x32xf32> to vector<64x32xf32>
      %c0_115 = arith.constant 0 : index
      %c0_116 = arith.constant 0 : index
      %314 = vector.load %arg23[%c0_115, %c0_116] : memref<64x32xf32, #tpu.memory_space<vmem>>, vector<64x32xf32>
      tpu.vector_store %arg23[%c0_115, %c0_116], %313 {strides = array<i32>} : memref<64x32xf32, #tpu.memory_space<vmem>>, vector<64x32xf32>,
    } else {
    }
    %c0 = arith.constant 0 : index
    %c0_1 = arith.constant 0 : index
    %c0_2 = arith.constant 0 : index
    %3 = vector.load %arg7[%c0, %c0_1, %c0_2] : memref<1x2x32xf32, #tpu.memory_space<vmem>>, vector<1x2x32xf32>
    %4 = vector.shape_cast %3 : vector<1x2x32xf32> to vector<2x32xf32>
    %c0_3 = arith.constant 0 : index
    %c0_4 = arith.constant 0 : index
    %c0_5 = arith.constant 0 : index
    %5 = vector.load %arg8[%c0_3, %c0_4, %c0_5] : memref<1x32x32xbf16, #tpu.memory_space<vmem>>, vector<1x32x32xbf16>
    %6 = vector.shape_cast %5 : vector<1x32x32xbf16> to vector<32x32xbf16>
    %c0_6 = arith.constant 0 : index
    %c0_7 = arith.constant 0 : index
    %c0_8 = arith.constant 0 : index
    %7 = vector.load %arg9[%c0_6, %c0_7, %c0_8] : memref<1x1x32xf32, #tpu.memory_space<vmem>>, vector<1x1x32xf32>
    %8 = vector.shape_cast %7 : vector<1x1x32xf32> to vector<1x32xf32>
    %c0_9 = arith.constant 0 : index
    %c0_10 = arith.constant 0 : index
    %c0_11 = arith.constant 0 : index
    %9 = vector.load %arg10[%c0_9, %c0_10, %c0_11] : memref<1x32x32xbf16, #tpu.memory_space<vmem>>, vector<1x32x32xbf16>
    %10 = vector.shape_cast %9 : vector<1x32x32xbf16> to vector<32x32xbf16>
    %c0_12 = arith.constant 0 : index
    %c0_13 = arith.constant 0 : index
    %c0_14 = arith.constant 0 : index
    %11 = vector.load %arg11[%c0_12, %c0_13, %c0_14] : memref<1x1x32xf32, #tpu.memory_space<vmem>>, vector<1x1x32xf32>
    %12 = vector.shape_cast %11 : vector<1x1x32xf32> to vector<1x32xf32>
    %c0_15 = arith.constant 0 : index
    %c0_16 = arith.constant 0 : index
    %c0_17 = arith.constant 0 : index
    %13 = vector.load %arg12[%c0_15, %c0_16, %c0_17] : memref<1x32x32xbf16, #tpu.memory_space<vmem>>, vector<1x32x32xbf16>
    %14 = vector.shape_cast %13 : vector<1x32x32xbf16> to vector<32x32xbf16>
    %c0_18 = arith.constant 0 : index
    %c0_19 = arith.constant 0 : index
    %c0_20 = arith.constant 0 : index
    %15 = vector.load %arg13[%c0_18, %c0_19, %c0_20] : memref<1x1x32xf32, #tpu.memory_space<vmem>>, vector<1x1x32xf32>
    %16 = vector.shape_cast %15 : vector<1x1x32xf32> to vector<1x32xf32>
    %c0_21 = arith.constant 0 : index
    %c0_22 = arith.constant 0 : index
    %c0_23 = arith.constant 0 : index
    %17 = vector.load %arg14[%c0_21, %c0_22, %c0_23] : memref<1x32x32xbf16, #tpu.memory_space<vmem>>, vector<1x32x32xbf16>
    %18 = vector.shape_cast %17 : vector<1x32x32xbf16> to vector<32x32xbf16>
    %c0_24 = arith.constant 0 : index
    %c0_25 = arith.constant 0 : index
    %c0_26 = arith.constant 0 : index
    %19 = vector.load %arg15[%c0_24, %c0_25, %c0_26] : memref<1x1x32xf32, #tpu.memory_space<vmem>>, vector<1x1x32xf32>
    %20 = vector.shape_cast %19 : vector<1x1x32xf32> to vector<1x32xf32>
    %c0_27 = arith.constant 0 : index
    %c0_28 = arith.constant 0 : index
    %c0_29 = arith.constant 0 : index
    %21 = vector.load %arg16[%c0_27, %c0_28, %c0_29] : memref<1x2x32xf32, #tpu.memory_space<vmem>>, vector<1x2x32xf32>
    %22 = vector.shape_cast %21 : vector<1x2x32xf32> to vector<2x32xf32>
    %c0_30 = arith.constant 0 : index
    %c0_31 = arith.constant 0 : index
    %c0_32 = arith.constant 0 : index
    %23 = vector.load %arg17[%c0_30, %c0_31, %c0_32] : memref<1x32x64xbf16, #tpu.memory_space<vmem>>, vector<1x32x64xbf16>
    %24 = vector.shape_cast %23 : vector<1x32x64xbf16> to vector<32x64xbf16>
    %c0_33 = arith.constant 0 : index
    %c0_34 = arith.constant 0 : index
    %c0_35 = arith.constant 0 : index
    %25 = vector.load %arg18[%c0_33, %c0_34, %c0_35] : memref<1x1x64xf32, #tpu.memory_space<vmem>>, vector<1x1x64xf32>
    %26 = vector.shape_cast %25 : vector<1x1x64xf32> to vector<1x64xf32>
    %c0_36 = arith.constant 0 : index
    %c0_37 = arith.constant 0 : index
    %c0_38 = arith.constant 0 : index
    %27 = vector.load %arg19[%c0_36, %c0_37, %c0_38] : memref<1x64x32xbf16, #tpu.memory_space<vmem>>, vector<1x64x32xbf16>
    %28 = vector.shape_cast %27 : vector<1x64x32xbf16> to vector<64x32xbf16>
    %c0_39 = arith.constant 0 : index
    %c0_40 = arith.constant 0 : index
    %c0_41 = arith.constant 0 : index
    %29 = vector.load %arg20[%c0_39, %c0_40, %c0_41] : memref<1x1x32xf32, #tpu.memory_space<vmem>>, vector<1x1x32xf32>
    %30 = vector.shape_cast %29 : vector<1x1x32xf32> to vector<1x32xf32>
    %c0_42 = arith.constant 0 : index
    %c0_43 = arith.constant 0 : index
    %31 = vector.load %arg23[%c0_42, %c0_43] : memref<64x32xf32, #tpu.memory_space<vmem>>, vector<64x32xf32>
    %c0_44 = arith.constant 0 : index
    %c0_45 = arith.constant 0 : index
    %32 = vector.load %arg21[%c0_44, %c0_45] : memref<2x32xf32, #tpu.memory_space<vmem>>, vector<2x32xf32>
    %33 = vector.extract_strided_slice %4 {offsets = [0, 0], sizes = [1, 32], strides = [1, 1]} : vector<2x32xf32> to vector<1x32xf32>
    %34 = vector.extract_strided_slice %4 {offsets = [1, 0], sizes = [1, 32], strides = [1, 1]} : vector<2x32xf32> to vector<1x32xf32>
    %cst = arith.constant dense<0.000000e+00> : vector<64xf32>
    %35 = vector.multi_reduction <add>, %31, %cst [1] : vector<64x32xf32> to vector<64xf32>
    %36 = vector.shape_cast %35 : vector<64xf32> to vector<64x1xf32>
    %cst_46 = arith.constant 3.200000e+01 : f32
    %37 = vector.broadcast %cst_46 : f32 to vector<64x1xf32>
    %38 = arith.divf %36, %37 : vector<64x1xf32>
    %39 = vector.broadcast %38 : vector<64x1xf32> to vector<64x32xf32>
    %40 = arith.subf %31, %39 : vector<64x32xf32>
    %41 = arith.mulf %40, %40 : vector<64x32xf32>
    %cst_47 = arith.constant dense<0.000000e+00> : vector<64xf32>
    %42 = vector.multi_reduction <add>, %41, %cst_47 [1] : vector<64x32xf32> to vector<64xf32>
    %43 = vector.shape_cast %42 : vector<64xf32> to vector<64x1xf32>
    %cst_48 = arith.constant 3.200000e+01 : f32
    %44 = vector.broadcast %cst_48 : f32 to vector<64x1xf32>
    %45 = arith.divf %43, %44 : vector<64x1xf32>
    %cst_49 = arith.constant 9.99999997E-7 : f32
    %46 = vector.broadcast %cst_49 : f32 to vector<64x1xf32>
    %47 = arith.addf %45, %46 : vector<64x1xf32>
    %48 = math.rsqrt %47 : vector<64x1xf32>
    %49 = vector.broadcast %48 : vector<64x1xf32> to vector<64x32xf32>
    %50 = arith.mulf %40, %49 : vector<64x32xf32>
    %51 = vector.broadcast %33 : vector<1x32xf32> to vector<64x32xf32>
    %52 = arith.mulf %50, %51 : vector<64x32xf32>
    %53 = vector.broadcast %34 : vector<1x32xf32> to vector<64x32xf32>
    %54 = arith.addf %52, %53 : vector<64x32xf32>
    %55 = arith.truncf %54 : vector<64x32xf32> to vector<64x32xbf16>
    %cst_50 = arith.constant dense<0.000000e+00> : vector<64x32xf32>
    %56 = tpu.matmul %55, %6, %cst_50 {dimension_numbers = #tpu.dot_dimension_numbers<[1], [0], [0], [1], [0, 0, 1, 1], [], []>} : vector<64x32xbf16>, vector<32x32xbf16>, vector<64x32xf32> -> vector<64x32xf32>
    %57 = vector.broadcast %8 : vector<1x32xf32> to vector<64x32xf32>
    %58 = arith.addf %56, %57 : vector<64x32xf32>
    %59 = arith.truncf %58 : vector<64x32xf32> to vector<64x32xbf16>
    %cst_51 = arith.constant dense<0.000000e+00> : vector<64x32xf32>
    %60 = tpu.matmul %55, %10, %cst_51 {dimension_numbers = #tpu.dot_dimension_numbers<[1], [0], [0], [1], [0, 0, 1, 1], [], []>} : vector<64x32xbf16>, vector<32x32xbf16>, vector<64x32xf32> -> vector<64x32xf32>
    %61 = vector.broadcast %12 : vector<1x32xf32> to vector<64x32xf32>
    %62 = arith.addf %60, %61 : vector<64x32xf32>
    %63 = arith.truncf %62 : vector<64x32xf32> to vector<64x32xbf16>
    %cst_52 = arith.constant dense<0.000000e+00> : vector<64x32xf32>
    %64 = tpu.matmul %55, %14, %cst_52 {dimension_numbers = #tpu.dot_dimension_numbers<[1], [0], [0], [1], [0, 0, 1, 1], [], []>} : vector<64x32xbf16>, vector<32x32xbf16>, vector<64x32xf32> -> vector<64x32xf32>
    %65 = vector.broadcast %16 : vector<1x32xf32> to vector<64x32xf32>
    %66 = arith.addf %64, %65 : vector<64x32xf32>
    %67 = arith.truncf %66 : vector<64x32xf32> to vector<64x32xbf16>
    %68 = vector.extract_strided_slice %59 {offsets = [0, 0], sizes = [64, 4], strides = [1, 1]} : vector<64x32xbf16> to vector<64x4xbf16>
    %69 = vector.shape_cast %68 : vector<64x4xbf16> to vector<4x16x4xbf16>
    %70 = vector.extract_strided_slice %63 {offsets = [0, 0], sizes = [64, 4], strides = [1, 1]} : vector<64x32xbf16> to vector<64x4xbf16>
    %71 = vector.shape_cast %70 : vector<64x4xbf16> to vector<4x16x4xbf16>
    %72 = vector.extract_strided_slice %67 {offsets = [0, 0], sizes = [64, 4], strides = [1, 1]} : vector<64x32xbf16> to vector<64x4xbf16>
    %73 = vector.shape_cast %72 : vector<64x4xbf16> to vector<4x16x4xbf16>
    "tpu.trace_start"() <{level = 10 : i32, message = "sld,smd->slm"}> : () -> ()
    %cst_53 = arith.constant dense<0.000000e+00> : vector<4x16x16xf32>
    %74 = tpu.matmul %69, %71, %cst_53 {dimension_numbers = #tpu.dot_dimension_numbers<[2], [2], [1], [1], [0, 0, 0, 1, 1, 1], [0], [0]>} : vector<4x16x4xbf16>, vector<4x16x4xbf16>, vector<4x16x16xf32> -> vector<4x16x16xf32>
    "tpu.trace_stop"() : () -> ()
    %cst_54 = arith.constant dense<0xFF800000> : vector<4x16xf32>
    %75 = vector.multi_reduction <maximumf>, %74, %cst_54 [2] : vector<4x16x16xf32> to vector<4x16xf32>
    %76 = vector.shape_cast %75 : vector<4x16xf32> to vector<4x16x1xf32>
    %77 = vector.broadcast %76 : vector<4x16x1xf32> to vector<4x16x16xf32>
    %78 = arith.subf %74, %77 : vector<4x16x16xf32>
    %79 = math.exp %78 : vector<4x16x16xf32>
    %cst_55 = arith.constant dense<0.000000e+00> : vector<4x16xf32>
    %80 = vector.multi_reduction <add>, %79, %cst_55 [2] : vector<4x16x16xf32> to vector<4x16xf32>
    %81 = vector.shape_cast %80 : vector<4x16xf32> to vector<4x16x1xf32>
    %82 = tpu.reciprocal %81 {approx = true} : vector<4x16x1xf32> -> vector<4x16x1xf32>
    %83 = vector.broadcast %82 : vector<4x16x1xf32> to vector<4x16x16xf32>
    %84 = arith.mulf %79, %83 : vector<4x16x16xf32>
    %85 = arith.truncf %84 : vector<4x16x16xf32> to vector<4x16x16xbf16>
    "tpu.trace_start"() <{level = 10 : i32, message = "slm,smd->sld"}> : () -> ()
    %cst_56 = arith.constant dense<0.000000e+00> : vector<4x16x4xf32>
    %86 = tpu.matmul %85, %73, %cst_56 {dimension_numbers = #tpu.dot_dimension_numbers<[2], [1], [1], [2], [0, 0, 0, 1, 1, 2], [0], [0]>} : vector<4x16x16xbf16>, vector<4x16x4xbf16>, vector<4x16x4xf32> -> vector<4x16x4xf32>
    "tpu.trace_stop"() : () -> ()
    %87 = vector.shape_cast %86 : vector<4x16x4xf32> to vector<64x4xf32>
    %88 = vector.extract_strided_slice %59 {offsets = [0, 4], sizes = [64, 4], strides = [1, 1]} : vector<64x32xbf16> to vector<64x4xbf16>
    %89 = vector.shape_cast %88 : vector<64x4xbf16> to vector<4x16x4xbf16>
    %90 = vector.extract_strided_slice %63 {offsets = [0, 4], sizes = [64, 4], strides = [1, 1]} : vector<64x32xbf16> to vector<64x4xbf16>
    %91 = vector.shape_cast %90 : vector<64x4xbf16> to vector<4x16x4xbf16>
    %92 = vector.extract_strided_slice %67 {offsets = [0, 4], sizes = [64, 4], strides = [1, 1]} : vector<64x32xbf16> to vector<64x4xbf16>
    %93 = vector.shape_cast %92 : vector<64x4xbf16> to vector<4x16x4xbf16>
    "tpu.trace_start"() <{level = 10 : i32, message = "sld,smd->slm"}> : () -> ()
    %cst_57 = arith.constant dense<0.000000e+00> : vector<4x16x16xf32>
    %94 = tpu.matmul %89, %91, %cst_57 {dimension_numbers = #tpu.dot_dimension_numbers<[2], [2], [1], [1], [0, 0, 0, 1, 1, 1], [0], [0]>} : vector<4x16x4xbf16>, vector<4x16x4xbf16>, vector<4x16x16xf32> -> vector<4x16x16xf32>
    "tpu.trace_stop"() : () -> ()
    %cst_58 = arith.constant dense<0xFF800000> : vector<4x16xf32>
    %95 = vector.multi_reduction <maximumf>, %94, %cst_58 [2] : vector<4x16x16xf32> to vector<4x16xf32>
    %96 = vector.shape_cast %95 : vector<4x16xf32> to vector<4x16x1xf32>
    %97 = vector.broadcast %96 : vector<4x16x1xf32> to vector<4x16x16xf32>
    %98 = arith.subf %94, %97 : vector<4x16x16xf32>
    %99 = math.exp %98 : vector<4x16x16xf32>
    %cst_59 = arith.constant dense<0.000000e+00> : vector<4x16xf32>
    %100 = vector.multi_reduction <add>, %99, %cst_59 [2] : vector<4x16x16xf32> to vector<4x16xf32>
    %101 = vector.shape_cast %100 : vector<4x16xf32> to vector<4x16x1xf32>
    %102 = tpu.reciprocal %101 {approx = true} : vector<4x16x1xf32> -> vector<4x16x1xf32>
    %103 = vector.broadcast %102 : vector<4x16x1xf32> to vector<4x16x16xf32>
    %104 = arith.mulf %99, %103 : vector<4x16x16xf32>
    %105 = arith.truncf %104 : vector<4x16x16xf32> to vector<4x16x16xbf16>
    "tpu.trace_start"() <{level = 10 : i32, message = "slm,smd->sld"}> : () -> ()
    %cst_60 = arith.constant dense<0.000000e+00> : vector<4x16x4xf32>
    %106 = tpu.matmul %105, %93, %cst_60 {dimension_numbers = #tpu.dot_dimension_numbers<[2], [1], [1], [2], [0, 0, 0, 1, 1, 2], [0], [0]>} : vector<4x16x16xbf16>, vector<4x16x4xbf16>, vector<4x16x4xf32> -> vector<4x16x4xf32>
    "tpu.trace_stop"() : () -> ()
    %107 = vector.shape_cast %106 : vector<4x16x4xf32> to vector<64x4xf32>
    %108 = vector.extract_strided_slice %59 {offsets = [0, 8], sizes = [64, 4], strides = [1, 1]} : vector<64x32xbf16> to vector<64x4xbf16>
    %109 = vector.shape_cast %108 : vector<64x4xbf16> to vector<4x16x4xbf16>
    %110 = vector.extract_strided_slice %63 {offsets = [0, 8], sizes = [64, 4], strides = [1, 1]} : vector<64x32xbf16> to vector<64x4xbf16>
    %111 = vector.shape_cast %110 : vector<64x4xbf16> to vector<4x16x4xbf16>
    %112 = vector.extract_strided_slice %67 {offsets = [0, 8], sizes = [64, 4], strides = [1, 1]} : vector<64x32xbf16> to vector<64x4xbf16>
    %113 = vector.shape_cast %112 : vector<64x4xbf16> to vector<4x16x4xbf16>
    "tpu.trace_start"() <{level = 10 : i32, message = "sld,smd->slm"}> : () -> ()
    %cst_61 = arith.constant dense<0.000000e+00> : vector<4x16x16xf32>
    %114 = tpu.matmul %109, %111, %cst_61 {dimension_numbers = #tpu.dot_dimension_numbers<[2], [2], [1], [1], [0, 0, 0, 1, 1, 1], [0], [0]>} : vector<4x16x4xbf16>, vector<4x16x4xbf16>, vector<4x16x16xf32> -> vector<4x16x16xf32>
    "tpu.trace_stop"() : () -> ()
    %cst_62 = arith.constant dense<0xFF800000> : vector<4x16xf32>
    %115 = vector.multi_reduction <maximumf>, %114, %cst_62 [2] : vector<4x16x16xf32> to vector<4x16xf32>
    %116 = vector.shape_cast %115 : vector<4x16xf32> to vector<4x16x1xf32>
    %117 = vector.broadcast %116 : vector<4x16x1xf32> to vector<4x16x16xf32>
    %118 = arith.subf %114, %117 : vector<4x16x16xf32>
    %119 = math.exp %118 : vector<4x16x16xf32>
    %cst_63 = arith.constant dense<0.000000e+00> : vector<4x16xf32>
    %120 = vector.multi_reduction <add>, %119, %cst_63 [2] : vector<4x16x16xf32> to vector<4x16xf32>
    %121 = vector.shape_cast %120 : vector<4x16xf32> to vector<4x16x1xf32>
    %122 = tpu.reciprocal %121 {approx = true} : vector<4x16x1xf32> -> vector<4x16x1xf32>
    %123 = vector.broadcast %122 : vector<4x16x1xf32> to vector<4x16x16xf32>
    %124 = arith.mulf %119, %123 : vector<4x16x16xf32>
    %125 = arith.truncf %124 : vector<4x16x16xf32> to vector<4x16x16xbf16>
    "tpu.trace_start"() <{level = 10 : i32, message = "slm,smd->sld"}> : () -> ()
    %cst_64 = arith.constant dense<0.000000e+00> : vector<4x16x4xf32>
    %126 = tpu.matmul %125, %113, %cst_64 {dimension_numbers = #tpu.dot_dimension_numbers<[2], [1], [1], [2], [0, 0, 0, 1, 1, 2], [0], [0]>} : vector<4x16x16xbf16>, vector<4x16x4xbf16>, vector<4x16x4xf32> -> vector<4x16x4xf32>
    "tpu.trace_stop"() : () -> ()
    %127 = vector.shape_cast %126 : vector<4x16x4xf32> to vector<64x4xf32>
    %128 = vector.extract_strided_slice %59 {offsets = [0, 12], sizes = [64, 4], strides = [1, 1]} : vector<64x32xbf16> to vector<64x4xbf16>
    %129 = vector.shape_cast %128 : vector<64x4xbf16> to vector<4x16x4xbf16>
    %130 = vector.extract_strided_slice %63 {offsets = [0, 12], sizes = [64, 4], strides = [1, 1]} : vector<64x32xbf16> to vector<64x4xbf16>
    %131 = vector.shape_cast %130 : vector<64x4xbf16> to vector<4x16x4xbf16>
    %132 = vector.extract_strided_slice %67 {offsets = [0, 12], sizes = [64, 4], strides = [1, 1]} : vector<64x32xbf16> to vector<64x4xbf16>
    %133 = vector.shape_cast %132 : vector<64x4xbf16> to vector<4x16x4xbf16>
    "tpu.trace_start"() <{level = 10 : i32, message = "sld,smd->slm"}> : () -> ()
    %cst_65 = arith.constant dense<0.000000e+00> : vector<4x16x16xf32>
    %134 = tpu.matmul %129, %131, %cst_65 {dimension_numbers = #tpu.dot_dimension_numbers<[2], [2], [1], [1], [0, 0, 0, 1, 1, 1], [0], [0]>} : vector<4x16x4xbf16>, vector<4x16x4xbf16>, vector<4x16x16xf32> -> vector<4x16x16xf32>
    "tpu.trace_stop"() : () -> ()
    %cst_66 = arith.constant dense<0xFF800000> : vector<4x16xf32>
    %135 = vector.multi_reduction <maximumf>, %134, %cst_66 [2] : vector<4x16x16xf32> to vector<4x16xf32>
    %136 = vector.shape_cast %135 : vector<4x16xf32> to vector<4x16x1xf32>
    %137 = vector.broadcast %136 : vector<4x16x1xf32> to vector<4x16x16xf32>
    %138 = arith.subf %134, %137 : vector<4x16x16xf32>
    %139 = math.exp %138 : vector<4x16x16xf32>
    %cst_67 = arith.constant dense<0.000000e+00> : vector<4x16xf32>
    %140 = vector.multi_reduction <add>, %139, %cst_67 [2] : vector<4x16x16xf32> to vector<4x16xf32>
    %141 = vector.shape_cast %140 : vector<4x16xf32> to vector<4x16x1xf32>
    %142 = tpu.reciprocal %141 {approx = true} : vector<4x16x1xf32> -> vector<4x16x1xf32>
    %143 = vector.broadcast %142 : vector<4x16x1xf32> to vector<4x16x16xf32>
    %144 = arith.mulf %139, %143 : vector<4x16x16xf32>
    %145 = arith.truncf %144 : vector<4x16x16xf32> to vector<4x16x16xbf16>
    "tpu.trace_start"() <{level = 10 : i32, message = "slm,smd->sld"}> : () -> ()
    %cst_68 = arith.constant dense<0.000000e+00> : vector<4x16x4xf32>
    %146 = tpu.matmul %145, %133, %cst_68 {dimension_numbers = #tpu.dot_dimension_numbers<[2], [1], [1], [2], [0, 0, 0, 1, 1, 2], [0], [0]>} : vector<4x16x16xbf16>, vector<4x16x4xbf16>, vector<4x16x4xf32> -> vector<4x16x4xf32>
    "tpu.trace_stop"() : () -> ()
    %147 = vector.shape_cast %146 : vector<4x16x4xf32> to vector<64x4xf32>
    %148 = vector.extract_strided_slice %59 {offsets = [0, 16], sizes = [64, 4], strides = [1, 1]} : vector<64x32xbf16> to vector<64x4xbf16>
    %149 = vector.shape_cast %148 : vector<64x4xbf16> to vector<4x16x4xbf16>
    %150 = vector.extract_strided_slice %63 {offsets = [0, 16], sizes = [64, 4], strides = [1, 1]} : vector<64x32xbf16> to vector<64x4xbf16>
    %151 = vector.shape_cast %150 : vector<64x4xbf16> to vector<4x16x4xbf16>
    %152 = vector.extract_strided_slice %67 {offsets = [0, 16], sizes = [64, 4], strides = [1, 1]} : vector<64x32xbf16> to vector<64x4xbf16>
    %153 = vector.shape_cast %152 : vector<64x4xbf16> to vector<4x16x4xbf16>
    "tpu.trace_start"() <{level = 10 : i32, message = "sld,smd->slm"}> : () -> ()
    %cst_69 = arith.constant dense<0.000000e+00> : vector<4x16x16xf32>
    %154 = tpu.matmul %149, %151, %cst_69 {dimension_numbers = #tpu.dot_dimension_numbers<[2], [2], [1], [1], [0, 0, 0, 1, 1, 1], [0], [0]>} : vector<4x16x4xbf16>, vector<4x16x4xbf16>, vector<4x16x16xf32> -> vector<4x16x16xf32>
    "tpu.trace_stop"() : () -> ()
    %cst_70 = arith.constant dense<0xFF800000> : vector<4x16xf32>
    %155 = vector.multi_reduction <maximumf>, %154, %cst_70 [2] : vector<4x16x16xf32> to vector<4x16xf32>
    %156 = vector.shape_cast %155 : vector<4x16xf32> to vector<4x16x1xf32>
    %157 = vector.broadcast %156 : vector<4x16x1xf32> to vector<4x16x16xf32>
    %158 = arith.subf %154, %157 : vector<4x16x16xf32>
    %159 = math.exp %158 : vector<4x16x16xf32>
    %cst_71 = arith.constant dense<0.000000e+00> : vector<4x16xf32>
    %160 = vector.multi_reduction <add>, %159, %cst_71 [2] : vector<4x16x16xf32> to vector<4x16xf32>
    %161 = vector.shape_cast %160 : vector<4x16xf32> to vector<4x16x1xf32>
    %162 = tpu.reciprocal %161 {approx = true} : vector<4x16x1xf32> -> vector<4x16x1xf32>
    %163 = vector.broadcast %162 : vector<4x16x1xf32> to vector<4x16x16xf32>
    %164 = arith.mulf %159, %163 : vector<4x16x16xf32>
    %165 = arith.truncf %164 : vector<4x16x16xf32> to vector<4x16x16xbf16>
    "tpu.trace_start"() <{level = 10 : i32, message = "slm,smd->sld"}> : () -> ()
    %cst_72 = arith.constant dense<0.000000e+00> : vector<4x16x4xf32>
    %166 = tpu.matmul %165, %153, %cst_72 {dimension_numbers = #tpu.dot_dimension_numbers<[2], [1], [1], [2], [0, 0, 0, 1, 1, 2], [0], [0]>} : vector<4x16x16xbf16>, vector<4x16x4xbf16>, vector<4x16x4xf32> -> vector<4x16x4xf32>
    "tpu.trace_stop"() : () -> ()
    %167 = vector.shape_cast %166 : vector<4x16x4xf32> to vector<64x4xf32>
    %168 = vector.extract_strided_slice %59 {offsets = [0, 20], sizes = [64, 4], strides = [1, 1]} : vector<64x32xbf16> to vector<64x4xbf16>
    %169 = vector.shape_cast %168 : vector<64x4xbf16> to vector<4x16x4xbf16>
    %170 = vector.extract_strided_slice %63 {offsets = [0, 20], sizes = [64, 4], strides = [1, 1]} : vector<64x32xbf16> to vector<64x4xbf16>
    %171 = vector.shape_cast %170 : vector<64x4xbf16> to vector<4x16x4xbf16>
    %172 = vector.extract_strided_slice %67 {offsets = [0, 20], sizes = [64, 4], strides = [1, 1]} : vector<64x32xbf16> to vector<64x4xbf16>
    %173 = vector.shape_cast %172 : vector<64x4xbf16> to vector<4x16x4xbf16>
    "tpu.trace_start"() <{level = 10 : i32, message = "sld,smd->slm"}> : () -> ()
    %cst_73 = arith.constant dense<0.000000e+00> : vector<4x16x16xf32>
    %174 = tpu.matmul %169, %171, %cst_73 {dimension_numbers = #tpu.dot_dimension_numbers<[2], [2], [1], [1], [0, 0, 0, 1, 1, 1], [0], [0]>} : vector<4x16x4xbf16>, vector<4x16x4xbf16>, vector<4x16x16xf32> -> vector<4x16x16xf32>
    "tpu.trace_stop"() : () -> ()
    %cst_74 = arith.constant dense<0xFF800000> : vector<4x16xf32>
    %175 = vector.multi_reduction <maximumf>, %174, %cst_74 [2] : vector<4x16x16xf32> to vector<4x16xf32>
    %176 = vector.shape_cast %175 : vector<4x16xf32> to vector<4x16x1xf32>
    %177 = vector.broadcast %176 : vector<4x16x1xf32> to vector<4x16x16xf32>
    %178 = arith.subf %174, %177 : vector<4x16x16xf32>
    %179 = math.exp %178 : vector<4x16x16xf32>
    %cst_75 = arith.constant dense<0.000000e+00> : vector<4x16xf32>
    %180 = vector.multi_reduction <add>, %179, %cst_75 [2] : vector<4x16x16xf32> to vector<4x16xf32>
    %181 = vector.shape_cast %180 : vector<4x16xf32> to vector<4x16x1xf32>
    %182 = tpu.reciprocal %181 {approx = true} : vector<4x16x1xf32> -> vector<4x16x1xf32>
    %183 = vector.broadcast %182 : vector<4x16x1xf32> to vector<4x16x16xf32>
    %184 = arith.mulf %179, %183 : vector<4x16x16xf32>
    %185 = arith.truncf %184 : vector<4x16x16xf32> to vector<4x16x16xbf16>
    "tpu.trace_start"() <{level = 10 : i32, message = "slm,smd->sld"}> : () -> ()
    %cst_76 = arith.constant dense<0.000000e+00> : vector<4x16x4xf32>
    %186 = tpu.matmul %185, %173, %cst_76 {dimension_numbers = #tpu.dot_dimension_numbers<[2], [1], [1], [2], [0, 0, 0, 1, 1, 2], [0], [0]>} : vector<4x16x16xbf16>, vector<4x16x4xbf16>, vector<4x16x4xf32> -> vector<4x16x4xf32>
    "tpu.trace_stop"() : () -> ()
    %187 = vector.shape_cast %186 : vector<4x16x4xf32> to vector<64x4xf32>
    %188 = vector.extract_strided_slice %59 {offsets = [0, 24], sizes = [64, 4], strides = [1, 1]} : vector<64x32xbf16> to vector<64x4xbf16>
    %189 = vector.shape_cast %188 : vector<64x4xbf16> to vector<4x16x4xbf16>
    %190 = vector.extract_strided_slice %63 {offsets = [0, 24], sizes = [64, 4], strides = [1, 1]} : vector<64x32xbf16> to vector<64x4xbf16>
    %191 = vector.shape_cast %190 : vector<64x4xbf16> to vector<4x16x4xbf16>
    %192 = vector.extract_strided_slice %67 {offsets = [0, 24], sizes = [64, 4], strides = [1, 1]} : vector<64x32xbf16> to vector<64x4xbf16>
    %193 = vector.shape_cast %192 : vector<64x4xbf16> to vector<4x16x4xbf16>
    "tpu.trace_start"() <{level = 10 : i32, message = "sld,smd->slm"}> : () -> ()
    %cst_77 = arith.constant dense<0.000000e+00> : vector<4x16x16xf32>
    %194 = tpu.matmul %189, %191, %cst_77 {dimension_numbers = #tpu.dot_dimension_numbers<[2], [2], [1], [1], [0, 0, 0, 1, 1, 1], [0], [0]>} : vector<4x16x4xbf16>, vector<4x16x4xbf16>, vector<4x16x16xf32> -> vector<4x16x16xf32>
    "tpu.trace_stop"() : () -> ()
    %cst_78 = arith.constant dense<0xFF800000> : vector<4x16xf32>
    %195 = vector.multi_reduction <maximumf>, %194, %cst_78 [2] : vector<4x16x16xf32> to vector<4x16xf32>
    %196 = vector.shape_cast %195 : vector<4x16xf32> to vector<4x16x1xf32>
    %197 = vector.broadcast %196 : vector<4x16x1xf32> to vector<4x16x16xf32>
    %198 = arith.subf %194, %197 : vector<4x16x16xf32>
    %199 = math.exp %198 : vector<4x16x16xf32>
    %cst_79 = arith.constant dense<0.000000e+00> : vector<4x16xf32>
    %200 = vector.multi_reduction <add>, %199, %cst_79 [2] : vector<4x16x16xf32> to vector<4x16xf32>
    %201 = vector.shape_cast %200 : vector<4x16xf32> to vector<4x16x1xf32>
    %202 = tpu.reciprocal %201 {approx = true} : vector<4x16x1xf32> -> vector<4x16x1xf32>
    %203 = vector.broadcast %202 : vector<4x16x1xf32> to vector<4x16x16xf32>
    %204 = arith.mulf %199, %203 : vector<4x16x16xf32>
    %205 = arith.truncf %204 : vector<4x16x16xf32> to vector<4x16x16xbf16>
    "tpu.trace_start"() <{level = 10 : i32, message = "slm,smd->sld"}> : () -> ()
    %cst_80 = arith.constant dense<0.000000e+00> : vector<4x16x4xf32>
    %206 = tpu.matmul %205, %193, %cst_80 {dimension_numbers = #tpu.dot_dimension_numbers<[2], [1], [1], [2], [0, 0, 0, 1, 1, 2], [0], [0]>} : vector<4x16x16xbf16>, vector<4x16x4xbf16>, vector<4x16x4xf32> -> vector<4x16x4xf32>
    "tpu.trace_stop"() : () -> ()
    %207 = vector.shape_cast %206 : vector<4x16x4xf32> to vector<64x4xf32>
    %208 = vector.extract_strided_slice %59 {offsets = [0, 28], sizes = [64, 4], strides = [1, 1]} : vector<64x32xbf16> to vector<64x4xbf16>
    %209 = vector.shape_cast %208 : vector<64x4xbf16> to vector<4x16x4xbf16>
    %210 = vector.extract_strided_slice %63 {offsets = [0, 28], sizes = [64, 4], strides = [1, 1]} : vector<64x32xbf16> to vector<64x4xbf16>
    %211 = vector.shape_cast %210 : vector<64x4xbf16> to vector<4x16x4xbf16>
    %212 = vector.extract_strided_slice %67 {offsets = [0, 28], sizes = [64, 4], strides = [1, 1]} : vector<64x32xbf16> to vector<64x4xbf16>
    %213 = vector.shape_cast %212 : vector<64x4xbf16> to vector<4x16x4xbf16>
    "tpu.trace_start"() <{level = 10 : i32, message = "sld,smd->slm"}> : () -> ()
    %cst_81 = arith.constant dense<0.000000e+00> : vector<4x16x16xf32>
    %214 = tpu.matmul %209, %211, %cst_81 {dimension_numbers = #tpu.dot_dimension_numbers<[2], [2], [1], [1], [0, 0, 0, 1, 1, 1], [0], [0]>} : vector<4x16x4xbf16>, vector<4x16x4xbf16>, vector<4x16x16xf32> -> vector<4x16x16xf32>
    "tpu.trace_stop"() : () -> ()
    %cst_82 = arith.constant dense<0xFF800000> : vector<4x16xf32>
    %215 = vector.multi_reduction <maximumf>, %214, %cst_82 [2] : vector<4x16x16xf32> to vector<4x16xf32>
    %216 = vector.shape_cast %215 : vector<4x16xf32> to vector<4x16x1xf32>
    %217 = vector.broadcast %216 : vector<4x16x1xf32> to vector<4x16x16xf32>
    %218 = arith.subf %214, %217 : vector<4x16x16xf32>
    %219 = math.exp %218 : vector<4x16x16xf32>
    %cst_83 = arith.constant dense<0.000000e+00> : vector<4x16xf32>
    %220 = vector.multi_reduction <add>, %219, %cst_83 [2] : vector<4x16x16xf32> to vector<4x16xf32>
    %221 = vector.shape_cast %220 : vector<4x16xf32> to vector<4x16x1xf32>
    %222 = tpu.reciprocal %221 {approx = true} : vector<4x16x1xf32> -> vector<4x16x1xf32>
    %223 = vector.broadcast %222 : vector<4x16x1xf32> to vector<4x16x16xf32>
    %224 = arith.mulf %219, %223 : vector<4x16x16xf32>
    %225 = arith.truncf %224 : vector<4x16x16xf32> to vector<4x16x16xbf16>
    "tpu.trace_start"() <{level = 10 : i32, message = "slm,smd->sld"}> : () -> ()
    %cst_84 = arith.constant dense<0.000000e+00> : vector<4x16x4xf32>
    %226 = tpu.matmul %225, %213, %cst_84 {dimension_numbers = #tpu.dot_dimension_numbers<[2], [1], [1], [2], [0, 0, 0, 1, 1, 2], [0], [0]>} : vector<4x16x16xbf16>, vector<4x16x4xbf16>, vector<4x16x4xf32> -> vector<4x16x4xf32>
    "tpu.trace_stop"() : () -> ()
    %227 = vector.shape_cast %226 : vector<4x16x4xf32> to vector<64x4xf32>
    %228 = tpu.concatenate %87, %107, %127, %147, %167, %187, %207, %227 in 1 : vector<64x4xf32>, vector<64x4xf32>, vector<64x4xf32>, vector<64x4xf32>, vector<64x4xf32>, vector<64x4xf32>, vector<64x4xf32>, vector<64x4xf32> -> vector<64x32xf32>
    %229 = arith.truncf %228 : vector<64x32xf32> to vector<64x32xbf16>
    %cst_85 = arith.constant dense<0.000000e+00> : vector<64x32xf32>
    %230 = tpu.matmul %229, %18, %cst_85 {dimension_numbers = #tpu.dot_dimension_numbers<[1], [0], [0], [1], [0, 0, 1, 1], [], []>} : vector<64x32xbf16>, vector<32x32xbf16>, vector<64x32xf32> -> vector<64x32xf32>
    %231 = arith.addf %31, %230 : vector<64x32xf32>
    %232 = vector.broadcast %20 : vector<1x32xf32> to vector<64x32xf32>
    %233 = arith.addf %231, %232 : vector<64x32xf32>
    %234 = vector.extract_strided_slice %22 {offsets = [0, 0], sizes = [1, 32], strides = [1, 1]} : vector<2x32xf32> to vector<1x32xf32>
    %235 = vector.extract_strided_slice %22 {offsets = [1, 0], sizes = [1, 32], strides = [1, 1]} : vector<2x32xf32> to vector<1x32xf32>
    %cst_86 = arith.constant dense<0.000000e+00> : vector<64xf32>
    %236 = vector.multi_reduction <add>, %233, %cst_86 [1] : vector<64x32xf32> to vector<64xf32>
    %237 = vector.shape_cast %236 : vector<64xf32> to vector<64x1xf32>
    %cst_87 = arith.constant 3.200000e+01 : f32
    %238 = vector.broadcast %cst_87 : f32 to vector<64x1xf32>
    %239 = arith.divf %237, %238 : vector<64x1xf32>
    %240 = vector.broadcast %239 : vector<64x1xf32> to vector<64x32xf32>
    %241 = arith.subf %233, %240 : vector<64x32xf32>
    %242 = arith.mulf %241, %241 : vector<64x32xf32>
    %cst_88 = arith.constant dense<0.000000e+00> : vector<64xf32>
    %243 = vector.multi_reduction <add>, %242, %cst_88 [1] : vector<64x32xf32> to vector<64xf32>
    %244 = vector.shape_cast %243 : vector<64xf32> to vector<64x1xf32>
    %cst_89 = arith.constant 3.200000e+01 : f32
    %245 = vector.broadcast %cst_89 : f32 to vector<64x1xf32>
    %246 = arith.divf %244, %245 : vector<64x1xf32>
    %cst_90 = arith.constant 9.99999997E-7 : f32
    %247 = vector.broadcast %cst_90 : f32 to vector<64x1xf32>
    %248 = arith.addf %246, %247 : vector<64x1xf32>
    %249 = math.rsqrt %248 : vector<64x1xf32>
    %250 = vector.broadcast %249 : vector<64x1xf32> to vector<64x32xf32>
    %251 = arith.mulf %241, %250 : vector<64x32xf32>
    %252 = vector.broadcast %234 : vector<1x32xf32> to vector<64x32xf32>
    %253 = arith.mulf %251, %252 : vector<64x32xf32>
    %254 = vector.broadcast %235 : vector<1x32xf32> to vector<64x32xf32>
    %255 = arith.addf %253, %254 : vector<64x32xf32>
    %256 = arith.truncf %255 : vector<64x32xf32> to vector<64x32xbf16>
    %cst_91 = arith.constant dense<0.000000e+00> : vector<64x64xf32>
    %257 = tpu.matmul %256, %24, %cst_91 {dimension_numbers = #tpu.dot_dimension_numbers<[1], [0], [0], [1], [0, 0, 1, 1], [], []>} : vector<64x32xbf16>, vector<32x64xbf16>, vector<64x64xf32> -> vector<64x64xf32>
    %258 = vector.broadcast %26 : vector<1x64xf32> to vector<64x64xf32>
    %259 = arith.addf %257, %258 : vector<64x64xf32>
    %cst_92 = arith.constant 5.000000e-01 : f32
    %260 = vector.broadcast %cst_92 : f32 to vector<64x64xf32>
    %261 = arith.mulf %260, %259 : vector<64x64xf32>
    %cst_93 = arith.constant 0.707106769 : f32
    %262 = vector.broadcast %cst_93 : f32 to vector<64x64xf32>
    %263 = arith.mulf %259, %262 : vector<64x64xf32>
    %264 = math.erf %263 : vector<64x64xf32>
    %cst_94 = arith.constant 1.000000e+00 : f32
    %265 = vector.broadcast %cst_94 : f32 to vector<64x64xf32>
    %266 = arith.addf %265, %264 : vector<64x64xf32>
    %267 = arith.mulf %261, %266 : vector<64x64xf32>
    %268 = arith.truncf %267 : vector<64x64xf32> to vector<64x64xbf16>
    %cst_95 = arith.constant dense<0.000000e+00> : vector<64x32xf32>
    %269 = tpu.matmul %268, %28, %cst_95 {dimension_numbers = #tpu.dot_dimension_numbers<[1], [0], [0], [1], [0, 0, 1, 1], [], []>} : vector<64x64xbf16>, vector<64x32xbf16>, vector<64x32xf32> -> vector<64x32xf32>
    %270 = arith.addf %233, %269 : vector<64x32xf32>
    %271 = vector.broadcast %30 : vector<1x32xf32> to vector<64x32xf32>
    %272 = arith.addf %270, %271 : vector<64x32xf32>
    %273 = vector.extract_strided_slice %32 {offsets = [0, 0], sizes = [1, 32], strides = [1, 1]} : vector<2x32xf32> to vector<1x32xf32>
    %274 = vector.extract_strided_slice %32 {offsets = [1, 0], sizes = [1, 32], strides = [1, 1]} : vector<2x32xf32> to vector<1x32xf32>
    %cst_96 = arith.constant dense<0.000000e+00> : vector<64xf32>
    %275 = vector.multi_reduction <add>, %272, %cst_96 [1] : vector<64x32xf32> to vector<64xf32>
    %276 = vector.shape_cast %275 : vector<64xf32> to vector<64x1xf32>
    %cst_97 = arith.constant 3.200000e+01 : f32
    %277 = vector.broadcast %cst_97 : f32 to vector<64x1xf32>
    %278 = arith.divf %276, %277 : vector<64x1xf32>
    %279 = vector.broadcast %278 : vector<64x1xf32> to vector<64x32xf32>
    %280 = arith.subf %272, %279 : vector<64x32xf32>
    %281 = arith.mulf %280, %280 : vector<64x32xf32>
    %cst_98 = arith.constant dense<0.000000e+00> : vector<64xf32>
    %282 = vector.multi_reduction <add>, %281, %cst_98 [1] : vector<64x32xf32> to vector<64xf32>
    %283 = vector.shape_cast %282 : vector<64xf32> to vector<64x1xf32>
    %cst_99 = arith.constant 3.200000e+01 : f32
    %284 = vector.broadcast %cst_99 : f32 to vector<64x1xf32>
    %285 = arith.divf %283, %284 : vector<64x1xf32>
    %cst_100 = arith.constant 9.99999997E-7 : f32
    %286 = vector.broadcast %cst_100 : f32 to vector<64x1xf32>
    %287 = arith.addf %285, %286 : vector<64x1xf32>
    %288 = math.rsqrt %287 : vector<64x1xf32>
    %289 = vector.broadcast %288 : vector<64x1xf32> to vector<64x32xf32>
    %290 = arith.mulf %280, %289 : vector<64x32xf32>
    %291 = vector.broadcast %273 : vector<1x32xf32> to vector<64x32xf32>
    %292 = arith.mulf %290, %291 : vector<64x32xf32>
    %293 = vector.broadcast %274 : vector<1x32xf32> to vector<64x32xf32>
    %294 = arith.addf %292, %293 : vector<64x32xf32>
    %c0_101 = arith.constant 0 : index
    %c0_102 = arith.constant 0 : index
    %295 = vector.load %arg23[%c0_101, %c0_102] : memref<64x32xf32, #tpu.memory_space<vmem>>, vector<64x32xf32>
    tpu.vector_store %arg23[%c0_101, %c0_102], %294 {strides = array<i32>} : memref<64x32xf32, #tpu.memory_space<vmem>>, vector<64x32xf32>,
    %c1_i32 = arith.constant 1 : i32
    %296 = arith.cmpi eq, %arg2, %c1_i32 : i32
    %297 = arith.extui %296 : i1 to i32
    %c0_i32_103 = arith.constant 0 : i32
    %298 = arith.cmpi ne, %297, %c0_i32_103 : i32
    scf.if %298 {
      %299 = vector.shape_cast %294 : vector<64x32xf32> to vector<4x16x32xf32>
      %c0_104 = arith.constant 0 : index
      %c0_105 = arith.constant 0 : index
      %c0_106 = arith.constant 0 : index
      %c0_107 = arith.constant 0 : index
      %300 = vector.load %arg22[%c0_104, %c0_105, %c0_106, %c0_107] : memref<1x4x16x32xf32, #tpu.memory_space<vmem>>, vector<1x4x16x32xf32>
      %301 = vector.shape_cast %300 : vector<1x4x16x32xf32> to vector<4x16x32xf32>
      %302 = vector.shape_cast %299 : vector<4x16x32xf32> to vector<1x4x16x32xf32>
      tpu.vector_store %arg22[%c0_104, %c0_105, %c0_106, %c0_107], %302 {strides = array<i32>} : memref<1x4x16x32xf32, #tpu.memory_space<vmem>>, vector<1x4x16x32xf32>,
    } else {
    }
    return
  }
  func.func @transform_0(%arg0: i32, %arg1: i32, %arg2: i32) -> (i32, i32, i32, i32) {
    %c0_i32 = arith.constant 0 : i32
    %c0_i32_0 = arith.constant 0 : i32
    %c0_i32_1 = arith.constant 0 : i32
    return %arg0, %arg1, %c0_i32, %c0_i32_0 : i32, i32, i32, i32
  }
  func.func @transform_1(%arg0: i32, %arg1: i32, %arg2: i32) -> (i32, i32) {
    %c0_i32 = arith.constant 0 : i32
    %c0_i32_0 = arith.constant 0 : i32
    %c0_i32_1 = arith.constant 0 : i32
    return %c0_i32, %c0_i32_0 : i32, i32
  }
  func.func @transform_2(%arg0: i32, %arg1: i32, %arg2: i32) -> (i32, i32) {
    %c0_i32 = arith.constant 0 : i32
    %c0_i32_0 = arith.constant 0 : i32
    %c0_i32_1 = arith.constant 0 : i32
    return %c0_i32, %c0_i32_0 : i32, i32
  }
  func.func @transform_3(%arg0: i32, %arg1: i32, %arg2: i32) -> (i32, i32) {
    %c0_i32 = arith.constant 0 : i32
    %c0_i32_0 = arith.constant 0 : i32
    %c0_i32_1 = arith.constant 0 : i32
    return %c0_i32, %c0_i32_0 : i32, i32
  }
  func.func @transform_4(%arg0: i32, %arg1: i32, %arg2: i32) -> (i32, i32, i32) {
    %c0_i32 = arith.constant 0 : i32
    %c0_i32_0 = arith.constant 0 : i32
    %c0_i32_1 = arith.constant 0 : i32
    return %arg2, %c0_i32, %c0_i32_0 : i32, i32, i32
  }
  func.func @transform_5(%arg0: i32, %arg1: i32, %arg2: i32) -> (i32, i32, i32) {
    %c0_i32 = arith.constant 0 : i32
    %c0_i32_0 = arith.constant 0 : i32
    %c0_i32_1 = arith.constant 0 : i32
    return %arg2, %c0_i32, %c0_i32_0 : i32, i32, i32
  }
  func.func @transform_6(%arg0: i32, %arg1: i32, %arg2: i32) -> (i32, i32, i32) {
    %c0_i32 = arith.constant 0 : i32
    %c0_i32_0 = arith.constant 0 : i32
    %c0_i32_1 = arith.constant 0 : i32
    return %arg2, %c0_i32, %c0_i32_0 : i32, i32, i32
  }
  func.func @transform_7(%arg0: i32, %arg1: i32, %arg2: i32) -> (i32, i32, i32) {
    %c0_i32 = arith.constant 0 : i32
    %c0_i32_0 = arith.constant 0 : i32
    %c0_i32_1 = arith.constant 0 : i32
    return %arg2, %c0_i32, %c0_i32_0 : i32, i32, i32
  }
  func.func @transform_8(%arg0: i32, %arg1: i32, %arg2: i32) -> (i32, i32, i32) {
    %c0_i32 = arith.constant 0 : i32
    %c0_i32_0 = arith.constant 0 : i32
    %c0_i32_1 = arith.constant 0 : i32
    return %arg2, %c0_i32, %c0_i32_0 : i32, i32, i32
  }
  func.func @transform_9(%arg0: i32, %arg1: i32, %arg2: i32) -> (i32, i32, i32) {
    %c0_i32 = arith.constant 0 : i32
    %c0_i32_0 = arith.constant 0 : i32
    %c0_i32_1 = arith.constant 0 : i32
    return %arg2, %c0_i32, %c0_i32_0 : i32, i32, i32
  }
  func.func @transform_10(%arg0: i32, %arg1: i32, %arg2: i32) -> (i32, i32, i32) {
    %c0_i32 = arith.constant 0 : i32
    %c0_i32_0 = arith.constant 0 : i32
    %c0_i32_1 = arith.constant 0 : i32
    return %arg2, %c0_i32, %c0_i32_0 : i32, i32, i32
  }
  func.func @transform_11(%arg0: i32, %arg1: i32, %arg2: i32) -> (i32, i32, i32) {
    %c0_i32 = arith.constant 0 : i32
    %c0_i32_0 = arith.constant 0 : i32
    %c0_i32_1 = arith.constant 0 : i32
    return %arg2, %c0_i32, %c0_i32_0 : i32, i32, i32
  }
  func.func @transform_12(%arg0: i32, %arg1: i32, %arg2: i32) -> (i32, i32, i32) {
    %c0_i32 = arith.constant 0 : i32
    %c0_i32_0 = arith.constant 0 : i32
    %c0_i32_1 = arith.constant 0 : i32
    return %arg2, %c0_i32, %c0_i32_0 : i32, i32, i32
  }
  func.func @transform_13(%arg0: i32, %arg1: i32, %arg2: i32) -> (i32, i32, i32) {
    %c0_i32 = arith.constant 0 : i32
    %c0_i32_0 = arith.constant 0 : i32
    %c0_i32_1 = arith.constant 0 : i32
    return %arg2, %c0_i32, %c0_i32_0 : i32, i32, i32
  }
  func.func @transform_14(%arg0: i32, %arg1: i32, %arg2: i32) -> (i32, i32, i32) {
    %c0_i32 = arith.constant 0 : i32
    %c0_i32_0 = arith.constant 0 : i32
    %c0_i32_1 = arith.constant 0 : i32
    return %arg2, %c0_i32, %c0_i32_0 : i32, i32, i32
  }
  func.func @transform_15(%arg0: i32, %arg1: i32, %arg2: i32) -> (i32, i32, i32) {
    %c0_i32 = arith.constant 0 : i32
    %c0_i32_0 = arith.constant 0 : i32
    %c0_i32_1 = arith.constant 0 : i32
    return %arg2, %c0_i32, %c0_i32_0 : i32, i32, i32
  }
  func.func @transform_16(%arg0: i32, %arg1: i32, %arg2: i32) -> (i32, i32, i32) {
    %c0_i32 = arith.constant 0 : i32
    %c0_i32_0 = arith.constant 0 : i32
    %c0_i32_1 = arith.constant 0 : i32
    return %arg2, %c0_i32, %c0_i32_0 : i32, i32, i32
  }
  func.func @transform_17(%arg0: i32, %arg1: i32, %arg2: i32) -> (i32, i32, i32) {
    %c0_i32 = arith.constant 0 : i32
    %c0_i32_0 = arith.constant 0 : i32
    %c0_i32_1 = arith.constant 0 : i32
    return %arg2, %c0_i32, %c0_i32_0 : i32, i32, i32
  }
  func.func @transform_18(%arg0: i32, %arg1: i32, %arg2: i32) -> (i32, i32) {
    %c0_i32 = arith.constant 0 : i32
    %c0_i32_0 = arith.constant 0 : i32
    %c0_i32_1 = arith.constant 0 : i32
    return %c0_i32, %c0_i32_0 : i32, i32
  }
  func.func @transform_19(%arg0: i32, %arg1: i32, %arg2: i32) -> (i32, i32, i32, i32) {
    %c0_i32 = arith.constant 0 : i32
    %c0_i32_0 = arith.constant 0 : i32
    %c0_i32_1 = arith.constant 0 : i32
    return %arg0, %arg1, %c0_i32, %c0_i32_0 : i32, i32, i32, i32
  }
}

</mosaic_0001>

<bundles_post_ra>
// kernel: tpu_custom_call.1
= control target key start
LH: loop header
LB: loop body
LE: loop exit
PB: predicated region body
PF: predicated region fallthrough
CT: control target
= control target key end

     0   :  { %s9901_s0 = inlined_call_operand.vmem [shape: f32[2,8,16,2], index: 0, kind: input, shape index: {}]   ;;  %s9902_s1 = inlined_call_operand.vmem [shape: bf16[2,32], index: 1, kind: input, shape index: {}]   ;;  %s9903_s2 = inlined_call_operand.vmem [shape: f32[1,32], index: 2, kind: input, shape index: {}]   ;;  %s9904_s3 = inlined_call_operand.vmem [shape: f32[16,32], index: 3, kind: input, shape index: {}]   ;;  %s9905_s4 = inlined_call_operand.vmem [shape: f32[2,2,32], index: 4, kind: input, shape index: {}]   ;;  %s9906_s5 = inlined_call_operand.vmem [shape: bf16[2,32,32], index: 5, kind: input, shape index: {}]   ;;  %s9907_s6 = inlined_call_operand.vmem [shape: f32[2,1,32], index: 6, kind: input, shape index: {}]   ;;  %s9908_s7 = inlined_call_operand.vmem [shape: bf16[2,32,32], index: 7, kind: input, shape index: {}]   ;;  %s9909_s8 = inlined_call_operand.vmem [shape: f32[2,1,32], index: 8, kind: input, shape index: {}]   ;;  %s9910_s9 = inlined_call_operand.vmem [shape: bf16[2,32,32], index: 9, kind: input, shape index: {}]   ;;  %s9911_s10 = inlined_call_operand.vmem [shape: f32[2,1,32], index: 10, kind: input, shape index: {}]   ;;  %s9912_s11 = inlined_call_operand.vmem [shape: bf16[2,32,32], index: 11, kind: input, shape index: {}]   ;;  %s9913_s12 = inlined_call_operand.vmem [shape: f32[2,1,32], index: 12, kind: input, shape index: {}]   ;;  %s9914_s13 = inlined_call_operand.vmem [shape: f32[2,2,32], index: 13, kind: input, shape index: {}]   ;;  %s9915_s14 = inlined_call_operand.vmem [shape: bf16[2,32,64], index: 14, kind: input, shape index: {}]   ;;  %s9916_s15 = inlined_call_operand.vmem [shape: f32[2,1,64], index: 15, kind: input, shape index: {}]   ;;  %s9917_s16 = inlined_call_operand.vmem [shape: bf16[2,64,32], index: 16, kind: input, shape index: {}]   ;;  %s9918_s17 = inlined_call_operand.vmem [shape: f32[2,1,32], index: 17, kind: input, shape index: {}]   ;;  %s9919_s18 = inlined_call_operand.vmem [shape: f32[2,32], index: 18, kind: input, shape index: {}]   ;;  %s9920_s19 = inlined_call_operand.hbm [shape: f32[2,8,16,32], index: 19, kind: output, shape index: {}]  }
   0x1   :  { %9961 = sst [smem:[#allocation48_spill]] %s9901_s0 }
   0x2   :  { %9962 = sst [smem:[#allocation49_spill]] %s9902_s1 }
   0x3   :  { %9963 = sst [smem:[#allocation50_spill]] %s9903_s2 }
   0x4   :  { %9964 = sst [smem:[#allocation51_spill]] %s9904_s3 }
   0x5   :  { %9965 = sst [smem:[#allocation52_spill]] %s9905_s4 }
   0x6   :  { %9966 = sst [smem:[#allocation53_spill]] %s9906_s5 }
   0x7   :  { %9967 = sst [smem:[#allocation54_spill]] %s9908_s7 }
   0x8   :  { %9968 = sst [smem:[#allocation55_spill]] %s9910_s9 }
   0x9   :  { %9969 = sst [smem:[#allocation56_spill]] %s9912_s11 }
   0xa   :  { %9970 = sst [smem:[#allocation57_spill]] %s9913_s12 }
   0xb   :  { %9971 = sst [smem:[#allocation58_spill]] %s9917_s16 }
   0xc   :  { %9972 = sst [smem:[#allocation59_spill]] %s9919_s18 }
   0xd   :  { %9973 = sst [smem:[#allocation60_spill]] %s9920_s19 }
   0xe   :  { %24 = vsyncpa [#allocation4], 0 }
   0xf   :  { %26 = vsyncpa [#allocation4 + $0x1], 0  ;;  %s8135_s0 = smov 0   ;;  %s8137_s30 = smov 0  }
  0x10   :  { %s8139_s20 = smov 0   ;;  %s8141_s21 = smov 0  }
  0x11   :  { %s8143_s1 = smov 0   ;;  %s8145_s22 = smov 0  }
  0x12   :  { %s8147_s2 = smov 0   ;;  %s8149_s23 = smov 0  }
  0x13   :  { %s8151_s24 = smov 0   ;;  %s8153_s25 = smov 0  }
  0x14 LB: > { %9974 = sst [smem:[#allocation6_spill]] %s7979_s0  ;;  %s6517_s3 = sadd.s32 4294967295, %s8015_s25   ;;  %s8015_s25 = sphi %s8153_s25, %s32_s25   ;;  %s8011_s24 = sphi %s8151_s24, %s10105_s24   ;;  %s8007_s23 = sphi %s8149_s23, %s10104_s23   ;;  %s8003_s2 = sphi %s8147_s2, %s10103_s2   ;;  %s7999_s22 = sphi %s8145_s22, %s10102_s22   ;;  %s7995_s1 = sphi %s8143_s1, %s10101_s1   ;;  %s7991_s21 = sphi %s8141_s21, %s10100_s21   ;;  %s7987_s20 = sphi %s8139_s20, %s10099_s20   ;;  %s7983_s30 = sphi %s8137_s30, %s10098_s30   ;;  %s7979_s0 = sphi %s8135_s0, %s10097_s0  }
  0x15   : > { %9975 = sst [smem:[#allocation7_spill]] %s7983_s30  ;;  %s6518_s26 = sadd.s32 4294967294, %s8015_s25  }
  0x16   : > { %9976 = sst [smem:[#allocation8_spill]] %s7987_s20  ;;  %s44_s27 = sadd.s32 1, %s8003_s2 }
  0x17   : > { %9977 = sst [smem:[#allocation9_spill]] %s7991_s21  ;;  %p45_p0 = scmp.ge.s32.totalorder %s44_s27, 2 }
  0x18   : > { %9978 = sst [smem:[#allocation10_spill]] %s7995_s1  ;;  %s47_s28 = sadd.s32 1, %s8007_s23 }
  0x19   : > { %9979 = sst [smem:[#allocation11_spill]] %s7999_s22  ;;  %s51_s29 = sadd.s32 1, %s8011_s24 }
  0x1a   : > { %9980 = sst [smem:[#allocation12_spill]] %s8003_s2  ;;  %p546_p1 = scmp.ne.s32.totalorder %s7987_s20, %s7983_s30 }
  0x1b   : > { %9981 = sst [smem:[#allocation13_spill]] %s8007_s23  ;;  %s10107_s27 = smov (%p45_p0, %s44_s27), 0 }
  0x1c   : > { %9982 = sst [smem:[#allocation14_spill]] %s8011_s24  ;;  %s10109_s28 = smov (!%p45_p0, %s47_s28), %s8007_s23 }
  0x1d   : > { %9983 = sst [smem:[#allocation15_spill]] %s8015_s25  ;;  %p547_p2 = scmp.eq.s32.totalorder %s6517_s3, 7 }
  0x1e   : > { %9984 = sst [smem:[#allocation16_spill]] %s10107_s27  ;;  %p552_p3 = scmp.ne.s32.totalorder %s7983_s30, %s7979_s0 }
  0x1f   : > { %p49_p4 = scmp.ge.s32.totalorder %s10109_s28, 2  ;;  %p553_p5 = scmp.eq.s32.totalorder %s6518_s26, 7 }
  0x20   : > { %p8197_p6 = por %p547_p2, %p546_p1  ;;  %p6521_p8 = scmp.ge.s32.totalorder %s8015_s25, 1 }
  0x21   : > { %s10111_s28 = smov (%p49_p4, %s10109_s28), 0  ;;  %s10113_s29 = smov (!%p49_p4, %s51_s29), %s8011_s24 }
  0x22   : > { %s9985_s19 = scalar_select %p8197_p6, 1, 0 }
  0x23   : > { %9987 = sst [smem:[#allocation18_spill]] %s10111_s28  ;;  %p8204_p7 = por %p553_p5, %p552_p3 }
  0x24   : > { %9986 = sst [smem:[#allocation17_spill]] %s9985_s19  ;;  %p53_p9 = scmp.ge.s32.totalorder %s10113_s29, 2 }
  0x25   : > { %s9988_s2 = scalar_select %p8204_p7, 1, 0 }
  0x26   : > { %p695_p10 = scmp.lt.s32.totalorder %s8015_s25, 9  ;;  %s532_s3 = ssub.s32 %s8007_s23, %s10111_s28 }
  0x27   : > { %9989 = sst [smem:[#allocation19_spill]] %s9988_s2  ;;  %s10115_s29 = smov (%p53_p9, %s10113_s29), 0 }
  0x28   : > { %9990 = sst [smem:[#allocation20_spill]] %s10115_s29  ;;  %p696_p11 = pnand %p6521_p8, %p695_p10 }
  0x29   : > { %s531_s26 = ssub.s32 %s8011_s24, %s10115_s29  ;;  %s536_s0 = sadd.s32 1, %s7987_s20 }
  0x2a   : > { %s533_s27 = sor.u32 %s532_s3, %s531_s26  ;;  %699 = sbr.rel (%p696_p11) target bundleno = 7330 (0x1ca2), region = 96 }
  0x2b   : > { %p534_p12 = scmp.eq.s32.totalorder %s533_s27, 0 }
  0x2d   : > { %s8218_s19 = scalar_select %p534_p12, %s7987_s20, %s536_s0  }
  0x2f   : > { %9991 = sst [smem:[#allocation21_spill]] %s8218_s19 }
  0x31   : > { %s9935_s2 = sand.u32 1, %s7983_s30   ;;  %s6523_s28 = sshll.u32 %s7995_s1, 2 }
  0x32   : > { %s8224_s23 = sshll.u32 %s9935_s2, 6  ;;  %p813_p13 = scmp.lt.s32.totalorder %s7999_s22, 1 }
  0x33   : > { %p815_p0 = scmp.lt.s32.totalorder %s6523_s28, 7  ;;  %p823_p1 = scmp.lt.s32.totalorder %s7991_s21, 1 }
  0x34   : > { %s814_s3 = scalar_select %p813_p13, %s7999_s22, 1 }
  0x35   : > { %s10117_s28 = smov (!%p815_p0, %s6523_s28), 7  ;;  %s9992_s20 = sld [smem:[#allocation48_spill]] }
  0x36   : > { %s6525_s27 = sshll.u32 %s814_s3, 4  ;;  %s6524_s0 = sshll.u32 %s10117_s28, 1 }
  0x37   : > { %s819_s26 = sadd.s32 %s6525_s27, %s6524_s0  ;;  %s9994_s4 = sld [smem:[#allocation52_spill]] }
  0x38   : > { %s6526_s29 = sshll.u32 %s819_s26, 3  ;;  %s9996_s5 = sld [smem:[#allocation53_spill]] }
  0x39   : > { %s8235_s18 = scalar_select %p823_p1, %s7991_s21, 1 }
  0x3a   : > { %s9997_s7 = sld [smem:[#allocation54_spill]]  ;;  %s9998_s9 = sld [smem:[#allocation55_spill]] }
  0x3b   : > { %s8232_s25 = scalar_lea.vmem %s9992_s20, %s6526_s29  ;;  %s6527_s28 = sshll.u32 %s8235_s18, 1 }
  0x3c   : > { %9993 = sst [smem:[#allocation22_spill]] %s8232_s25  ;;  %s6663_s3 = sshll.u32 %s8235_s18, 4 }
  0x3d   : > { %s8242_s19 = scalar_lea.vmem %s9994_s4, %s6527_s28  ;;  %s9999_s11 = sld [smem:[#allocation56_spill]] }
  0x3e   : > { %9995 = sst [smem:[#allocation23_spill]] %s8242_s19  ;;  %s8247_s29 = scalar_lea.vmem %s9996_s5, %s6663_s3 }
  0x3f   : > { %s8283_s27 = scalar_lea.vmem %s9914_s13, %s6527_s28  ;;  %s870_s2 = scalar_lea.vmem %s9916_s15, %s8235_s18 }
  0x40   : > { %s8256_s25 = scalar_lea.vmem %s9997_s7, %s6663_s3  ;;  %s8265_s19 = scalar_lea.vmem %s9998_s9, %s6663_s3 }
  0x41   : > { %s8288_s9 = scalar_lea.vmem %s9915_s14, %s6663_s3  ;;  %s6668_s26 = sshll.u32 %s8235_s18, 5 }
  0x42   : > { %s878_s1 = scalar_lea.vmem %s9918_s17, %s8235_s18  ;;  %s10001_s12 = sld [smem:[#allocation58_spill]] }
  0x43   : > { %s8274_s30 = scalar_lea.vmem %s9999_s11, %s6663_s3  ;;  %s8305_s28 = scalar_lea.vmem [#allocation3], %s8224_s23 }
  0x44   : > { %s10002_s21 = sld [smem:[#allocation9_spill]] }
  0x48   : > { %s8302_s16 = scalar_lea.vmem %s10001_s12, %s6668_s26 }
  0x4a   : > { %p6541_p2 = scmp.ne.s32.totalorder %s10002_s21, 0 }
  0x4b   : > { %s10003_s0 = sld [smem:[#allocation49_spill]] (!%p6541_p2)  ;;  %s10004_s20 = sld [smem:[#allocation22_spill]] (!%p6541_p2)  ;;  %vm918_vm0 = vcmask (!%p6541_p2), 1040384   ;;  %vm905_vm1 = vcmask (!%p6541_p2), 15360   ;;  %vm997_vm2 = vcmask (!%p6541_p2), 261120  }
  0x4c   : > { %884 = sbr.rel (%p6541_p2) target bundleno = 307 (0x133), region = 100  ;;  %s10005_s11 = sld [smem:[#allocation50_spill]] (!%p6541_p2) }
  0x4d   : > { %s10006_s24 = sld [smem:[#allocation51_spill]] (!%p6541_p2) }
  0x51   : > { %v893_v0 = vld [vmem:[%s10003_s0] sm:$0x1] (!%p6541_p2)  ;;  %v886_v2 = vld [vmem:[%s10004_s20 + $0x8] sm:$0xff] (!%p6541_p2)  ;;  %v887_v7 = vld [vmem:[%s10004_s20 + $0x10] sm:$0xff] (!%p6541_p2) }
  0x52   : > { %v885_v1 = vld [vmem:[%s10004_s20] sm:$0xff] (!%p6541_p2)  ;;  %7317 = vmatprep.subr.msk.bf16.mxu0 (!%p6541_p2), %vm918_vm0, %v893_v0  ;;  %7318 = vmatprep.subr.msk.bf16.mxu1 (!%p6541_p2), %vm918_vm0, %v893_v0  ;;  %v920_v3 = vsel (!%p6541_p2), %vm918_vm0, %v893_v0, 0  ;;  %v890_v6 = vld [vmem:[%s10004_s20 + $0x28] sm:$0xff] (!%p6541_p2)  ;;  %v888_v9 = vld [vmem:[%s10004_s20 + $0x18] sm:$0xff] (!%p6541_p2) }
  0x53   : > { %v894_v4 = vpack.c.bf16 %v886_v2, %v885_v1  ;;  %v889_v5 = vld [vmem:[%s10004_s20 + $0x20] sm:$0xff]  ;;  %6842 = vmatpush3.bf16.msra.mxu0 %v920_v3  ;;  %7312 = vmatpush3.bf16.msra.mxu1 %v920_v3  ;;  %v891_v10 = vld [vmem:[%s10004_s20 + $0x30] sm:$0xff]  ;;  %v892_v11 = vld [vmem:[%s10004_s20 + $0x38] sm:$0xff]  ;;  %v895_v12 = vpack.c.bf16 %v888_v9, %v887_v7  ;;  %s10007_s26 = smov %s10006_s24 }
  0x54   : > { %v896_v8 = vpack.c.bf16 %v890_v6, %v889_v5  ;;  %v897_v13 = vpack.c.bf16 %v892_v11, %v891_v10  ;;  %v6542_v14 = vld [vmem:[%s10005_s11] ss:$0 sm:$0xff]  ;;  %v988_v25 = vld [vmem:[%s10007_s26 + $0x8] sm:$0xff] }
  0x55   : > { %6843 = vmatprep.mubr.msk.bf16.mxu0 %vm905_vm1, %v894_v4  ;;  %v987_v16 = vld [vmem:[%s10006_s24] sm:$0xff] }
  0x56   : > { %6847 = vmatprep.mubr.msk.bf16.mxu1 %vm905_vm1, %v896_v8  ;;  %6844 = vmatmul.mubr.msk.bf16.vlgmr.msra.gmra.mrb[0].mxu0 %vm905_vm1, %v895_v12 }
  0x57   : > { %6848 = vmatmul.mubr.msk.bf16.vlgmr.msra.gmra.mrb[0].mxu1 %vm905_vm1, %v897_v13 }
 0x129   : > { %v6845_v15 = vpop.f32.mrb[0].mxu0 }
 0x12a   : > { %v6849_v17 = vpop.f32.mrb[0].mxu1  ;;  %v965_v18 = vadd.f32 %v6845_v15, %v6542_v14  ;;  %v956_v20 = vpop.f32.mrb[1].mxu0 }
 0x12b   : > { %v981_v19 = vadd.f32 %v6849_v17, %v6542_v14  ;;  %v972_v21 = vpop.f32.mrb[1].mxu1  ;;  %v957_v22 = vadd.f32 %v6542_v14, %v956_v20  ;;  %v6846_v24 = vpop.f32.mrb[2].mxu0 }
 0x12c   : > { %v973_v23 = vadd.f32 %v6542_v14, %v972_v21  ;;  %v6850_v26 = vpop.f32.mrb[2].mxu1  ;;  %v991_v27 = vadd.f32 %v987_v16, %v965_v18  ;;  %v968_v29 = vadd.f32 %v6846_v24, %v6542_v14  ;;  %v959_v31 = vpop.f32.mrb[3].mxu0 }
 0x12d   : > { %v995_v28 = vadd.f32 %v987_v16, %v981_v19  ;;  %v984_v30 = vadd.f32 %v6850_v26, %v6542_v14  ;;  %v975_v32 = vpop.f32.mrb[3].mxu1  ;;  %v989_v33 = vadd.f32 %v987_v16, %v957_v22  ;;  %v960_v35 = vadd.f32 %v6542_v14, %v959_v31 }
 0x12e   : > { %v993_v34 = vadd.f32 %v987_v16, %v973_v23  ;;  %v976_v36 = vadd.f32 %v6542_v14, %v975_v32  ;;  %1000 = vst.msk [vmem:[#allocation2 + $0x10] sm:$0xff] %vm997_vm2, %v991_v27  ;;  %v992_v37 = vadd.f32 %v988_v25, %v968_v29 }
 0x12f   : > { %1004 = vst.msk [vmem:[#allocation2 + $0x30] sm:$0xff] %vm997_vm2, %v995_v28  ;;  %v996_v38 = vadd.f32 %v988_v25, %v984_v30  ;;  %998 = vst.msk [vmem:[#allocation2] sm:$0xff] %vm997_vm2, %v989_v33  ;;  %v990_v39 = vadd.f32 %v988_v25, %v960_v35 }
 0x130   : > { %1002 = vst.msk [vmem:[#allocation2 + $0x20] sm:$0xff] %vm997_vm2, %v993_v34  ;;  %v994_v40 = vadd.f32 %v988_v25, %v976_v36  ;;  %1001 = vst.msk [vmem:[#allocation2 + $0x18] sm:$0xff] %vm997_vm2, %v992_v37 }
 0x131   : > { %1005 = vst.msk [vmem:[#allocation2 + $0x38] sm:$0xff] %vm997_vm2, %v996_v38  ;;  %999 = vst.msk [vmem:[#allocation2 + $0x8] sm:$0xff] %vm997_vm2, %v990_v39 }
 0x132   : > { %1003 = vst.msk [vmem:[#allocation2 + $0x28] sm:$0xff] %vm997_vm2, %v994_v40 }
 0x133 PF: > { %vm1051_vm3 = vcmask 261120   ;;  %v7563_v33 = vld [vmem:[%s8247_s29] sm:$0xff]   ;;  %v7564_v34 = vld [vmem:[%s8247_s29 + $0x8] sm:$0xff]   ;;  %s10008_s29 = sld [smem:[#allocation23_spill]]  ;;  %vm8018_vm4 = vmmov 0   ;;  %s10011_s3 = scalar_lea.vmem %s9907_s6, %s8235_s18  ;;  %vm1458_vm5 = vcmask 31744  }
 0x134   : > { %7313 = vmatprep.subr.bf16.mxu1 %v7563_v33  ;;  %6851 = vmatprep.subr.bf16.mxu0 %v7563_v33  ;;  %v8391_v35 = vld [vmem:[%s8256_s25] sm:$0xff]   ;;  %s10012_s20 = scalar_lea.vmem %s9909_s8, %s8235_s18  ;;  %s10013_s11 = scalar_lea.vmem %s9911_s10, %s8235_s18  ;;  %vm1647_vm6 = vcmask 130048   ;;  %vm5548_vm7 = vcmask 64512   ;;  %vm5557_vm8 = vcmask 97280   ;;  %vm5574_vm9 = vcmask 162816  }
 0x135   : > { %v1044_v53 = vld [vmem:[#allocation2 + $0x10] sm:$0xff]  ;;  %7315 = vmatpush3.bf16.msra.mxu1 %v7563_v33  ;;  %6852 = vmatpush3.bf16.msra.mxu0 %v7563_v33  ;;  %v8395_v36 = vld [vmem:[%s8265_s19] sm:$0xff]   ;;  %s8019_s12 = smov 124   ;;  %s8020_s23 = smov 120   ;;  %vm5583_vm10 = vcmask 195584   ;;  %vm5592_vm11 = vcmask 228352  }
 0x136   : > { %v1048_v42 = vld [vmem:[#allocation2 + $0x30] sm:$0xff]  ;;  %v1042_v47 = vld [vmem:[#allocation2] sm:$0xff]  ;;  %v1058_v55 = vsel %vm1051_vm3, %v1044_v53, 0.0  ;;  %7314 = vmatprep.subr.bf16.mxu1 %v7564_v34  ;;  %6853 = vmatprep.subr.bf16.mxu0 %v7564_v34  ;;  %s8021_s24 = smov 116   ;;  %s8022_s22 = smov 112   ;;  %vm6011_vm12 = vcmask 523264  }
 0x137   : > { %v1046_v41 = vld [vmem:[#allocation2 + $0x20] sm:$0xff]  ;;  %v1070_v45 = vsel %vm1051_vm3, %v1048_v42, 0.0  ;;  %v1052_v51 = vsel %vm1051_vm3, %v1042_v47, 0.0  ;;  %v1045_v54 = vld [vmem:[#allocation2 + $0x18] sm:$0xff]  ;;  %s8023_s21 = smov 108   ;;  %s8028_s4 = smov 12  }
 0x138   : > { %v1064_v44 = vsel %vm1051_vm3, %v1046_v41, 0.0  ;;  %v1049_v46 = vld [vmem:[#allocation2 + $0x38] sm:$0xff]  ;;  %v1043_v48 = vld [vmem:[#allocation2 + $0x8] sm:$0xff]  ;;  %1071 = vadd.xlane.f32.xlu1 %v1070_v45  ;;  %v1061_v56 = vsel %vm1051_vm3, %v1045_v54, 0.0  ;;  %s8029_s0 = smov 16   ;;  %s8031_s5 = smov 24  }
 0x139   : > { %v1047_v43 = vld [vmem:[#allocation2 + $0x28] sm:$0xff]  ;;  %1065 = vadd.xlane.f32.xlu0 %v1064_v44  ;;  %v1073_v50 = vsel %vm1051_vm3, %v1049_v46, 0.0  ;;  %v1055_v52 = vsel %vm1051_vm3, %v1043_v48, 0.0  ;;  %7316 = vmatpush3.bf16.msra.mxu1 %v7564_v34  ;;  %s8032_s7 = smov 28  }
 0x13a   : > { %v1067_v49 = vsel %vm1051_vm3, %v1047_v43, 0.0  ;;  %6854 = vmatpush3.bf16.msra.mxu0 %v7564_v34  ;;  %6863 = vmatprep.subr.bf16.mxu1 %v8391_v35 }
 0x13b   : > { %6875 = vmatprep.subr.bf16.mxu0 %v8395_v36 }
 0x13c   : > { %1074 = vadd.xlane.f32.xlu1 %v1073_v50 }
 0x13d   : > { %1068 = vadd.xlane.f32.xlu0 %v1067_v49 }
 0x140   : > { %1056 = vadd.xlane.f32.xlu1 %v1055_v52 }
 0x141   : > { %1053 = vadd.xlane.f32.xlu0 %v1052_v51 }
 0x144   : > { %1062 = vadd.xlane.f32.xlu1 %v1061_v56 }
 0x145   : > { %1059 = vadd.xlane.f32.xlu0 %v1058_v55 }
 0x1c5   : > { %v1072_v58 = vpop.xlane.xlu1 %1071 }
 0x1c6   : > { %v1066_v57 = vpop.xlane.xlu0 %1065  ;;  %v1083_v60 = vmul.f32 0.03125, %v1072_v58 }
 0x1c7   : > { %v1081_v59 = vmul.f32 0.03125, %v1066_v57 }
 0x1c8   : > { %v8350_v62 = vsub.f32 %v1048_v42, %v1083_v60  ;;  %v1157_v42 = vlaneseq }
 0x1c9   : > { %v8348_v61 = vsub.f32 %v1046_v41, %v1081_v59  ;;  %v1075_v0 = vpop.xlane.xlu1 %1074  ;;  %v1006_v59 = vld [vmem:[%s10008_s29] sm:$0x3]  ;;  %s8024_s29 = smov 104  }
 0x1ca   : > { %v1069_v63 = vpop.xlane.xlu0 %1068  ;;  %v1084_v2 = vmul.f32 0.03125, %v1075_v0  ;;  %v1099_v4 = vmul.f32 %v8350_v62, %v8350_v62  ;;  %v1158_v49 = vshrl.u32 %v1157_v42, 7 }
 0x1cb   : > { %v1082_v1 = vmul.f32 0.03125, %v1069_v63  ;;  %v1097_v3 = vmul.f32 %v8348_v61, %v8348_v61 }
 0x1cc   : > { %v8358_v6 = vsub.f32 %v1049_v46, %v1084_v2  ;;  %v1119_v10 = vsel %vm1051_vm3, %v1099_v4, 0.0  ;;  %v8398_v56 = vsub.s32 0, %v1158_v49  ;;  %v8403_v4 = vsub.s32 1, %v1158_v49 }
 0x1cd   : > { %v8356_v5 = vsub.f32 %v1047_v43, %v1082_v1  ;;  %v1113_v7 = vsel %vm1051_vm3, %v1097_v3, 0.0  ;;  %v1057_v9 = vpop.xlane.xlu1 %1056 }
 0x1ce   : > { %1114 = vadd.xlane.f32.xlu0 %v1113_v7  ;;  %v1054_v8 = vpop.xlane.xlu0 %1053  ;;  %v1078_v13 = vmul.f32 0.03125, %v1057_v9  ;;  %v1100_v14 = vmul.f32 %v8358_v6, %v8358_v6  ;;  %10009 = vst [vmem:[#allocation24_spill] sm:$0xff] %v8398_v56  ;;  %v1160_v3 = vrot.slane %v1006_v59, %v8398_v56  ;;  %10010 = vst [vmem:[#allocation25_spill] sm:$0xff] %v8403_v4 }
 0x1cf   : > { %v1077_v11 = vmul.f32 0.03125, %v1054_v8  ;;  %v1098_v12 = vmul.f32 %v8356_v5, %v8356_v5 }
 0x1d0   : > { %v8369_v17 = vsub.f32 %v1043_v48, %v1078_v13  ;;  %v1122_v19 = vsel %vm1051_vm3, %v1100_v14, 0.0  ;;  %v1172_v13 = vrot.slane %v1006_v59, %v8403_v4 }
 0x1d1   : > { %v8366_v15 = vsub.f32 %v1042_v47, %v1077_v11  ;;  %v1116_v16 = vsel %vm1051_vm3, %v1098_v12, 0.0  ;;  %v1063_v20 = vpop.xlane.xlu1 %1062 }
 0x1d2   : > { %1117 = vadd.xlane.f32.xlu1 %v1116_v16  ;;  %1120 = vadd.xlane.f32.xlu0 %v1119_v10  ;;  %v1060_v18 = vpop.xlane.xlu0 %1059  ;;  %v1080_v22 = vmul.f32 0.03125, %v1063_v20  ;;  %v1094_v24 = vmul.f32 %v8369_v17, %v8369_v17 }
 0x1d3   : > { %v1079_v21 = vmul.f32 0.03125, %v1060_v18  ;;  %v1093_v23 = vmul.f32 %v8366_v15, %v8366_v15 }
 0x1d4   : > { %v8378_v26 = vsub.f32 %v1045_v54, %v1080_v22  ;;  %v1104_v28 = vsel %vm1051_vm3, %v1094_v24, 0.0 }
 0x1d5   : > { %v8376_v25 = vsub.f32 %v1044_v53, %v1079_v21  ;;  %v1101_v27 = vsel %vm1051_vm3, %v1093_v23, 0.0 }
 0x1d6   : > { %1123 = vadd.xlane.f32.xlu1 %v1122_v19  ;;  %1102 = vadd.xlane.f32.xlu0 %v1101_v27  ;;  %v1096_v30 = vmul.f32 %v8378_v26, %v8378_v26 }
 0x1d7   : > { %v1095_v29 = vmul.f32 %v8376_v25, %v8376_v25 }
 0x1d8   : > { %v1110_v32 = vsel %vm1051_vm3, %v1096_v30, 0.0 }
 0x1d9   : > { %v1107_v31 = vsel %vm1051_vm3, %v1095_v29, 0.0 }
 0x1da   : > { %1105 = vadd.xlane.f32.xlu1 %v1104_v28  ;;  %1108 = vadd.xlane.f32.xlu0 %v1107_v31 }
 0x1de   : > { %1111 = vadd.xlane.f32.xlu1 %v1110_v32 }
 0x25b   : > { %v1115_v37 = vpop.xlane.xlu0 %1114 }
 0x25c   : > { %v1129_v38 = vmul.f32 0.03125, %v1115_v37  ;;  %v7566_v37 = vld [vmem:[%s8256_s25 + $0x8] sm:$0xff]   ;;  %s8025_s25 = smov 100  }
 0x25e   : > { %v1137_v39 = vadd.f32 1e-06, %v1129_v38 }
 0x25f   : > { %v1118_v40 = vpop.xlane.xlu1 %1117  ;;  %v1121_v41 = vpop.xlane.xlu0 %1120 }
 0x260   : > { %7577 = vrsqrt.f32 %v1137_v39  ;;  %v1130_v43 = vmul.f32 0.03125, %v1118_v40  ;;  %v1131_v44 = vmul.f32 0.03125, %v1121_v41 }
 0x262   : > { %v1138_v45 = vadd.f32 1e-06, %v1130_v43  ;;  %v1139_v46 = vadd.f32 1e-06, %v1131_v44  ;;  %v7568_v44 = vld [vmem:[%s8265_s19 + $0x8] sm:$0xff]   ;;  %s8026_s19 = smov 4  }
 0x263   : > { %v1124_v47 = vpop.xlane.xlu1 %1123  ;;  %v1103_v48 = vpop.xlane.xlu0 %1102 }
 0x264   : > { %7579 = vrsqrt.f32 %v1138_v45  ;;  %v1132_v50 = vmul.f32 0.03125, %v1124_v47  ;;  %v1125_v51 = vmul.f32 0.03125, %v1103_v48 }
 0x265   : > { %7581 = vrsqrt.f32 %v1139_v46 }
 0x266   : > { %v1140_v52 = vadd.f32 1e-06, %v1132_v50  ;;  %v1133_v53 = vadd.f32 1e-06, %v1125_v51 }
 0x267   : > { %v1106_v54 = vpop.xlane.xlu1 %1105  ;;  %v1109_v55 = vpop.xlane.xlu0 %1108 }
 0x268   : > { %7583 = vrsqrt.f32 %v1140_v52  ;;  %v1126_v57 = vmul.f32 0.03125, %v1106_v54  ;;  %v1127_v58 = vmul.f32 0.03125, %v1109_v55 }
 0x269   : > { %7585 = vrsqrt.f32 %v1133_v53 }
 0x26a   : > { %v7578_v60 = vpop.eup %7577  ;;  %v1134_v63 = vadd.f32 1e-06, %v1126_v57  ;;  %v1135_v0 = vadd.f32 1e-06, %v1127_v58  ;;  %v6554_v57 = vld [vmem:[%s10012_s20] ss:$0 sm:$0xff] }
 0x26b   : > { %v1112_v1 = vpop.xlane.xlu1 %1111  ;;  %v1153_v2 = vmul.f32 %v7578_v60, %v8348_v61  ;;  %s8030_s20 = smov 20  }
 0x26c   : > { %7587 = vrsqrt.f32 %v1134_v63  ;;  %v1128_v7 = vmul.f32 0.03125, %v1112_v1 }
 0x26d   : > { %7589 = vrsqrt.f32 %v1135_v0  ;;  %v1165_v12 = vmul.f32 %v1160_v3, %v1153_v2 }
 0x26e   : > { %v7580_v8 = vpop.eup %7579  ;;  %v1136_v9 = vadd.f32 1e-06, %v1128_v7 }
 0x26f   : > { %v7582_v10 = vpop.eup %7581  ;;  %v1154_v11 = vmul.f32 %v7580_v8, %v8356_v5  ;;  %v1177_v19 = vadd.f32 %v1172_v13, %v1165_v12 }
 0x270   : > { %7591 = vrsqrt.f32 %v1136_v9  ;;  %v1155_v14 = vmul.f32 %v7582_v10, %v8350_v62 }
 0x271   : > { %v1166_v16 = vmul.f32 %v1160_v3, %v1154_v11 }
 0x272   : > { %v7584_v61 = vpop.eup %7583  ;;  %v1167_v22 = vmul.f32 %v1160_v3, %v1155_v14 }
 0x273   : > { %v7586_v18 = vpop.eup %7585  ;;  %v1178_v20 = vadd.f32 %v1172_v13, %v1166_v16  ;;  %v1156_v21 = vmul.f32 %v7584_v61, %v8358_v6 }
 0x274   : > { %v1149_v23 = vmul.f32 %v7586_v18, %v8366_v15  ;;  %v1179_v29 = vadd.f32 %v1172_v13, %v1167_v22 }
 0x275   : > { %v1183_v24 = vpack.c.bf16 %v1178_v20, %v1177_v19  ;;  %v1168_v27 = vmul.f32 %v1160_v3, %v1156_v21  ;;  %v6561_v20 = vld [vmem:[%s10013_s11] ss:$0 sm:$0xff] }
 0x276   : > { %v7588_v5 = vpop.eup %7587  ;;  %v1161_v31 = vmul.f32 %v1160_v3, %v1149_v23 }
 0x277   : > { %v7590_v28 = vpop.eup %7589  ;;  %6859 = vmatprep.mubr.msk.bf16.mxu1 %vm1051_vm3, %v1183_v24  ;;  %v1180_v30 = vadd.f32 %v1172_v13, %v1168_v27  ;;  %v1150_v62 = vmul.f32 %v7588_v5, %v8369_v17 }
 0x278   : > { %v1151_v32 = vmul.f32 %v7590_v28, %v8376_v25  ;;  %v1173_v15 = vadd.f32 %v1172_v13, %v1161_v31 }
 0x279   : > { %v1184_v33 = vpack.c.bf16 %v1180_v30, %v1179_v29  ;;  %v1162_v34 = vmul.f32 %v1160_v3, %v1150_v62 }
 0x27a   : > { %v7592_v6 = vpop.eup %7591  ;;  %v1163_v40 = vmul.f32 %v1160_v3, %v1151_v32 }
 0x27b   : > { %6860 = vmatmul.mubr.msk.bf16.vlgmr.msra.gmra.mrb[0].mxu1 %vm1051_vm3, %v1184_v33  ;;  %v1174_v38 = vadd.f32 %v1172_v13, %v1162_v34  ;;  %v1152_v39 = vmul.f32 %v7592_v6, %v8378_v26  ;;  %v9941_v26 = vmov 0.0  }
 0x27c   : > { %6864 = vmatpush3.bf16.msra.mxu1 %v8391_v35  ;;  %v1175_v25 = vadd.f32 %v1172_v13, %v1163_v40  ;;  %v6547_v35 = vld [vmem:[%s10011_s3] ss:$0 sm:$0xff]  ;;  %s8027_s3 = smov 8  }
 0x27d   : > { %v1181_v41 = vpack.c.bf16 %v1174_v38, %v1173_v15  ;;  %6865 = vmatprep.subr.bf16.mxu1 %v7566_v37  ;;  %v1164_v17 = vmul.f32 %v1160_v3, %v1152_v39 }
 0x27f   : > { %6855 = vmatprep.mubr.msk.bf16.mxu0 %vm1051_vm3, %v1181_v41  ;;  %6867 = vmatprep.mubr.msk.bf16.mxu1 %vm1051_vm3, %v1181_v41  ;;  %v1176_v42 = vadd.f32 %v1172_v13, %v1164_v17 }
 0x280   : > { %6866 = vmatpush3.bf16.msra.mxu1 %v7566_v37 }
 0x281   : > { %v1182_v43 = vpack.c.bf16 %v1176_v42, %v1175_v25  ;;  %6887 = vmatprep.subr.bf16.mxu1 %v9941_v26 }
 0x283   : > { %6856 = vmatmul.mubr.msk.bf16.vlgmr.msra.gmra.mrb[0].mxu0 %vm1051_vm3, %v1182_v43  ;;  %6868 = vmatmul.mubr.msk.bf16.vlgmr.msra.gmra.mrb[4].mxu1 %vm1051_vm3, %v1182_v43 }
 0x284   : > { %6871 = vmatprep.mubr.msk.bf16.mxu1 %vm1051_vm3, %v1183_v24  ;;  %6876 = vmatpush3.bf16.msra.mxu0 %v8395_v36 }
 0x285   : > { %6879 = vmatprep.mubr.msk.bf16.mxu0 %vm1051_vm3, %v1181_v41  ;;  %6877 = vmatprep.subr.bf16.mxu0 %v7568_v44 }
 0x288   : > { %6878 = vmatpush3.bf16.msra.mxu0 %v7568_v44 }
 0x289   : > { %6899 = vmatprep.subr.bf16.mxu0 %v9941_v26 }
 0x28b   : > { %6872 = vmatmul.mubr.msk.bf16.gmra.mrb[8].mxu1 %vm1051_vm3, %v1184_v33  ;;  %6880 = vmatmul.mubr.msk.bf16.vlgmr.msra.gmra.mrb[4].mxu0 %vm1051_vm3, %v1182_v43 }
 0x28c   : > { %6883 = vmatprep.mubr.msk.bf16.mxu0 %vm1051_vm3, %v1183_v24  ;;  %6889 = vmatprep.mubr.msk.bf16.mxu1 %vm8018_vm4, %v9941_v26 }
 0x293   : > { %6884 = vmatmul.mubr.msk.bf16.gmra.mrb[8].mxu0 %vm1051_vm3, %v1184_v33 }
 0x294   : > { %6901 = vmatprep.mubr.msk.bf16.mxu0 %vm8018_vm4, %v9941_v26 }
 0x34e   : > { %v6861_v36 = vpop.f32.mrb[0].mxu1 }
 0x34f   : > { %v1265_v45 = vpop.f32.mrb[1].mxu1  ;;  %v1274_v47 = vadd.f32 %v6861_v36, %v6547_v35 }
 0x350   : > { %v6862_v46 = vpop.f32.mrb[2].mxu1  ;;  %v1266_v50 = vadd.f32 %v6547_v35, %v1265_v45 }
 0x351   : > { %v1277_v48 = vadd.f32 %v6862_v46, %v6547_v35  ;;  %v1268_v49 = vpop.f32.mrb[3].mxu1 }
 0x352   : > { %v1269_v51 = vadd.f32 %v6547_v35, %v1268_v49 }
 0x353   : > { %v8440_v52 = vpack.c.bf16 %v1277_v48, %v1274_v47 }
 0x354   : > { %v8442_v53 = vpack.c.bf16 %v1269_v51, %v1266_v50 }
 0x356   : > { %v6857_v54 = vpop.f32.mrb[0].mxu0  ;;  %v6869_v55 = vpop.f32.mrb[4].mxu1 }
 0x357   : > { %v1249_v58 = vpop.f32.mrb[1].mxu0  ;;  %v1336_v59 = vpop.f32.mrb[5].mxu1  ;;  %v1258_v0 = vadd.f32 %v6857_v54, %v6547_v35  ;;  %v1345_v1 = vadd.f32 %v6869_v55, %v6554_v57 }
 0x358   : > { %v6858_v60 = vpop.f32.mrb[2].mxu0  ;;  %v6870_v63 = vpop.f32.mrb[6].mxu1  ;;  %v1250_v9 = vadd.f32 %v6547_v35, %v1249_v58  ;;  %v1337_v10 = vadd.f32 %v6554_v57, %v1336_v59 }
 0x359   : > { %v1261_v2 = vadd.f32 %v6858_v60, %v6547_v35  ;;  %v1348_v3 = vadd.f32 %v6870_v63, %v6554_v57  ;;  %v1252_v7 = vpop.f32.mrb[3].mxu0  ;;  %v1339_v8 = vpop.f32.mrb[7].mxu1 }
 0x35a   : > { %v1253_v11 = vadd.f32 %v6547_v35, %v1252_v7  ;;  %v1340_v12 = vadd.f32 %v6554_v57, %v1339_v8 }
 0x35b   : > { %v8449_v13 = vpack.c.bf16 %v1261_v2, %v1258_v0  ;;  %v8451_v14 = vpack.c.bf16 %v1348_v3, %v1345_v1 }
 0x35c   : > { %v8453_v16 = vpack.c.bf16 %v1253_v11, %v1250_v9  ;;  %v8455_v61 = vpack.c.bf16 %v1340_v12, %v1337_v10 }
 0x35d   : > { %v1510_v41 = vsel %vm1458_vm5, %v8451_v14, 0 }
 0x35e   : > { %v6873_v18 = vpop.f32.mrb[8].mxu1  ;;  %v6881_v19 = vpop.f32.mrb[4].mxu0  ;;  %v1463_v21 = vsel %vm1458_vm5, %v8455_v61, 0 }
 0x35f   : > { %v1352_v22 = vpop.f32.mrb[9].mxu1  ;;  %v1423_v23 = vpop.f32.mrb[5].mxu0  ;;  %6888 = vmatpush3.bf16.xpose.msra.mxu1 %v1463_v21  ;;  %v1361_v5 = vadd.f32 %v6873_v18, %v6554_v57  ;;  %v1432_v28 = vadd.f32 %v6881_v19, %v6561_v20 }
 0x360   : > { %v6874_v24 = vpop.f32.mrb[10].mxu1  ;;  %v6882_v27 = vpop.f32.mrb[6].mxu0  ;;  %6893 = vmatprep.subr.bf16.mxu1 %v9941_v26  ;;  %v1353_v32 = vadd.f32 %v6554_v57, %v1352_v22  ;;  %v1424_v33 = vadd.f32 %v6561_v20, %v1423_v23 }
 0x361   : > { %v1364_v29 = vadd.f32 %v6874_v24, %v6554_v57  ;;  %v1435_v30 = vadd.f32 %v6882_v27, %v6561_v20  ;;  %v1355_v62 = vpop.f32.mrb[11].mxu1  ;;  %v1426_v31 = vpop.f32.mrb[7].mxu0 }
 0x362   : > { %v1356_v34 = vadd.f32 %v6554_v57, %v1355_v62  ;;  %v1427_v37 = vadd.f32 %v6561_v20, %v1426_v31 }
 0x363   : > { %v8465_v6 = vpack.c.bf16 %v1364_v29, %v1361_v5  ;;  %v8467_v15 = vpack.c.bf16 %v1435_v30, %v1432_v28 }
 0x364   : > { %v8469_v38 = vpack.c.bf16 %v1356_v34, %v1353_v32  ;;  %v8471_v39 = vpack.c.bf16 %v1427_v37, %v1424_v33 }
 0x365   : > { %v1604_v48 = vsel %vm1458_vm5, %v8465_v6, 0 }
 0x366   : > { %v6885_v40 = vpop.f32.mrb[8].mxu0  ;;  %6890 = vmatmul.mubr.msk.bf16.vlgmr.msra.gmra.mrb[12].mxu1 %vm1458_vm5, %v8453_v16  ;;  %v1557_v17 = vsel %vm1458_vm5, %v8469_v38, 0 }
 0x367   : > { %v1448_v25 = vadd.f32 %v6885_v40, %v6561_v20  ;;  %v1439_v42 = vpop.f32.mrb[9].mxu0  ;;  %6894 = vmatpush3.bf16.xpose.msra.mxu1 %v1510_v41  ;;  %6900 = vmatpush3.bf16.xpose.msra.mxu0 %v1557_v17 }
 0x368   : > { %v1440_v43 = vadd.f32 %v6561_v20, %v1439_v42  ;;  %v6886_v44 = vpop.f32.mrb[10].mxu0  ;;  %6895 = vmatprep.mubr.msk.bf16.mxu1 %vm8018_vm4, %v9941_v26  ;;  %6905 = vmatprep.subr.bf16.mxu1 %v9941_v26 }
 0x369   : > { %v1451_v35 = vadd.f32 %v6886_v44, %v6561_v20  ;;  %v1442_v36 = vpop.f32.mrb[11].mxu0  ;;  %6911 = vmatprep.subr.bf16.mxu0 %v9941_v26 }
 0x36a   : > { %v1443_v45 = vadd.f32 %v6561_v20, %v1442_v36 }
 0x36b   : > { %v8483_v46 = vpack.c.bf16 %v1451_v35, %v1448_v25 }
 0x36c   : > { %v8485_v47 = vpack.c.bf16 %v1443_v45, %v1440_v43 }
 0x36e   : > { %6896 = vmatmul.mubr.msk.bf16.vlgmr.msra.gmra.mrb[16].mxu1 %vm1458_vm5, %v8449_v13  ;;  %6902 = vmatmul.mubr.msk.bf16.vlgmr.msra.gmra.mrb[12].mxu0 %vm1458_vm5, %v8442_v53 }
 0x36f   : > { %6906 = vmatpush3.bf16.xpose.msra.mxu1 %v1604_v48  ;;  %6912 = vmatpush3.bf16.msra.mxu0 %v8471_v39 }
 0x370   : > { %6907 = vmatprep.mubr.msk.bf16.mxu1 %vm8018_vm4, %v9941_v26  ;;  %6917 = vmatprep.subr.bf16.mxu1 %v9941_v26 }
 0x371   : > { %6913 = vmatprep.mubr.msk.bf16.mxu0 %vm8018_vm4, %v9941_v26  ;;  %6923 = vmatprep.subr.bf16.mxu0 %v9941_v26 }
 0x376   : > { %6908 = vmatmul.mubr.msk.bf16.vlgmr.msra.gmra.mrb[20].mxu1 %vm1458_vm5, %v8440_v52 }
 0x377   : > { %6918 = vmatpush3.bf16.msra.mxu1 %v8467_v15  ;;  %6919 = vmatprep.mubr.msk.bf16.mxu1 %vm8018_vm4, %v9941_v26 }
 0x378   : > { %6929 = vmatprep.subr.bf16.mxu1 %v9941_v26 }
 0x439   : > { %v1499_v49 = vpop.f32.mrb[12].mxu1 }
 0x43a   : > { %v6891_v50 = vpop.f32.mrb[13].mxu1  ;;  %v1648_v51 = vsel %vm1647_vm6, %v1499_v49, -inf }
 0x43b   : > { %1649 = vmax.xlane.f32.xlu0 %v1648_v51  ;;  %v1502_v54 = vpop.f32.mrb[14].mxu1 }
 0x43c   : > { %v6892_v55 = vpop.f32.mrb[15].mxu1  ;;  %v1651_v57 = vsel %vm1647_vm6, %v1502_v54, -inf }
 0x43d   : > { %1652 = vmax.xlane.f32.xlu1 %v1651_v57 }
 0x441   : > { %v1546_v58 = vpop.f32.mrb[16].mxu1  ;;  %v1593_v59 = vpop.f32.mrb[12].mxu0 }
 0x442   : > { %v6897_v60 = vpop.f32.mrb[17].mxu1  ;;  %v6903_v63 = vpop.f32.mrb[13].mxu0  ;;  %v1654_v0 = vsel %vm1647_vm6, %v1546_v58, -inf  ;;  %v1660_v9 = vsel %vm1647_vm6, %v1593_v59, -inf }
 0x443   : > { %v1596_v1 = vpop.f32.mrb[14].mxu0  ;;  %1655 = vmax.xlane.f32.xlu0 %v1654_v0  ;;  %v1549_v2 = vpop.f32.mrb[18].mxu1 }
 0x444   : > { %v6898_v3 = vpop.f32.mrb[19].mxu1  ;;  %v6904_v7 = vpop.f32.mrb[15].mxu0  ;;  %v1657_v8 = vsel %vm1647_vm6, %v1549_v2, -inf  ;;  %v1663_v10 = vsel %vm1647_vm6, %v1596_v1, -inf }
 0x445   : > { %1658 = vmax.xlane.f32.xlu1 %v1657_v8 }
 0x447   : > { %1661 = vmax.xlane.f32.xlu0 %v1660_v9 }
 0x449   : > { %1664 = vmax.xlane.f32.xlu1 %v1663_v10  ;;  %v1640_v11 = vpop.f32.mrb[20].mxu1 }
 0x44a   : > { %v6909_v12 = vpop.f32.mrb[21].mxu1  ;;  %v1666_v18 = vsel %vm1647_vm6, %v1640_v11, -inf }
 0x44b   : > { %1667 = vmax.xlane.f32.xlu0 %v1666_v18  ;;  %v1643_v19 = vpop.f32.mrb[22].mxu1 }
 0x44c   : > { %v6910_v20 = vpop.f32.mrb[23].mxu1  ;;  %v1669_v21 = vsel %vm1647_vm6, %v1643_v19, -inf }
 0x44d   : > { %1670 = vmax.xlane.f32.xlu1 %v1669_v21 }
 0x4c8   : > { %v1650_v22 = vpop.xlane.xlu0 %1649 }
 0x4c9   : > { %v1672_v23 = vsub.f32 %v1499_v49, %v1650_v22 }
 0x4ca   : > { %v1653_v24 = vpop.xlane.xlu1 %1652 }
 0x4cb   : > { %v1680_v27 = vmul.f32 1.442695, %v1672_v23  ;;  %v1673_v5 = vsub.f32 %v1502_v54, %v1653_v24 }
 0x4cd   : > { %7593 = vpow2.f32 %v1680_v27  ;;  %v1682_v28 = vmul.f32 1.442695, %v1673_v5 }
 0x4cf   : > { %7595 = vpow2.f32 %v1682_v28 }
 0x4d0   : > { %v1656_v29 = vpop.xlane.xlu0 %1655 }
 0x4d1   : > { %v1674_v30 = vsub.f32 %v1546_v58, %v1656_v29 }
 0x4d2   : > { %v1659_v62 = vpop.xlane.xlu1 %1658 }
 0x4d3   : > { %v1684_v31 = vmul.f32 1.442695, %v1674_v30  ;;  %v1675_v32 = vsub.f32 %v1549_v2, %v1659_v62 }
 0x4d4   : > { %v1662_v33 = vpop.xlane.xlu0 %1661 }
 0x4d5   : > { %7597 = vpow2.f32 %v1684_v31  ;;  %v1686_v34 = vmul.f32 1.442695, %v1675_v32  ;;  %v1676_v37 = vsub.f32 %v1593_v59, %v1662_v33 }
 0x4d6   : > { %v1665_v40 = vpop.xlane.xlu1 %1664 }
 0x4d7   : > { %v7594_v41 = vpop.eup %7593  ;;  %7599 = vpow2.f32 %v1686_v34  ;;  %v1688_v17 = vmul.f32 1.442695, %v1676_v37  ;;  %v1677_v25 = vsub.f32 %v1596_v1, %v1665_v40 }
 0x4d8   : > { %v1668_v42 = vpop.xlane.xlu0 %1667  ;;  %v1696_v43 = vsel %vm1647_vm6, %v7594_v41, 0.0 }
 0x4d9   : > { %v7596_v44 = vpop.eup %7595  ;;  %7601 = vpow2.f32 %v1688_v17  ;;  %v1690_v35 = vmul.f32 1.442695, %v1677_v25  ;;  %v1678_v36 = vsub.f32 %v1640_v11, %v1668_v42  ;;  %1697 = vadd.xlane.f32.xlu0 %v1696_v43 }
 0x4da   : > { %v1699_v45 = vsel %vm1647_vm6, %v7596_v44, 0.0  ;;  %v1671_v0 = vpop.xlane.xlu1 %1670 }
 0x4db   : > { %7603 = vpow2.f32 %v1690_v35  ;;  %v1692_v48 = vmul.f32 1.442695, %v1678_v36  ;;  %1700 = vadd.xlane.f32.xlu1 %v1699_v45  ;;  %v1679_v1 = vsub.f32 %v1643_v19, %v1671_v0 }
 0x4dd   : > { %7605 = vpow2.f32 %v1692_v48  ;;  %v1694_v2 = vmul.f32 1.442695, %v1679_v1 }
 0x4df   : > { %v7598_v49 = vpop.eup %7597  ;;  %7607 = vpow2.f32 %v1694_v2 }
 0x4e0   : > { %v1702_v50 = vsel %vm1647_vm6, %v7598_v49, 0.0 }
 0x4e1   : > { %v7600_v51 = vpop.eup %7599  ;;  %1703 = vadd.xlane.f32.xlu0 %v1702_v50 }
 0x4e2   : > { %v1705_v54 = vsel %vm1647_vm6, %v7600_v51, 0.0 }
 0x4e3   : > { %v7602_v55 = vpop.eup %7601  ;;  %1706 = vadd.xlane.f32.xlu1 %v1705_v54 }
 0x4e4   : > { %v1708_v57 = vsel %vm1647_vm6, %v7602_v55, 0.0 }
 0x4e5   : > { %v7604_v58 = vpop.eup %7603  ;;  %1709 = vadd.xlane.f32.xlu0 %v1708_v57 }
 0x4e6   : > { %v1711_v59 = vsel %vm1647_vm6, %v7604_v58, 0.0 }
 0x4e7   : > { %v8520_v60 = vpop.eup %7605  ;;  %1712 = vadd.xlane.f32.xlu1 %v1711_v59 }
 0x4e8   : > { %v1714_v63 = vsel %vm1647_vm6, %v8520_v60, 0.0 }
 0x4e9   : > { %1715 = vadd.xlane.f32.xlu0 %v1714_v63  ;;  %v8534_v3 = vpop.eup %7607 }
 0x4ea   : > { %v1717_v7 = vsel %vm1647_vm6, %v8534_v3, 0.0 }
 0x4f8   : > { %1973 = vrot.lane.b32.xlu1 %v8451_v14, %s8019_s12 }
 0x4fc   : > { %1917 = vrot.lane.b32.xlu1 %v8453_v16, %s8019_s12 }
 0x4ff   : > { %1920 = vrot.lane.b32.xlu0 %v8455_v61, %s8019_s12 }
 0x503   : > { %1970 = vrot.lane.b32.xlu0 %v8449_v13, %s8019_s12 }
 0x507   : > { %2023 = vrot.lane.b32.xlu0 %v8442_v53, %s8019_s12 }
 0x520   : > { %1718 = vadd.xlane.f32.xlu1 %v1717_v7 }
 0x531   : > { %2026 = vrot.lane.b32.xlu1 %v8469_v38, %s8019_s12 }
 0x535   : > { %2079 = vrot.lane.b32.xlu1 %v8465_v6, %s8019_s12 }
 0x539   : > { %2076 = vrot.lane.b32.xlu1 %v8440_v52, %s8019_s12 }
 0x566   : > { %v1698_v8 = vpop.xlane.xlu0 %1697 }
 0x567   : > { %7609 = vrcp.f32 %v1698_v8 }
 0x568   : > { %v1701_v9 = vpop.xlane.xlu1 %1700 }
 0x569   : > { %7611 = vrcp.f32 %v1701_v9 }
 0x56e   : > { %v1704_v10 = vpop.xlane.xlu0 %1703 }
 0x56f   : > { %7613 = vrcp.f32 %v1704_v10 }
 0x570   : > { %v1707_v11 = vpop.xlane.xlu1 %1706 }
 0x571   : > { %v7610_v12 = vpop.eup %7609  ;;  %7615 = vrcp.f32 %v1707_v11 }
 0x572   : > { %v1710_v18 = vpop.xlane.xlu0 %1709  ;;  %v1728_v20 = vmul.f32 %v7610_v12, %v7594_v41 }
 0x573   : > { %v7612_v19 = vpop.eup %7611  ;;  %7617 = vrcp.f32 %v1710_v18 }
 0x574   : > { %v1729_v21 = vmul.f32 %v7612_v19, %v7596_v44  ;;  %v1713_v22 = vpop.xlane.xlu1 %1712 }
 0x575   : > { %7619 = vrcp.f32 %v1713_v22 }
 0x576   : > { %v1736_v23 = vpack.c.bf16 %v1729_v21, %v1728_v20  ;;  %v1716_v5 = vpop.xlane.xlu0 %1715 }
 0x577   : > { %7621 = vrcp.f32 %v1716_v5 }
 0x578   : > { %6914 = vmatmul.mubr.msk.bf16.vlgmr.msra.gmra.mrb[16].mxu0 %vm1647_vm6, %v1736_v23  ;;  %v1974_v41 = vpop.permute.xlu1 %1973 }
 0x579   : > { %v7614_v24 = vpop.eup %7613  ;;  %6924 = vmatpush3.bf16.msra.mxu0 %v8485_v47  ;;  %6925 = vmatprep.mubr.msk.bf16.mxu0 %vm8018_vm4, %v9941_v26 }
 0x57a   : > { %6935 = vmatprep.subr.bf16.mxu0 %v9941_v26  ;;  %v1730_v28 = vmul.f32 %v7614_v24, %v7598_v49  ;;  %v1921_v34 = vpop.permute.xlu0 %1920 }
 0x57b   : > { %v7616_v27 = vpop.eup %7615  ;;  %v1926_v40 = vsel %vm1458_vm5, %v1921_v34, 0 }
 0x57c   : > { %v1731_v29 = vmul.f32 %v7616_v27, %v7600_v51  ;;  %v1918_v17 = vpop.permute.xlu1 %1917  ;;  %v1979_v51 = vsel %vm1458_vm5, %v1974_v41, 0 }
 0x57d   : > { %v7618_v30 = vpop.eup %7617 }
 0x57e   : > { %v1737_v62 = vpack.c.bf16 %v1731_v29, %v1730_v28  ;;  %v1732_v32 = vmul.f32 %v7618_v30, %v7602_v55  ;;  %v1971_v44 = vpop.permute.xlu0 %1970 }
 0x57f   : > { %v7620_v31 = vpop.eup %7619 }
 0x580   : > { %v1733_v33 = vmul.f32 %v7620_v31, %v7604_v58  ;;  %6920 = vmatmul.mubr.msk.bf16.vlgmr.msra.gmra.mrb[24].mxu1 %vm1647_vm6, %v1737_v62 }
 0x581   : > { %6930 = vmatpush3.bf16.msra.mxu1 %v8483_v46  ;;  %6931 = vmatprep.mubr.msk.bf16.mxu1 %vm8018_vm4, %v9941_v26  ;;  %v7622_v35 = vpop.eup %7621 }
 0x582   : > { %v1738_v37 = vpack.c.bf16 %v1733_v33, %v1732_v32  ;;  %6941 = vmatprep.subr.bf16.mxu1 %v9941_v26  ;;  %v1734_v45 = vmul.f32 %v7622_v35, %v8520_v60  ;;  %v2024_v48 = vpop.permute.xlu0 %2023 }
 0x584   : > { %6926 = vmatmul.mubr.msk.bf16.vlgmr.msra.gmra.mrb[20].mxu0 %vm1647_vm6, %v1738_v37 }
 0x585   : > { %6936 = vmatpush3.bf16.xpose.msra.mxu0 %v1926_v40  ;;  %6937 = vmatprep.mubr.msk.bf16.mxu0 %vm8018_vm4, %v9941_v26 }
 0x586   : > { %6947 = vmatprep.subr.bf16.mxu0 %v9941_v26 }
 0x58c   : > { %6938 = vmatmul.mubr.msk.bf16.vlgmr.msra.gmra.mrb[24].mxu0 %vm1458_vm5, %v1918_v17 }
 0x58d   : > { %6949 = vmatprep.mubr.msk.bf16.mxu0 %vm8018_vm4, %v9941_v26 }
 0x5ad   : > { %v1719_v25 = vpop.xlane.xlu1 %1718 }
 0x5ae   : > { %7623 = vrcp.f32 %v1719_v25 }
 0x5b1   : > { %v2027_v42 = vpop.permute.xlu1 %2026 }
 0x5b2   : > { %v2032_v43 = vsel %vm1458_vm5, %v2027_v42, 0 }
 0x5b3   : > { %6948 = vmatpush3.bf16.xpose.msra.mxu0 %v2032_v43 }
 0x5b4   : > { %6959 = vmatprep.subr.bf16.mxu0 %v9941_v26 }
 0x5b5   : > { %v2080_v54 = vpop.permute.xlu1 %2079 }
 0x5b6   : > { %v2085_v55 = vsel %vm1458_vm5, %v2080_v54, 0 }
 0x5b8   : > { %v7624_v36 = vpop.eup %7623 }
 0x5b9   : > { %v1735_v49 = vmul.f32 %v7624_v36, %v8534_v3  ;;  %v2077_v57 = vpop.permute.xlu1 %2076 }
 0x5ba   : > { %6950 = vmatmul.mubr.msk.bf16.vlgmr.msra.gmra.mrb[28].mxu0 %vm1458_vm5, %v2024_v48 }
 0x5bb   : > { %v1739_v50 = vpack.c.bf16 %v1735_v49, %v1734_v45  ;;  %6961 = vmatprep.mubr.msk.bf16.mxu0 %vm8018_vm4, %v9941_v26 }
 0x5bd   : > { %6932 = vmatmul.mubr.msk.bf16.vlgmr.msra.gmra.mrb[28].mxu1 %vm1647_vm6, %v1739_v50 }
 0x5be   : > { %6942 = vmatpush3.bf16.xpose.msra.mxu1 %v1979_v51  ;;  %6943 = vmatprep.mubr.msk.bf16.mxu1 %vm8018_vm4, %v9941_v26 }
 0x5bf   : > { %6953 = vmatprep.subr.bf16.mxu1 %v9941_v26 }
 0x5c5   : > { %6944 = vmatmul.mubr.msk.bf16.vlgmr.msra.gmra.mrb[32].mxu1 %vm1458_vm5, %v1971_v44 }
 0x5c6   : > { %6954 = vmatpush3.bf16.xpose.msra.mxu1 %v2085_v55  ;;  %6955 = vmatprep.mubr.msk.bf16.mxu1 %vm8018_vm4, %v9941_v26 }
 0x5c7   : > { %6965 = vmatprep.subr.bf16.mxu1 %v9941_v26 }
 0x5cd   : > { %6956 = vmatmul.mubr.msk.bf16.vlgmr.msra.gmra.mrb[36].mxu1 %vm1458_vm5, %v2077_v57 }
 0x5ce   : > { %6967 = vmatprep.mubr.msk.bf16.mxu1 %vm8018_vm4, %v9941_v26 }
 0x64b   : > { %v8582_v58 = vpop.f32.mrb[16].mxu0 }
 0x64c   : > { %10014 = vst [vmem:[#allocation26_spill] sm:$0xff] %v8582_v58  ;;  %v6915_v59 = vpop.f32.mrb[17].mxu0 }
 0x64d   : > { %v8584_v60 = vpop.f32.mrb[18].mxu0 }
 0x64e   : > { %10015 = vst [vmem:[#allocation27_spill] sm:$0xff] %v8584_v60  ;;  %v6916_v63 = vpop.f32.mrb[19].mxu0 }
 0x653   : > { %v8586_v0 = vpop.f32.mrb[24].mxu1 }
 0x654   : > { %10016 = vst [vmem:[#allocation28_spill] sm:$0xff] %v8586_v0  ;;  %v6921_v1 = vpop.f32.mrb[25].mxu1 }
 0x655   : > { %v8588_v2 = vpop.f32.mrb[26].mxu1 }
 0x656   : > { %10017 = vst [vmem:[#allocation29_spill] sm:$0xff] %v8588_v2  ;;  %v6922_v3 = vpop.f32.mrb[27].mxu1 }
 0x657   : > { %v8590_v7 = vpop.f32.mrb[20].mxu0 }
 0x658   : > { %10018 = vst [vmem:[#allocation30_spill] sm:$0xff] %v8590_v7  ;;  %v6927_v8 = vpop.f32.mrb[21].mxu0 }
 0x659   : > { %v8592_v9 = vpop.f32.mrb[22].mxu0 }
 0x65a   : > { %10019 = vst [vmem:[#allocation31_spill] sm:$0xff] %v8592_v9  ;;  %v6928_v10 = vpop.f32.mrb[23].mxu0 }
 0x65f   : > { %v1962_v11 = vpop.f32.mrb[24].mxu0 }
 0x660   : > { %v6939_v12 = vpop.f32.mrb[25].mxu0  ;;  %v2128_v18 = vsel %vm1647_vm6, %v1962_v11, -inf }
 0x661   : > { %2129 = vmax.xlane.f32.xlu0 %v2128_v18  ;;  %v1965_v19 = vpop.f32.mrb[26].mxu0 }
 0x662   : > { %v6940_v20 = vpop.f32.mrb[27].mxu0  ;;  %v2131_v21 = vsel %vm1647_vm6, %v1965_v19, -inf }
 0x663   : > { %2132 = vmax.xlane.f32.xlu1 %v2131_v21 }
 0x68d   : > { %v8596_v22 = vpop.f32.mrb[28].mxu0 }
 0x68e   : > { %v6951_v23 = vpop.f32.mrb[29].mxu0  ;;  %v2140_v25 = vsel %vm1647_vm6, %v8596_v22, -inf }
 0x68f   : > { %v2071_v24 = vpop.f32.mrb[30].mxu0 }
 0x690   : > { %v8598_v27 = vpop.f32.mrb[28].mxu1  ;;  %v6952_v5 = vpop.f32.mrb[31].mxu0  ;;  %v2143_v28 = vsel %vm1647_vm6, %v2071_v24, -inf }
 0x691   : > { %10020 = vst [vmem:[#allocation32_spill] sm:$0xff] %v8598_v27  ;;  %2144 = vmax.xlane.f32.xlu1 %v2143_v28  ;;  %v6933_v29 = vpop.f32.mrb[29].mxu1 }
 0x692   : > { %v8601_v30 = vpop.f32.mrb[30].mxu1 }
 0x693   : > { %10021 = vst [vmem:[#allocation33_spill] sm:$0xff] %v8601_v30  ;;  %v6934_v62 = vpop.f32.mrb[31].mxu1 }
 0x698   : > { %v2015_v31 = vpop.f32.mrb[32].mxu1 }
 0x699   : > { %v6945_v32 = vpop.f32.mrb[33].mxu1  ;;  %v2134_v33 = vsel %vm1647_vm6, %v2015_v31, -inf }
 0x69a   : > { %2135 = vmax.xlane.f32.xlu0 %v2134_v33  ;;  %v2018_v34 = vpop.f32.mrb[34].mxu1 }
 0x69b   : > { %v6946_v37 = vpop.f32.mrb[35].mxu1  ;;  %v2137_v40 = vsel %vm1647_vm6, %v2018_v34, -inf }
 0x69e   : > { %2138 = vmax.xlane.f32.xlu0 %v2137_v40 }
 0x6a0   : > { %v2121_v41 = vpop.f32.mrb[36].mxu1 }
 0x6a1   : > { %v6957_v17 = vpop.f32.mrb[37].mxu1  ;;  %v2146_v44 = vsel %vm1647_vm6, %v2121_v41, -inf }
 0x6a2   : > { %2269 = vrot.lane.b32.xlu1 %v8467_v15, %s8019_s12  ;;  %2141 = vmax.xlane.f32.xlu0 %v2140_v25  ;;  %v8609_v42 = vpop.f32.mrb[38].mxu1 }
 0x6a3   : > { %v6958_v43 = vpop.f32.mrb[39].mxu1  ;;  %v2149_v35 = vsel %vm1647_vm6, %v8609_v42, -inf }
 0x6a6   : > { %2317 = vrot.lane.b32.xlu1 %v8485_v47, %s8019_s12  ;;  %2147 = vmax.xlane.f32.xlu0 %v2146_v44 }
 0x6bc   : > { %2221 = vrot.lane.b32.xlu0 %v8471_v39, %s8019_s12 }
 0x6ca   : > { %2150 = vmax.xlane.f32.xlu1 %v2149_v35 }
 0x6db   : > { %2365 = vrot.lane.b32.xlu1 %v8483_v46, %s8019_s12  ;;  %s10082_s12 = sld [smem:[#allocation57_spill]] }
 0x6ee   : > { %v2130_v36 = vpop.xlane.xlu0 %2129 }
 0x6ef   : > { %v2152_v45 = vsub.f32 %v1962_v11, %v2130_v36 }
 0x6f0   : > { %v2133_v48 = vpop.xlane.xlu1 %2132 }
 0x6f1   : > { %v2160_v49 = vmul.f32 1.442695, %v2152_v45  ;;  %v2153_v50 = vsub.f32 %v1965_v19, %v2133_v48 }
 0x6f3   : > { %7625 = vpow2.f32 %v2160_v49  ;;  %v2162_v51 = vmul.f32 1.442695, %v2153_v50 }
 0x6f5   : > { %7627 = vpow2.f32 %v2162_v51 }
 0x6fd   : > { %v8620_v54 = vpop.eup %7625 }
 0x6fe   : > { %v2176_v55 = vsel %vm1647_vm6, %v8620_v54, 0.0 }
 0x6ff   : > { %v8624_v57 = vpop.eup %7627  ;;  %2177 = vadd.xlane.f32.xlu0 %v2176_v55 }
 0x700   : > { %v2179_v59 = vsel %vm1647_vm6, %v8624_v57, 0.0 }
 0x701   : > { %2180 = vadd.xlane.f32.xlu1 %v2179_v59 }
 0x71e   : > { %v2145_v63 = vpop.xlane.xlu1 %2144 }
 0x71f   : > { %v2157_v10 = vsub.f32 %v2071_v24, %v2145_v63 }
 0x721   : > { %v2170_v19 = vmul.f32 1.442695, %v2157_v10 }
 0x722   : > { %v2270_v1 = vpop.permute.xlu1 %2269 }
 0x723   : > { %6966 = vmatpush3.bf16.msra.mxu1 %v2270_v1 }
 0x724   : > { %6977 = vmatprep.subr.bf16.mxu1 %v9941_v26 }
 0x726   : > { %v2318_v43 = vpop.permute.xlu1 %2317 }
 0x727   : > { %v2136_v3 = vpop.xlane.xlu0 %2135 }
 0x728   : > { %v2154_v8 = vsub.f32 %v2015_v31, %v2136_v3 }
 0x72a   : > { %v2164_v11 = vmul.f32 1.442695, %v2154_v8 }
 0x72b   : > { %v2139_v12 = vpop.xlane.xlu0 %2138 }
 0x72c   : > { %7629 = vpow2.f32 %v2164_v11  ;;  %v2155_v18 = vsub.f32 %v2018_v34, %v2139_v12 }
 0x72e   : > { %v2166_v20 = vmul.f32 1.442695, %v2155_v18 }
 0x72f   : > { %v2142_v21 = vpop.xlane.xlu0 %2141 }
 0x730   : > { %7631 = vpow2.f32 %v2166_v20  ;;  %v2156_v23 = vsub.f32 %v8596_v22, %v2142_v21 }
 0x731   : > { %7633 = vpow2.f32 %v2170_v19 }
 0x732   : > { %v2168_v5 = vmul.f32 1.442695, %v2156_v23 }
 0x733   : > { %v2148_v28 = vpop.xlane.xlu0 %2147 }
 0x734   : > { %7635 = vpow2.f32 %v2168_v5  ;;  %v2158_v29 = vsub.f32 %v2121_v41, %v2148_v28 }
 0x736   : > { %v7630_v62 = vpop.eup %7629  ;;  %v2172_v32 = vmul.f32 1.442695, %v2158_v29 }
 0x737   : > { %v2222_v33 = vpop.permute.xlu0 %2221  ;;  %v2182_v24 = vsel %vm1647_vm6, %v7630_v62, 0.0 }
 0x738   : > { %7637 = vpow2.f32 %v2172_v32  ;;  %2183 = vadd.xlane.f32.xlu0 %v2182_v24  ;;  %6960 = vmatpush3.bf16.msra.mxu0 %v2222_v33 }
 0x739   : > { %6971 = vmatprep.subr.bf16.mxu0 %v9941_v26 }
 0x73a   : > { %v7632_v31 = vpop.eup %7631 }
 0x73b   : > { %v2185_v34 = vsel %vm1647_vm6, %v7632_v31, 0.0  ;;  %v7634_v37 = vpop.eup %7633 }
 0x73c   : > { %2186 = vadd.xlane.f32.xlu1 %v2185_v34  ;;  %v2191_v41 = vsel %vm1647_vm6, %v7634_v37, 0.0 }
 0x73e   : > { %v7636_v22 = vpop.eup %7635 }
 0x73f   : > { %v2188_v40 = vsel %vm1647_vm6, %v7636_v22, 0.0 }
 0x740   : > { %2189 = vadd.xlane.f32.xlu0 %v2188_v40  ;;  %2192 = vadd.xlane.f32.xlu1 %v2191_v41 }
 0x742   : > { %v8635_v17 = vpop.eup %7637 }
 0x743   : > { %v2194_v25 = vsel %vm1647_vm6, %v8635_v17, 0.0 }
 0x744   : > { %2195 = vadd.xlane.f32.xlu0 %v2194_v25 }
 0x751   : > { %2465 = vrot.lane.b32.xlu1 %v8451_v14, %s8020_s23 }
 0x757   : > { %v2151_v44 = vpop.xlane.xlu1 %2150 }
 0x758   : > { %v2159_v35 = vsub.f32 %v8609_v42, %v2151_v44 }
 0x75a   : > { %2414 = vrot.lane.b32.xlu0 %v8455_v61, %s8020_s23  ;;  %v2174_v36 = vmul.f32 1.442695, %v2159_v35 }
 0x75b   : > { %v2366_v49 = vpop.permute.xlu1 %2365 }
 0x75c   : > { %7639 = vpow2.f32 %v2174_v36 }
 0x75e   : > { %2412 = vrot.lane.b32.xlu0 %v8453_v16, %s8020_s23 }
 0x762   : > { %2463 = vrot.lane.b32.xlu0 %v8449_v13, %s8020_s23 }
 0x766   : > { %2514 = vrot.lane.b32.xlu0 %v8442_v53, %s8020_s23  ;;  %v8650_v45 = vpop.eup %7639 }
 0x767   : > { %v2197_v48 = vsel %vm1647_vm6, %v8650_v45, 0.0 }
 0x775   : > { %2198 = vadd.xlane.f32.xlu1 %v2197_v48 }
 0x786   : > { %2516 = vrot.lane.b32.xlu1 %v8469_v38, %s8020_s23 }
 0x78a   : > { %2567 = vrot.lane.b32.xlu1 %v8465_v6, %s8020_s23 }
 0x78c   : > { %v2178_v42 = vpop.xlane.xlu0 %2177 }
 0x78d   : > { %7641 = vrcp.f32 %v2178_v42 }
 0x78e   : > { %2565 = vrot.lane.b32.xlu1 %v8440_v52, %s8020_s23  ;;  %v2181_v50 = vpop.xlane.xlu1 %2180 }
 0x78f   : > { %7643 = vrcp.f32 %v2181_v50 }
 0x797   : > { %v7642_v51 = vpop.eup %7641 }
 0x798   : > { %v2208_v59 = vmul.f32 %v7642_v51, %v8620_v54 }
 0x799   : > { %v7644_v55 = vpop.eup %7643 }
 0x79a   : > { %v2209_v63 = vmul.f32 %v7644_v55, %v8624_v57 }
 0x79c   : > { %v2216_v1 = vpack.c.bf16 %v2209_v63, %v2208_v59 }
 0x79e   : > { %6962 = vmatmul.mubr.msk.bf16.vlgmr.msra.gmra.mrb[32].mxu0 %vm1647_vm6, %v2216_v1 }
 0x79f   : > { %6972 = vmatpush3.bf16.msra.mxu0 %v2318_v43  ;;  %6973 = vmatprep.mubr.msk.bf16.mxu0 %vm8018_vm4, %v9941_v26 }
 0x7a0   : > { %6983 = vmatprep.subr.bf16.mxu0 %v9941_v26 }
 0x7c5   : > { %v2184_v3 = vpop.xlane.xlu0 %2183 }
 0x7c6   : > { %7645 = vrcp.f32 %v2184_v3 }
 0x7c9   : > { %v2187_v8 = vpop.xlane.xlu1 %2186 }
 0x7ca   : > { %7647 = vrcp.f32 %v2187_v8 }
 0x7cd   : > { %v2190_v10 = vpop.xlane.xlu0 %2189  ;;  %v2193_v11 = vpop.xlane.xlu1 %2192 }
 0x7ce   : > { %7649 = vrcp.f32 %v2190_v10 }
 0x7cf   : > { %7651 = vrcp.f32 %v2193_v11 }
 0x7d0   : > { %v7646_v54 = vpop.eup %7645 }
 0x7d1   : > { %v2210_v57 = vmul.f32 %v7646_v54, %v7630_v62  ;;  %v2196_v19 = vpop.xlane.xlu0 %2195  ;;  %v2466_v24 = vpop.permute.xlu1 %2465 }
 0x7d2   : > { %7653 = vrcp.f32 %v2196_v19  ;;  %v2471_v36 = vsel %vm1458_vm5, %v2466_v24, 0 }
 0x7d4   : > { %v7648_v12 = vpop.eup %7647 }
 0x7d5   : > { %v2211_v18 = vmul.f32 %v7648_v12, %v7632_v31  ;;  %v2415_v29 = vpop.permute.xlu0 %2414 }
 0x7d6   : > { %v2420_v33 = vsel %vm1458_vm5, %v2415_v29, 0 }
 0x7d7   : > { %v2217_v20 = vpack.c.bf16 %v2211_v18, %v2210_v57 }
 0x7d8   : > { %v7650_v21 = vpop.eup %7649 }
 0x7d9   : > { %v7652_v23 = vpop.eup %7651  ;;  %v2212_v5 = vmul.f32 %v7650_v21, %v7636_v22  ;;  %6968 = vmatmul.mubr.msk.bf16.vlgmr.msra.gmra.mrb[40].mxu1 %vm1647_vm6, %v2217_v20  ;;  %v2413_v62 = vpop.permute.xlu0 %2412 }
 0x7da   : > { %v2213_v28 = vmul.f32 %v7652_v23, %v7634_v37  ;;  %6978 = vmatpush3.bf16.msra.mxu1 %v2366_v49  ;;  %6979 = vmatprep.mubr.msk.bf16.mxu1 %vm8018_vm4, %v9941_v26 }
 0x7db   : > { %6989 = vmatprep.subr.bf16.mxu1 %v9941_v26 }
 0x7dc   : > { %v2218_v32 = vpack.c.bf16 %v2213_v28, %v2212_v5  ;;  %v7654_v40 = vpop.eup %7653 }
 0x7dd   : > { %v2464_v22 = vpop.permute.xlu0 %2463  ;;  %v2214_v25 = vmul.f32 %v7654_v40, %v8635_v17 }
 0x7de   : > { %6974 = vmatmul.mubr.msk.bf16.vlgmr.msra.gmra.mrb[36].mxu0 %vm1647_vm6, %v2218_v32 }
 0x7df   : > { %6984 = vmatpush3.bf16.xpose.msra.mxu0 %v2420_v33  ;;  %6985 = vmatprep.mubr.msk.bf16.mxu0 %vm8018_vm4, %v9941_v26 }
 0x7e0   : > { %6995 = vmatprep.subr.bf16.mxu0 %v9941_v26 }
 0x7e1   : > { %v2515_v43 = vpop.permute.xlu0 %2514 }
 0x7e6   : > { %6986 = vmatmul.mubr.msk.bf16.vlgmr.msra.gmra.mrb[40].mxu0 %vm1458_vm5, %v2413_v62 }
 0x7e7   : > { %6997 = vmatprep.mubr.msk.bf16.mxu0 %vm8018_vm4, %v9941_v26 }
 0x802   : > { %v2199_v31 = vpop.xlane.xlu1 %2198 }
 0x803   : > { %7655 = vrcp.f32 %v2199_v31 }
 0x806   : > { %v2517_v34 = vpop.permute.xlu1 %2516 }
 0x807   : > { %v2522_v37 = vsel %vm1458_vm5, %v2517_v34, 0 }
 0x808   : > { %6996 = vmatpush3.bf16.xpose.msra.mxu0 %v2522_v37 }
 0x809   : > { %7007 = vmatprep.subr.bf16.mxu0 %v9941_v26 }
 0x80a   : > { %v2568_v17 = vpop.permute.xlu1 %2567 }
 0x80b   : > { %v2573_v48 = vsel %vm1458_vm5, %v2568_v17, 0 }
 0x80d   : > { %v7656_v41 = vpop.eup %7655 }
 0x80e   : > { %v2215_v44 = vmul.f32 %v7656_v41, %v8650_v45  ;;  %v2566_v45 = vpop.permute.xlu1 %2565 }
 0x80f   : > { %6998 = vmatmul.mubr.msk.bf16.vlgmr.msra.gmra.mrb[44].mxu0 %vm1458_vm5, %v2515_v43 }
 0x810   : > { %v2219_v35 = vpack.c.bf16 %v2215_v44, %v2214_v25  ;;  %7009 = vmatprep.mubr.msk.bf16.mxu0 %vm8018_vm4, %v9941_v26 }
 0x812   : > { %6980 = vmatmul.mubr.msk.bf16.vlgmr.msra.gmra.mrb[44].mxu1 %vm1647_vm6, %v2219_v35 }
 0x813   : > { %6990 = vmatpush3.bf16.xpose.msra.mxu1 %v2471_v36  ;;  %6991 = vmatprep.mubr.msk.bf16.mxu1 %vm8018_vm4, %v9941_v26 }
 0x814   : > { %7001 = vmatprep.subr.bf16.mxu1 %v9941_v26 }
 0x81a   : > { %6992 = vmatmul.mubr.msk.bf16.vlgmr.msra.gmra.mrb[48].mxu1 %vm1458_vm5, %v2464_v22 }
 0x81b   : > { %7002 = vmatpush3.bf16.xpose.msra.mxu1 %v2573_v48  ;;  %7003 = vmatprep.mubr.msk.bf16.mxu1 %vm8018_vm4, %v9941_v26 }
 0x81c   : > { %7013 = vmatprep.subr.bf16.mxu1 %v9941_v26 }
 0x822   : > { %7004 = vmatmul.mubr.msk.bf16.vlgmr.msra.gmra.mrb[52].mxu1 %vm1458_vm5, %v2566_v45 }
 0x823   : > { %7015 = vmatprep.mubr.msk.bf16.mxu1 %vm8018_vm4, %v9941_v26 }
 0x871   : > { %v8698_v49 = vpop.f32.mrb[32].mxu0 }
 0x872   : > { %v6963_v42 = vpop.f32.mrb[33].mxu0 }
 0x873   : > { %v8700_v50 = vpop.f32.mrb[34].mxu0 }
 0x874   : > { %v6964_v55 = vpop.f32.mrb[35].mxu0 }
 0x8ac   : > { %v8704_v59 = vpop.f32.mrb[40].mxu1 }
 0x8ad   : > { %v6969_v63 = vpop.f32.mrb[41].mxu1 }
 0x8ae   : > { %v8706_v1 = vpop.f32.mrb[42].mxu1 }
 0x8af   : > { %v6970_v8 = vpop.f32.mrb[43].mxu1 }
 0x8b1   : > { %v8710_v10 = vpop.f32.mrb[36].mxu0 }
 0x8b2   : > { %v6975_v11 = vpop.f32.mrb[37].mxu0 }
 0x8b3   : > { %v8712_v54 = vpop.f32.mrb[38].mxu0 }
 0x8b4   : > { %v6976_v57 = vpop.f32.mrb[39].mxu0 }
 0x8b9   : > { %v2456_v18 = vpop.f32.mrb[40].mxu0 }
 0x8ba   : > { %v6987_v19 = vpop.f32.mrb[41].mxu0  ;;  %v2616_v20 = vsel %vm1647_vm6, %v2456_v18, -inf }
 0x8bb   : > { %2617 = vmax.xlane.f32.xlu0 %v2616_v20  ;;  %v2459_v21 = vpop.f32.mrb[42].mxu0 }
 0x8bc   : > { %v6988_v23 = vpop.f32.mrb[43].mxu0  ;;  %v2619_v5 = vsel %vm1647_vm6, %v2459_v21, -inf }
 0x8bd   : > { %2620 = vmax.xlane.f32.xlu1 %v2619_v5 }
 0x8e2   : > { %v8718_v28 = vpop.f32.mrb[44].mxu0 }
 0x8e3   : > { %v6999_v29 = vpop.f32.mrb[45].mxu0  ;;  %v2628_v48 = vsel %vm1647_vm6, %v8718_v28, -inf }
 0x8e4   : > { %v2561_v32 = vpop.f32.mrb[46].mxu0 }
 0x8e5   : > { %v8720_v33 = vpop.f32.mrb[44].mxu1  ;;  %v7000_v62 = vpop.f32.mrb[47].mxu0  ;;  %v2631_v24 = vsel %vm1647_vm6, %v2561_v32, -inf }
 0x8e6   : > { %10022 = vst [vmem:[#allocation34_spill] sm:$0xff] %v8720_v33  ;;  %2632 = vmax.xlane.f32.xlu1 %v2631_v24  ;;  %v6981_v31 = vpop.f32.mrb[45].mxu1 }
 0x8e7   : > { %v8723_v34 = vpop.f32.mrb[46].mxu1 }
 0x8e8   : > { %10023 = vst [vmem:[#allocation35_spill] sm:$0xff] %v8723_v34  ;;  %v6982_v22 = vpop.f32.mrb[47].mxu1 }
 0x8ed   : > { %v2507_v40 = vpop.f32.mrb[48].mxu1 }
 0x8ee   : > { %v6993_v41 = vpop.f32.mrb[49].mxu1  ;;  %v2622_v25 = vsel %vm1647_vm6, %v2507_v40, -inf }
 0x8ef   : > { %2623 = vmax.xlane.f32.xlu0 %v2622_v25  ;;  %v2510_v43 = vpop.f32.mrb[50].mxu1 }
 0x8f0   : > { %v6994_v44 = vpop.f32.mrb[51].mxu1  ;;  %v2625_v35 = vsel %vm1647_vm6, %v2510_v43, -inf }
 0x8f3   : > { %2626 = vmax.xlane.f32.xlu0 %v2625_v35 }
 0x8f5   : > { %v2609_v36 = vpop.f32.mrb[52].mxu1 }
 0x8f6   : > { %v7005_v17 = vpop.f32.mrb[53].mxu1  ;;  %v2634_v55 = vsel %vm1647_vm6, %v2609_v36, -inf }
 0x8f7   : > { %2755 = vrot.lane.b32.xlu1 %v8467_v15, %s8020_s23  ;;  %2629 = vmax.xlane.f32.xlu0 %v2628_v48  ;;  %v8733_v45 = vpop.f32.mrb[54].mxu1 }
 0x8f8   : > { %v7006_v42 = vpop.f32.mrb[55].mxu1  ;;  %v2637_v63 = vsel %vm1647_vm6, %v8733_v45, -inf }
 0x8fb   : > { %2802 = vrot.lane.b32.xlu1 %v8485_v47, %s8020_s23  ;;  %2635 = vmax.xlane.f32.xlu0 %v2634_v55 }
 0x911   : > { %2708 = vrot.lane.b32.xlu0 %v8471_v39, %s8020_s23 }
 0x91f   : > { %2638 = vmax.xlane.f32.xlu1 %v2637_v63 }
 0x930   : > { %2849 = vrot.lane.b32.xlu1 %v8483_v46, %s8020_s23  ;;  %s10083_s23 = scalar_lea.vmem %s10082_s12, %s8235_s18 }
 0x948   : > { %v2618_v8 = vpop.xlane.xlu0 %2617 }
 0x949   : > { %v2640_v11 = vsub.f32 %v2456_v18, %v2618_v8 }
 0x94a   : > { %v2621_v57 = vpop.xlane.xlu1 %2620 }
 0x94b   : > { %v2648_v19 = vmul.f32 1.442695, %v2640_v11  ;;  %v2641_v20 = vsub.f32 %v2459_v21, %v2621_v57 }
 0x94d   : > { %7657 = vpow2.f32 %v2648_v19  ;;  %v2650_v23 = vmul.f32 1.442695, %v2641_v20 }
 0x94f   : > { %7659 = vpow2.f32 %v2650_v23 }
 0x957   : > { %v8744_v5 = vpop.eup %7657 }
 0x958   : > { %v2664_v29 = vsel %vm1647_vm6, %v8744_v5, 0.0 }
 0x959   : > { %v8748_v62 = vpop.eup %7659  ;;  %2665 = vadd.xlane.f32.xlu0 %v2664_v29 }
 0x95a   : > { %v2667_v24 = vsel %vm1647_vm6, %v8748_v62, 0.0 }
 0x95b   : > { %2668 = vadd.xlane.f32.xlu1 %v2667_v24 }
 0x973   : > { %v2633_v31 = vpop.xlane.xlu1 %2632 }
 0x974   : > { %v2645_v41 = vsub.f32 %v2561_v32, %v2633_v31 }
 0x976   : > { %v2658_v17 = vmul.f32 1.442695, %v2645_v41 }
 0x977   : > { %v2756_v18 = vpop.permute.xlu1 %2755 }
 0x978   : > { %7014 = vmatpush3.bf16.msra.mxu1 %v2756_v18 }
 0x979   : > { %7025 = vmatprep.subr.bf16.mxu1 %v9941_v26 }
 0x97b   : > { %v2803_v18 = vpop.permute.xlu1 %2802 }
 0x97c   : > { %v2624_v21 = vpop.xlane.xlu0 %2623 }
 0x97d   : > { %v2642_v22 = vsub.f32 %v2507_v40, %v2624_v21 }
 0x97f   : > { %v2652_v25 = vmul.f32 1.442695, %v2642_v22 }
 0x980   : > { %v2627_v44 = vpop.xlane.xlu0 %2626 }
 0x981   : > { %7661 = vpow2.f32 %v2652_v25  ;;  %v2643_v35 = vsub.f32 %v2510_v43, %v2627_v44 }
 0x983   : > { %v2654_v48 = vmul.f32 1.442695, %v2643_v35 }
 0x984   : > { %v2630_v42 = vpop.xlane.xlu0 %2629 }
 0x985   : > { %7663 = vpow2.f32 %v2654_v48  ;;  %v2644_v55 = vsub.f32 %v8718_v28, %v2630_v42 }
 0x986   : > { %7665 = vpow2.f32 %v2658_v17 }
 0x987   : > { %v2656_v63 = vmul.f32 1.442695, %v2644_v55 }
 0x988   : > { %v2636_v8 = vpop.xlane.xlu0 %2635 }
 0x989   : > { %7667 = vpow2.f32 %v2656_v63  ;;  %v2646_v11 = vsub.f32 %v2609_v36, %v2636_v8 }
 0x98b   : > { %v7662_v57 = vpop.eup %7661  ;;  %v2660_v19 = vmul.f32 1.442695, %v2646_v11 }
 0x98c   : > { %v2709_v20 = vpop.permute.xlu0 %2708  ;;  %v2670_v32 = vsel %vm1647_vm6, %v7662_v57, 0.0 }
 0x98d   : > { %7669 = vpow2.f32 %v2660_v19  ;;  %2671 = vadd.xlane.f32.xlu0 %v2670_v32  ;;  %7008 = vmatpush3.bf16.msra.mxu0 %v2709_v20 }
 0x98e   : > { %7019 = vmatprep.subr.bf16.mxu0 %v9941_v26 }
 0x98f   : > { %v7664_v40 = vpop.eup %7663 }
 0x990   : > { %v2673_v43 = vsel %vm1647_vm6, %v7664_v40, 0.0  ;;  %v7666_v23 = vpop.eup %7665 }
 0x991   : > { %2674 = vadd.xlane.f32.xlu1 %v2673_v43  ;;  %v2679_v36 = vsel %vm1647_vm6, %v7666_v23, 0.0 }
 0x993   : > { %v7668_v28 = vpop.eup %7667 }
 0x994   : > { %v2676_v29 = vsel %vm1647_vm6, %v7668_v28, 0.0 }
 0x995   : > { %2677 = vadd.xlane.f32.xlu0 %v2676_v29  ;;  %2680 = vadd.xlane.f32.xlu1 %v2679_v36 }
 0x997   : > { %v8759_v24 = vpop.eup %7669 }
 0x998   : > { %v2682_v31 = vsel %vm1647_vm6, %v8759_v24, 0.0 }
 0x999   : > { %2683 = vadd.xlane.f32.xlu0 %v2682_v31 }
 0x9a6   : > { %2949 = vrot.lane.b32.xlu1 %v8451_v14, %s8021_s24 }
 0x9ac   : > { %v2639_v21 = vpop.xlane.xlu1 %2638 }
 0x9ad   : > { %v2647_v22 = vsub.f32 %v8733_v45, %v2639_v21 }
 0x9af   : > { %2898 = vrot.lane.b32.xlu0 %v8455_v61, %s8021_s24  ;;  %v2662_v41 = vmul.f32 1.442695, %v2647_v22 }
 0x9b0   : > { %v2850_v45 = vpop.permute.xlu1 %2849 }
 0x9b1   : > { %7671 = vpow2.f32 %v2662_v41 }
 0x9b3   : > { %2896 = vrot.lane.b32.xlu0 %v8453_v16, %s8021_s24 }
 0x9b7   : > { %2947 = vrot.lane.b32.xlu0 %v8449_v13, %s8021_s24 }
 0x9bb   : > { %2998 = vrot.lane.b32.xlu0 %v8442_v53, %s8021_s24  ;;  %v8774_v25 = vpop.eup %7671 }
 0x9bc   : > { %v2685_v44 = vsel %vm1647_vm6, %v8774_v25, 0.0 }
 0x9ca   : > { %2686 = vadd.xlane.f32.xlu1 %v2685_v44 }
 0x9db   : > { %3000 = vrot.lane.b32.xlu1 %v8469_v38, %s8021_s24 }
 0x9df   : > { %3051 = vrot.lane.b32.xlu1 %v8465_v6, %s8021_s24 }
 0x9e3   : > { %3049 = vrot.lane.b32.xlu1 %v8440_v52, %s8021_s24 }
 0x9e6   : > { %v2666_v35 = vpop.xlane.xlu0 %2665 }
 0x9e7   : > { %7673 = vrcp.f32 %v2666_v35 }
 0x9e8   : > { %v2669_v17 = vpop.xlane.xlu1 %2668 }
 0x9e9   : > { %7675 = vrcp.f32 %v2669_v17 }
 0x9f1   : > { %v7674_v48 = vpop.eup %7673 }
 0x9f2   : > { %v2696_v55 = vmul.f32 %v7674_v48, %v8744_v5 }
 0x9f3   : > { %v7676_v42 = vpop.eup %7675 }
 0x9f4   : > { %v2697_v63 = vmul.f32 %v7676_v42, %v8748_v62 }
 0x9f6   : > { %v2704_v8 = vpack.c.bf16 %v2697_v63, %v2696_v55 }
 0x9f8   : > { %7010 = vmatmul.mubr.msk.bf16.vlgmr.msra.gmra.mrb[48].mxu0 %vm1647_vm6, %v2704_v8 }
 0x9f9   : > { %7020 = vmatpush3.bf16.msra.mxu0 %v2803_v18  ;;  %7021 = vmatprep.mubr.msk.bf16.mxu0 %vm8018_vm4, %v9941_v26 }
 0x9fa   : > { %7031 = vmatprep.subr.bf16.mxu0 %v9941_v26 }
 0xa1a   : > { %v2672_v11 = vpop.xlane.xlu0 %2671 }
 0xa1b   : > { %7677 = vrcp.f32 %v2672_v11 }
 0xa1e   : > { %v2675_v19 = vpop.xlane.xlu1 %2674 }
 0xa1f   : > { %7679 = vrcp.f32 %v2675_v19 }
 0xa22   : > { %v2678_v20 = vpop.xlane.xlu0 %2677  ;;  %v2681_v32 = vpop.xlane.xlu1 %2680 }
 0xa23   : > { %7681 = vrcp.f32 %v2678_v20 }
 0xa24   : > { %7683 = vrcp.f32 %v2681_v32 }
 0xa25   : > { %v7678_v5 = vpop.eup %7677 }
 0xa26   : > { %v2698_v62 = vmul.f32 %v7678_v5, %v7662_v57  ;;  %v2684_v36 = vpop.xlane.xlu0 %2683 }
 0xa27   : > { %7685 = vrcp.f32 %v2684_v36 }
 0xa29   : > { %v7680_v43 = vpop.eup %7679 }
 0xa2a   : > { %v2699_v29 = vmul.f32 %v7680_v43, %v7664_v40  ;;  %v2899_v44 = vpop.permute.xlu0 %2898  ;;  %v2950_v40 = vpop.permute.xlu1 %2949 }
 0xa2b   : > { %v2904_v17 = vsel %vm1458_vm5, %v2899_v44, 0  ;;  %v2955_v20 = vsel %vm1458_vm5, %v2950_v40, 0 }
 0xa2c   : > { %v2705_v31 = vpack.c.bf16 %v2699_v29, %v2698_v62 }
 0xa2d   : > { %v7682_v18 = vpop.eup %7681 }
 0xa2e   : > { %v7684_v21 = vpop.eup %7683  ;;  %v2700_v22 = vmul.f32 %v7682_v18, %v7668_v28  ;;  %7016 = vmatmul.mubr.msk.bf16.vlgmr.msra.gmra.mrb[56].mxu1 %vm1647_vm6, %v2705_v31  ;;  %v2897_v57 = vpop.permute.xlu0 %2896 }
 0xa2f   : > { %v2701_v41 = vmul.f32 %v7684_v21, %v7666_v23  ;;  %7026 = vmatpush3.bf16.msra.mxu1 %v2850_v45  ;;  %7027 = vmatprep.mubr.msk.bf16.mxu1 %vm8018_vm4, %v9941_v26 }
 0xa30   : > { %7037 = vmatprep.subr.bf16.mxu1 %v9941_v26 }
 0xa31   : > { %v2706_v35 = vpack.c.bf16 %v2701_v41, %v2700_v22  ;;  %v7686_v42 = vpop.eup %7685 }
 0xa32   : > { %v2948_v48 = vpop.permute.xlu0 %2947  ;;  %v2702_v63 = vmul.f32 %v7686_v42, %v8759_v24 }
 0xa33   : > { %7022 = vmatmul.mubr.msk.bf16.vlgmr.msra.gmra.mrb[52].mxu0 %vm1647_vm6, %v2706_v35 }
 0xa34   : > { %7032 = vmatpush3.bf16.xpose.msra.mxu0 %v2904_v17  ;;  %7033 = vmatprep.mubr.msk.bf16.mxu0 %vm8018_vm4, %v9941_v26 }
 0xa35   : > { %7043 = vmatprep.subr.bf16.mxu0 %v9941_v26 }
 0xa36   : > { %v2999_v8 = vpop.permute.xlu0 %2998 }
 0xa3b   : > { %7034 = vmatmul.mubr.msk.bf16.vlgmr.msra.gmra.mrb[56].mxu0 %vm1458_vm5, %v2897_v57 }
 0xa3c   : > { %7045 = vmatprep.mubr.msk.bf16.mxu0 %vm8018_vm4, %v9941_v26 }
 0xa57   : > { %v2687_v23 = vpop.xlane.xlu1 %2686 }
 0xa58   : > { %7687 = vrcp.f32 %v2687_v23 }
 0xa5b   : > { %v3001_v28 = vpop.permute.xlu1 %3000 }
 0xa5c   : > { %v3006_v45 = vsel %vm1458_vm5, %v3001_v28, 0 }
 0xa5d   : > { %7044 = vmatpush3.bf16.xpose.msra.mxu0 %v3006_v45 }
 0xa5e   : > { %7055 = vmatprep.subr.bf16.mxu0 %v9941_v26 }
 0xa5f   : > { %v3052_v24 = vpop.permute.xlu1 %3051 }
 0xa60   : > { %v3057_v32 = vsel %vm1458_vm5, %v3052_v24, 0 }
 0xa62   : > { %v7688_v55 = vpop.eup %7687 }
 0xa63   : > { %v2703_v11 = vmul.f32 %v7688_v55, %v8774_v25  ;;  %v3050_v25 = vpop.permute.xlu1 %3049 }
 0xa64   : > { %7046 = vmatmul.mubr.msk.bf16.vlgmr.msra.gmra.mrb[60].mxu0 %vm1458_vm5, %v2999_v8 }
 0xa65   : > { %v2707_v19 = vpack.c.bf16 %v2703_v11, %v2702_v63  ;;  %7057 = vmatprep.mubr.msk.bf16.mxu0 %vm8018_vm4, %v9941_v26 }
 0xa67   : > { %7028 = vmatmul.mubr.msk.bf16.vlgmr.msra.gmra.mrb[60].mxu1 %vm1647_vm6, %v2707_v19 }
 0xa68   : > { %7038 = vmatpush3.bf16.xpose.msra.mxu1 %v2955_v20  ;;  %7039 = vmatprep.mubr.msk.bf16.mxu1 %vm8018_vm4, %v9941_v26 }
 0xa69   : > { %7049 = vmatprep.subr.bf16.mxu1 %v9941_v26 }
 0xa6f   : > { %7040 = vmatmul.mubr.msk.bf16.vlgmr.msra.gmra.mrb[64].mxu1 %vm1458_vm5, %v2948_v48 }
 0xa70   : > { %7050 = vmatpush3.bf16.xpose.msra.mxu1 %v3057_v32  ;;  %7051 = vmatprep.mubr.msk.bf16.mxu1 %vm8018_vm4, %v9941_v26 }
 0xa71   : > { %7061 = vmatprep.subr.bf16.mxu1 %v9941_v26 }
 0xa77   : > { %7052 = vmatmul.mubr.msk.bf16.vlgmr.msra.gmra.mrb[68].mxu1 %vm1458_vm5, %v3050_v25 }
 0xa78   : > { %7063 = vmatprep.mubr.msk.bf16.mxu1 %vm8018_vm4, %v9941_v26 }
 0xacb   : > { %v8822_v5 = vpop.f32.mrb[48].mxu0 }
 0xacc   : > { %v7011_v43 = vpop.f32.mrb[49].mxu0 }
 0xacd   : > { %v8824_v62 = vpop.f32.mrb[50].mxu0 }
 0xace   : > { %v7012_v36 = vpop.f32.mrb[51].mxu0 }
 0xb01   : > { %v8828_v31 = vpop.f32.mrb[56].mxu1 }
 0xb02   : > { %v7017_v18 = vpop.f32.mrb[57].mxu1 }
 0xb03   : > { %v8830_v21 = vpop.f32.mrb[58].mxu1 }
 0xb04   : > { %v7018_v41 = vpop.f32.mrb[59].mxu1 }
 0xb06   : > { %v8834_v44 = vpop.f32.mrb[52].mxu0 }
 0xb07   : > { %v7023_v35 = vpop.f32.mrb[53].mxu0 }
 0xb08   : > { %v8836_v17 = vpop.f32.mrb[54].mxu0 }
 0xb09   : > { %v7024_v40 = vpop.f32.mrb[55].mxu0 }
 0xb0e   : > { %v2940_v23 = vpop.f32.mrb[56].mxu0 }
 0xb0f   : > { %v7035_v28 = vpop.f32.mrb[57].mxu0  ;;  %v3100_v45 = vsel %vm1647_vm6, %v2940_v23, -inf }
 0xb10   : > { %3101 = vmax.xlane.f32.xlu0 %v3100_v45  ;;  %v2943_v48 = vpop.f32.mrb[58].mxu0 }
 0xb11   : > { %v7036_v42 = vpop.f32.mrb[59].mxu0  ;;  %v3103_v55 = vsel %vm1647_vm6, %v2943_v48, -inf }
 0xb12   : > { %3104 = vmax.xlane.f32.xlu1 %v3103_v55 }
 0xb37   : > { %v8842_v63 = vpop.f32.mrb[60].mxu0 }
 0xb38   : > { %v7047_v8 = vpop.f32.mrb[61].mxu0 }
 0xb39   : > { %v3045_v11 = vpop.f32.mrb[62].mxu0  ;;  %v3112_v8 = vsel %vm1647_vm6, %v8842_v63, -inf }
 0xb3a   : > { %v8844_v19 = vpop.f32.mrb[60].mxu1  ;;  %v7048_v20 = vpop.f32.mrb[63].mxu0  ;;  %v3115_v24 = vsel %vm1647_vm6, %v3045_v11, -inf }
 0xb3b   : > { %10024 = vst [vmem:[#allocation36_spill] sm:$0xff] %v8844_v19  ;;  %3116 = vmax.xlane.f32.xlu1 %v3115_v24  ;;  %v7029_v32 = vpop.f32.mrb[61].mxu1 }
 0xb3c   : > { %v8847_v25 = vpop.f32.mrb[62].mxu1 }
 0xb3d   : > { %10025 = vst [vmem:[#allocation37_spill] sm:$0xff] %v8847_v25  ;;  %v7030_v36 = vpop.f32.mrb[63].mxu1 }
 0xb42   : > { %v2991_v18 = vpop.f32.mrb[64].mxu1 }
 0xb43   : > { %v7041_v41 = vpop.f32.mrb[65].mxu1  ;;  %v3106_v35 = vsel %vm1647_vm6, %v2991_v18, -inf }
 0xb44   : > { %3107 = vmax.xlane.f32.xlu0 %v3106_v35  ;;  %v2994_v40 = vpop.f32.mrb[66].mxu1 }
 0xb45   : > { %v7042_v28 = vpop.f32.mrb[67].mxu1  ;;  %v3109_v45 = vsel %vm1647_vm6, %v2994_v40, -inf }
 0xb48   : > { %3110 = vmax.xlane.f32.xlu0 %v3109_v45 }
 0xb4a   : > { %v3093_v42 = vpop.f32.mrb[68].mxu1 }
 0xb4b   : > { %v7053_v55 = vpop.f32.mrb[69].mxu1  ;;  %v3118_v32 = vsel %vm1647_vm6, %v3093_v42, -inf }
 0xb4c   : > { %3239 = vrot.lane.b32.xlu1 %v8467_v15, %s8021_s24  ;;  %3113 = vmax.xlane.f32.xlu0 %v3112_v8  ;;  %v8857_v20 = vpop.f32.mrb[70].mxu1 }
 0xb4d   : > { %v7054_v24 = vpop.f32.mrb[71].mxu1  ;;  %v3121_v36 = vsel %vm1647_vm6, %v8857_v20, -inf }
 0xb50   : > { %3286 = vrot.lane.b32.xlu1 %v8485_v47, %s8021_s24  ;;  %3119 = vmax.xlane.f32.xlu0 %v3118_v32 }
 0xb66   : > { %3192 = vrot.lane.b32.xlu0 %v8471_v39, %s8021_s24 }
 0xb74   : > { %3122 = vmax.xlane.f32.xlu1 %v3121_v36 }
 0xb85   : > { %3333 = vrot.lane.b32.xlu1 %v8483_v46, %s8021_s24  ;;  %s10086_s24 = sld [smem:[#allocation59_spill]] }
 0xb9d   : > { %v3102_v41 = vpop.xlane.xlu0 %3101 }
 0xb9e   : > { %v3124_v35 = vsub.f32 %v2940_v23, %v3102_v41 }
 0xb9f   : > { %v3105_v28 = vpop.xlane.xlu1 %3104 }
 0xba0   : > { %v3132_v45 = vmul.f32 1.442695, %v3124_v35  ;;  %v3125_v55 = vsub.f32 %v2943_v48, %v3105_v28 }
 0xba2   : > { %7689 = vpow2.f32 %v3132_v45  ;;  %v3134_v8 = vmul.f32 1.442695, %v3125_v55 }
 0xba4   : > { %7691 = vpow2.f32 %v3134_v8 }
 0xbac   : > { %v8868_v24 = vpop.eup %7689 }
 0xbad   : > { %v3148_v32 = vsel %vm1647_vm6, %v8868_v24, 0.0 }
 0xbae   : > { %v8872_v43 = vpop.eup %7691  ;;  %3149 = vadd.xlane.f32.xlu0 %v3148_v32 }
 0xbaf   : > { %v3151_v36 = vsel %vm1647_vm6, %v8872_v43, 0.0 }
 0xbb0   : > { %3152 = vadd.xlane.f32.xlu1 %v3151_v36 }
 0xbc8   : > { %v3117_v37 = vpop.xlane.xlu1 %3116 }
 0xbc9   : > { %v3129_v35 = vsub.f32 %v3045_v11, %v3117_v37 }
 0xbcb   : > { %v3142_v8 = vmul.f32 1.442695, %v3129_v35 }
 0xbcc   : > { %v3240_v23 = vpop.permute.xlu1 %3239 }
 0xbcd   : > { %7062 = vmatpush3.bf16.msra.mxu1 %v3240_v23 }
 0xbce   : > { %7073 = vmatprep.subr.bf16.mxu1 %v9941_v26 }
 0xbd1   : > { %v3108_v48 = vpop.xlane.xlu0 %3107 }
 0xbd2   : > { %v3126_v41 = vsub.f32 %v2991_v18, %v3108_v48 }
 0xbd4   : > { %v3136_v28 = vmul.f32 1.442695, %v3126_v41 }
 0xbd5   : > { %v3111_v45 = vpop.xlane.xlu0 %3110 }
 0xbd6   : > { %7693 = vpow2.f32 %v3136_v28  ;;  %v3127_v55 = vsub.f32 %v2994_v40, %v3111_v45 }
 0xbd8   : > { %v3138_v22 = vmul.f32 1.442695, %v3127_v55 }
 0xbd9   : > { %v3114_v3 = vpop.xlane.xlu0 %3113 }
 0xbda   : > { %7695 = vpow2.f32 %v3138_v22  ;;  %v3128_v32 = vsub.f32 %v8842_v63, %v3114_v3 }
 0xbdb   : > { %7697 = vpow2.f32 %v3142_v8 }
 0xbdc   : > { %v3140_v36 = vmul.f32 1.442695, %v3128_v32 }
 0xbdd   : > { %v3120_v57 = vpop.xlane.xlu0 %3119 }
 0xbde   : > { %7699 = vpow2.f32 %v3140_v36  ;;  %v3130_v23 = vsub.f32 %v3093_v42, %v3120_v57 }
 0xbe0   : > { %v7694_v12 = vpop.eup %7693  ;;  %v3144_v29 = vmul.f32 1.442695, %v3130_v23 }
 0xbe1   : > { %v3193_v51 = vpop.permute.xlu0 %3192  ;;  %v3154_v37 = vsel %vm1647_vm6, %v7694_v12, 0.0 }
 0xbe2   : > { %7701 = vpow2.f32 %v3144_v29  ;;  %3155 = vadd.xlane.f32.xlu0 %v3154_v37  ;;  %7056 = vmatpush3.bf16.msra.mxu0 %v3193_v51  ;;  %v3287_v51 = vpop.permute.xlu1 %3286 }
 0xbe3   : > { %7067 = vmatprep.subr.bf16.mxu0 %v9941_v26 }
 0xbe4   : > { %v7696_v11 = vpop.eup %7695 }
 0xbe5   : > { %v3157_v22 = vsel %vm1647_vm6, %v7696_v11, 0.0  ;;  %v7698_v18 = vpop.eup %7697 }
 0xbe6   : > { %3158 = vadd.xlane.f32.xlu1 %v3157_v22  ;;  %v3163_v57 = vsel %vm1647_vm6, %v7698_v18, 0.0 }
 0xbe8   : > { %v7700_v3 = vpop.eup %7699 }
 0xbe9   : > { %v3160_v63 = vsel %vm1647_vm6, %v7700_v3, 0.0 }
 0xbea   : > { %3161 = vadd.xlane.f32.xlu0 %v3160_v63  ;;  %3164 = vadd.xlane.f32.xlu1 %v3163_v57 }
 0xbec   : > { %v8883_v40 = vpop.eup %7701 }
 0xbed   : > { %v3166_v29 = vsel %vm1647_vm6, %v8883_v40, 0.0 }
 0xbee   : > { %3167 = vadd.xlane.f32.xlu0 %v3166_v29 }
 0xbfb   : > { %3433 = vrot.lane.b32.xlu1 %v8451_v14, %s8022_s22 }
 0xc01   : > { %v3123_v42 = vpop.xlane.xlu1 %3122 }
 0xc02   : > { %v3131_v48 = vsub.f32 %v8857_v20, %v3123_v42 }
 0xc04   : > { %3382 = vrot.lane.b32.xlu0 %v8455_v61, %s8022_s22  ;;  %v3146_v41 = vmul.f32 1.442695, %v3131_v48 }
 0xc05   : > { %v3334_v20 = vpop.permute.xlu1 %3333 }
 0xc06   : > { %7703 = vpow2.f32 %v3146_v41 }
 0xc08   : > { %3380 = vrot.lane.b32.xlu0 %v8453_v16, %s8022_s22 }
 0xc0c   : > { %3431 = vrot.lane.b32.xlu0 %v8449_v13, %s8022_s22 }
 0xc10   : > { %3482 = vrot.lane.b32.xlu0 %v8442_v53, %s8022_s22  ;;  %v8898_v35 = vpop.eup %7703 }
 0xc11   : > { %v3169_v28 = vsel %vm1647_vm6, %v8898_v35, 0.0 }
 0xc1f   : > { %3170 = vadd.xlane.f32.xlu1 %v3169_v28 }
 0xc30   : > { %3484 = vrot.lane.b32.xlu1 %v8469_v38, %s8022_s22 }
 0xc34   : > { %3535 = vrot.lane.b32.xlu1 %v8465_v6, %s8022_s22 }
 0xc38   : > { %3533 = vrot.lane.b32.xlu1 %v8440_v52, %s8022_s22 }
 0xc3b   : > { %v3150_v45 = vpop.xlane.xlu0 %3149 }
 0xc3c   : > { %7705 = vrcp.f32 %v3150_v45 }
 0xc3d   : > { %v3153_v55 = vpop.xlane.xlu1 %3152 }
 0xc3e   : > { %7707 = vrcp.f32 %v3153_v55 }
 0xc46   : > { %v7706_v8 = vpop.eup %7705 }
 0xc47   : > { %v3180_v36 = vmul.f32 %v7706_v8, %v8868_v24 }
 0xc48   : > { %v7708_v32 = vpop.eup %7707 }
 0xc49   : > { %v3181_v23 = vmul.f32 %v7708_v32, %v8872_v43 }
 0xc4b   : > { %v3188_v37 = vpack.c.bf16 %v3181_v23, %v3180_v36 }
 0xc4d   : > { %7058 = vmatmul.mubr.msk.bf16.vlgmr.msra.gmra.mrb[64].mxu0 %vm1647_vm6, %v3188_v37 }
 0xc4e   : > { %7068 = vmatpush3.bf16.msra.mxu0 %v3287_v51  ;;  %7069 = vmatprep.mubr.msk.bf16.mxu0 %vm8018_vm4, %v9941_v26 }
 0xc4f   : > { %7079 = vmatprep.subr.bf16.mxu0 %v9941_v26 }
 0xc6f   : > { %v3156_v22 = vpop.xlane.xlu0 %3155 }
 0xc70   : > { %7709 = vrcp.f32 %v3156_v22 }
 0xc73   : > { %v3159_v63 = vpop.xlane.xlu1 %3158 }
 0xc74   : > { %7711 = vrcp.f32 %v3159_v63 }
 0xc77   : > { %v3162_v57 = vpop.xlane.xlu0 %3161  ;;  %v3165_v29 = vpop.xlane.xlu1 %3164 }
 0xc78   : > { %7713 = vrcp.f32 %v3162_v57 }
 0xc79   : > { %7715 = vrcp.f32 %v3165_v29 }
 0xc7a   : > { %v7710_v24 = vpop.eup %7709 }
 0xc7b   : > { %v3182_v43 = vmul.f32 %v7710_v24, %v7694_v12  ;;  %v3168_v41 = vpop.xlane.xlu0 %3167 }
 0xc7c   : > { %7717 = vrcp.f32 %v3168_v41 }
 0xc7e   : > { %v7712_v42 = vpop.eup %7711 }
 0xc7f   : > { %v3183_v48 = vmul.f32 %v7712_v42, %v7696_v11  ;;  %v3383_v32 = vpop.permute.xlu0 %3382  ;;  %v3434_v11 = vpop.permute.xlu1 %3433 }
 0xc80   : > { %v3388_v23 = vsel %vm1458_vm5, %v3383_v32, 0 }
 0xc81   : > { %v3189_v28 = vpack.c.bf16 %v3183_v48, %v3182_v43  ;;  %v3439_v43 = vsel %vm1458_vm5, %v3434_v11, 0 }
 0xc82   : > { %v7714_v51 = vpop.eup %7713 }
 0xc83   : > { %v7716_v45 = vpop.eup %7715  ;;  %v3184_v55 = vmul.f32 %v7714_v51, %v7700_v3  ;;  %7064 = vmatmul.mubr.msk.bf16.vlgmr.msra.gmra.mrb[72].mxu1 %vm1647_vm6, %v3189_v28  ;;  %v3381_v12 = vpop.permute.xlu0 %3380 }
 0xc84   : > { %v3185_v8 = vmul.f32 %v7716_v45, %v7698_v18  ;;  %7074 = vmatpush3.bf16.msra.mxu1 %v3334_v20  ;;  %7075 = vmatprep.mubr.msk.bf16.mxu1 %vm8018_vm4, %v9941_v26 }
 0xc85   : > { %7085 = vmatprep.subr.bf16.mxu1 %v9941_v26 }
 0xc86   : > { %v3190_v36 = vpack.c.bf16 %v3185_v8, %v3184_v55  ;;  %v7718_v22 = vpop.eup %7717 }
 0xc87   : > { %v3432_v37 = vpop.permute.xlu0 %3431  ;;  %v3186_v57 = vmul.f32 %v7718_v22, %v8883_v40 }
 0xc88   : > { %7070 = vmatmul.mubr.msk.bf16.vlgmr.msra.gmra.mrb[68].mxu0 %vm1647_vm6, %v3190_v36 }
 0xc89   : > { %7080 = vmatpush3.bf16.xpose.msra.mxu0 %v3388_v23  ;;  %7081 = vmatprep.mubr.msk.bf16.mxu0 %vm8018_vm4, %v9941_v26 }
 0xc8a   : > { %7091 = vmatprep.subr.bf16.mxu0 %v9941_v26 }
 0xc8b   : > { %v3483_v29 = vpop.permute.xlu0 %3482 }
 0xc90   : > { %7082 = vmatmul.mubr.msk.bf16.vlgmr.msra.gmra.mrb[72].mxu0 %vm1458_vm5, %v3381_v12 }
 0xc91   : > { %7093 = vmatprep.mubr.msk.bf16.mxu0 %vm8018_vm4, %v9941_v26 }
 0xcac   : > { %v3171_v18 = vpop.xlane.xlu1 %3170 }
 0xcad   : > { %7719 = vrcp.f32 %v3171_v18 }
 0xcb0   : > { %v3485_v3 = vpop.permute.xlu1 %3484 }
 0xcb1   : > { %v3490_v20 = vsel %vm1458_vm5, %v3485_v3, 0 }
 0xcb2   : > { %7092 = vmatpush3.bf16.xpose.msra.mxu0 %v3490_v20 }
 0xcb3   : > { %7103 = vmatprep.subr.bf16.mxu0 %v9941_v26 }
 0xcb4   : > { %v3536_v40 = vpop.permute.xlu1 %3535 }
 0xcb5   : > { %v3541_v48 = vsel %vm1458_vm5, %v3536_v40, 0 }
 0xcb7   : > { %v7720_v63 = vpop.eup %7719 }
 0xcb8   : > { %v3187_v24 = vmul.f32 %v7720_v63, %v8898_v35  ;;  %v3534_v35 = vpop.permute.xlu1 %3533 }
 0xcb9   : > { %7094 = vmatmul.mubr.msk.bf16.vlgmr.msra.gmra.mrb[76].mxu0 %vm1458_vm5, %v3483_v29 }
 0xcba   : > { %v3191_v42 = vpack.c.bf16 %v3187_v24, %v3186_v57  ;;  %7105 = vmatprep.mubr.msk.bf16.mxu0 %vm8018_vm4, %v9941_v26 }
 0xcbc   : > { %7076 = vmatmul.mubr.msk.bf16.vlgmr.msra.gmra.mrb[76].mxu1 %vm1647_vm6, %v3191_v42 }
 0xcbd   : > { %7086 = vmatpush3.bf16.xpose.msra.mxu1 %v3439_v43  ;;  %7087 = vmatprep.mubr.msk.bf16.mxu1 %vm8018_vm4, %v9941_v26 }
 0xcbe   : > { %7097 = vmatprep.subr.bf16.mxu1 %v9941_v26 }
 0xcc4   : > { %7088 = vmatmul.mubr.msk.bf16.vlgmr.msra.gmra.mrb[80].mxu1 %vm1458_vm5, %v3432_v37 }
 0xcc5   : > { %7098 = vmatpush3.bf16.xpose.msra.mxu1 %v3541_v48  ;;  %7099 = vmatprep.mubr.msk.bf16.mxu1 %vm8018_vm4, %v9941_v26 }
 0xcc6   : > { %7109 = vmatprep.subr.bf16.mxu1 %v9941_v26 }
 0xccc   : > { %7100 = vmatmul.mubr.msk.bf16.vlgmr.msra.gmra.mrb[84].mxu1 %vm1458_vm5, %v3534_v35 }
 0xccd   : > { %7111 = vmatprep.mubr.msk.bf16.mxu1 %vm8018_vm4, %v9941_v26 }
 0xd20   : > { %v8946_v41 = vpop.f32.mrb[64].mxu0 }
 0xd21   : > { %v7059_v28 = vpop.f32.mrb[65].mxu0 }
 0xd22   : > { %v8948_v51 = vpop.f32.mrb[66].mxu0 }
 0xd23   : > { %v7060_v55 = vpop.f32.mrb[67].mxu0 }
 0xd56   : > { %v8952_v8 = vpop.f32.mrb[72].mxu1 }
 0xd57   : > { %v7065_v32 = vpop.f32.mrb[73].mxu1 }
 0xd58   : > { %v8954_v36 = vpop.f32.mrb[74].mxu1 }
 0xd59   : > { %v7066_v12 = vpop.f32.mrb[75].mxu1 }
 0xd5b   : > { %v8958_v11 = vpop.f32.mrb[68].mxu0 }
 0xd5c   : > { %v7071_v18 = vpop.f32.mrb[69].mxu0 }
 0xd5d   : > { %v8960_v3 = vpop.f32.mrb[70].mxu0 }
 0xd5e   : > { %v7072_v37 = vpop.f32.mrb[71].mxu0 }
 0xd63   : > { %v3424_v22 = vpop.f32.mrb[72].mxu0 }
 0xd64   : > { %v7083_v63 = vpop.f32.mrb[73].mxu0  ;;  %v3584_v57 = vsel %vm1647_vm6, %v3424_v22, -inf }
 0xd65   : > { %3585 = vmax.xlane.f32.xlu0 %v3584_v57  ;;  %v3427_v29 = vpop.f32.mrb[74].mxu0 }
 0xd66   : > { %v7084_v24 = vpop.f32.mrb[75].mxu0  ;;  %v3587_v42 = vsel %vm1647_vm6, %v3427_v29, -inf }
 0xd67   : > { %3588 = vmax.xlane.f32.xlu1 %v3587_v42 }
 0xd8c   : > { %v8966_v43 = vpop.f32.mrb[76].mxu0 }
 0xd8d   : > { %v7095_v40 = vpop.f32.mrb[77].mxu0 }
 0xd8e   : > { %v3529_v48 = vpop.f32.mrb[78].mxu0 }
 0xd8f   : > { %v8968_v35 = vpop.f32.mrb[76].mxu1  ;;  %v7096_v28 = vpop.f32.mrb[79].mxu0  ;;  %v3599_v55 = vsel %vm1647_vm6, %v3529_v48, -inf }
 0xd90   : > { %10026 = vst [vmem:[#allocation38_spill] sm:$0xff] %v8968_v35  ;;  %3600 = vmax.xlane.f32.xlu1 %v3599_v55  ;;  %v7077_v32 = vpop.f32.mrb[77].mxu1  ;;  %v3596_v55 = vsel %vm1647_vm6, %v8966_v43, -inf }
 0xd91   : > { %v8971_v12 = vpop.f32.mrb[78].mxu1 }
 0xd92   : > { %10027 = vst [vmem:[#allocation39_spill] sm:$0xff] %v8971_v12  ;;  %v7078_v37 = vpop.f32.mrb[79].mxu1 }
 0xd97   : > { %v3475_v63 = vpop.f32.mrb[80].mxu1 }
 0xd98   : > { %v7089_v57 = vpop.f32.mrb[81].mxu1  ;;  %v3590_v24 = vsel %vm1647_vm6, %v3475_v63, -inf }
 0xd99   : > { %3591 = vmax.xlane.f32.xlu0 %v3590_v24  ;;  %v3478_v42 = vpop.f32.mrb[82].mxu1 }
 0xd9a   : > { %v7090_v40 = vpop.f32.mrb[83].mxu1  ;;  %v3593_v23 = vsel %vm1647_vm6, %v3478_v42, -inf }
 0xd9d   : > { %3594 = vmax.xlane.f32.xlu0 %v3593_v23 }
 0xd9f   : > { %v3577_v28 = vpop.f32.mrb[84].mxu1 }
 0xda0   : > { %v7101_v20 = vpop.f32.mrb[85].mxu1  ;;  %v3602_v57 = vsel %vm1647_vm6, %v3577_v28, -inf }
 0xda1   : > { %3723 = vrot.lane.b32.xlu1 %v8467_v15, %s8022_s22  ;;  %3597 = vmax.xlane.f32.xlu0 %v3596_v55  ;;  %v8981_v32 = vpop.f32.mrb[86].mxu1 }
 0xda2   : > { %v7102_v37 = vpop.f32.mrb[87].mxu1  ;;  %v3605_v23 = vsel %vm1647_vm6, %v8981_v32, -inf }
 0xda5   : > { %3770 = vrot.lane.b32.xlu1 %v8485_v47, %s8022_s22  ;;  %3603 = vmax.xlane.f32.xlu0 %v3602_v57 }
 0xdbb   : > { %3676 = vrot.lane.b32.xlu0 %v8471_v39, %s8022_s22 }
 0xdc9   : > { %3606 = vmax.xlane.f32.xlu1 %v3605_v23 }
 0xdda   : > { %3817 = vrot.lane.b32.xlu1 %v8483_v46, %s8022_s22  ;;  %s10087_s22 = sld [smem:[#allocation9_spill]] }
 0xde0   : > { %p6655_p3 = scmp.ne.s32.totalorder %s10087_s22, 1 }
 0xdf2   : > { %v3586_v20 = vpop.xlane.xlu0 %3585 }
 0xdf3   : > { %v3608_v24 = vsub.f32 %v3424_v22, %v3586_v20  ;;  %v10028_v20 = vmov 0.0  }
 0xdf4   : > { %v3589_v40 = vpop.xlane.xlu1 %3588 }
 0xdf5   : > { %v3616_v55 = vmul.f32 1.442695, %v3608_v24  ;;  %v3609_v37 = vsub.f32 %v3427_v29, %v3589_v40 }
 0xdf7   : > { %7721 = vpow2.f32 %v3616_v55  ;;  %v3618_v18 = vmul.f32 1.442695, %v3609_v37 }
 0xdf9   : > { %7723 = vpow2.f32 %v3618_v18 }
 0xe01   : > { %v8992_v45 = vpop.eup %7721 }
 0xe02   : > { %v3632_v57 = vsel %vm1647_vm6, %v8992_v45, 0.0 }
 0xe03   : > { %v8996_v26 = vpop.eup %7723  ;;  %3633 = vadd.xlane.f32.xlu0 %v3632_v57 }
 0xe04   : > { %v3635_v23 = vsel %vm1647_vm6, %v8996_v26, 0.0 }
 0xe05   : > { %3636 = vadd.xlane.f32.xlu1 %v3635_v23 }
 0xe1d   : > { %v3601_v4 = vpop.xlane.xlu1 %3600 }
 0xe1e   : > { %v3613_v18 = vsub.f32 %v3529_v48, %v3601_v4 }
 0xe20   : > { %v3626_v56 = vmul.f32 1.442695, %v3613_v18 }
 0xe21   : > { %v3724_v22 = vpop.permute.xlu1 %3723 }
 0xe22   : > { %7110 = vmatpush3.bf16.msra.mxu1 %v3724_v22 }
 0xe23   : > { %7121 = vmatprep.subr.bf16.mxu1 %v10028_v20 }
 0xe26   : > { %v3592_v29 = vpop.xlane.xlu0 %3591 }
 0xe27   : > { %v3610_v24 = vsub.f32 %v3475_v63, %v3592_v29 }
 0xe29   : > { %v3620_v40 = vmul.f32 1.442695, %v3610_v24 }
 0xe2a   : > { %v3595_v55 = vpop.xlane.xlu0 %3594 }
 0xe2b   : > { %7725 = vpow2.f32 %v3620_v40  ;;  %v3611_v37 = vsub.f32 %v3478_v42, %v3595_v55 }
 0xe2d   : > { %v3622_v7 = vmul.f32 1.442695, %v3611_v37 }
 0xe2e   : > { %v3598_v9 = vpop.xlane.xlu0 %3597 }
 0xe2f   : > { %7727 = vpow2.f32 %v3622_v7  ;;  %v3612_v57 = vsub.f32 %v8966_v43, %v3598_v9 }
 0xe30   : > { %7729 = vpow2.f32 %v3626_v56 }
 0xe31   : > { %v3624_v23 = vmul.f32 1.442695, %v3612_v57 }
 0xe32   : > { %v3604_v0 = vpop.xlane.xlu0 %3603 }
 0xe33   : > { %7731 = vpow2.f32 %v3624_v23  ;;  %v3614_v22 = vsub.f32 %v3577_v28, %v3604_v0 }
 0xe35   : > { %v7726_v2 = vpop.eup %7725  ;;  %v3628_v58 = vmul.f32 1.442695, %v3614_v22 }
 0xe36   : > { %v3677_v60 = vpop.permute.xlu0 %3676  ;;  %v3638_v4 = vsel %vm1647_vm6, %v7726_v2, 0.0 }
 0xe37   : > { %7733 = vpow2.f32 %v3628_v58  ;;  %3639 = vadd.xlane.f32.xlu0 %v3638_v4  ;;  %7104 = vmatpush3.bf16.msra.mxu0 %v3677_v60  ;;  %v3771_v60 = vpop.permute.xlu1 %3770 }
 0xe38   : > { %7115 = vmatprep.subr.bf16.mxu0 %v10028_v20 }
 0xe39   : > { %v7728_v48 = vpop.eup %7727 }
 0xe3a   : > { %v3641_v7 = vsel %vm1647_vm6, %v7728_v48, 0.0  ;;  %v7730_v63 = vpop.eup %7729 }
 0xe3b   : > { %3642 = vadd.xlane.f32.xlu1 %v3641_v7  ;;  %v3647_v0 = vsel %vm1647_vm6, %v7730_v63, 0.0 }
 0xe3d   : > { %v7732_v56 = vpop.eup %7731 }
 0xe3e   : > { %v3644_v9 = vsel %vm1647_vm6, %v7732_v56, 0.0 }
 0xe3f   : > { %3645 = vadd.xlane.f32.xlu0 %v3644_v9  ;;  %3648 = vadd.xlane.f32.xlu1 %v3647_v0 }
 0xe41   : > { %v9007_v43 = vpop.eup %7733 }
 0xe42   : > { %v3650_v58 = vsel %vm1647_vm6, %v9007_v43, 0.0 }
 0xe43   : > { %3651 = vadd.xlane.f32.xlu0 %v3650_v58 }
 0xe50   : > { %3917 = vrot.lane.b32.xlu1 %v8451_v14, %s8023_s21 }
 0xe56   : > { %v3607_v42 = vpop.xlane.xlu1 %3606 }
 0xe57   : > { %v3615_v28 = vsub.f32 %v8981_v32, %v3607_v42 }
 0xe59   : > { %3866 = vrot.lane.b32.xlu0 %v8455_v61, %s8023_s21  ;;  %v3630_v29 = vmul.f32 1.442695, %v3615_v28 }
 0xe5a   : > { %v3818_v32 = vpop.permute.xlu1 %3817 }
 0xe5b   : > { %7735 = vpow2.f32 %v3630_v29 }
 0xe5d   : > { %3864 = vrot.lane.b32.xlu0 %v8453_v16, %s8023_s21 }
 0xe61   : > { %3915 = vrot.lane.b32.xlu0 %v8449_v13, %s8023_s21 }
 0xe65   : > { %3966 = vrot.lane.b32.xlu0 %v8442_v53, %s8023_s21  ;;  %v9022_v24 = vpop.eup %7735 }
 0xe66   : > { %v3653_v18 = vsel %vm1647_vm6, %v9022_v24, 0.0 }
 0xe74   : > { %3654 = vadd.xlane.f32.xlu1 %v3653_v18 }
 0xe85   : > { %3968 = vrot.lane.b32.xlu1 %v8469_v38, %s8023_s21 }
 0xe89   : > { %4019 = vrot.lane.b32.xlu1 %v8465_v6, %s8023_s21 }
 0xe8d   : > { %4017 = vrot.lane.b32.xlu1 %v8440_v52, %s8023_s21 }
 0xe90   : > { %v3634_v40 = vpop.xlane.xlu0 %3633 }
 0xe91   : > { %7737 = vrcp.f32 %v3634_v40 }
 0xe92   : > { %v3637_v55 = vpop.xlane.xlu1 %3636 }
 0xe93   : > { %7739 = vrcp.f32 %v3637_v55 }
 0xe9b   : > { %v7738_v37 = vpop.eup %7737 }
 0xe9c   : > { %v3664_v23 = vmul.f32 %v7738_v37, %v8992_v45 }
 0xe9d   : > { %v7740_v57 = vpop.eup %7739 }
 0xe9e   : > { %v3665_v22 = vmul.f32 %v7740_v57, %v8996_v26 }
 0xea0   : > { %v3672_v4 = vpack.c.bf16 %v3665_v22, %v3664_v23 }
 0xea2   : > { %7106 = vmatmul.mubr.msk.bf16.vlgmr.msra.gmra.mrb[80].mxu0 %vm1647_vm6, %v3672_v4 }
 0xea3   : > { %7116 = vmatpush3.bf16.msra.mxu0 %v3771_v60  ;;  %7117 = vmatprep.mubr.msk.bf16.mxu0 %vm8018_vm4, %v10028_v20 }
 0xea4   : > { %7127 = vmatprep.subr.bf16.mxu0 %v10028_v20 }
 0xec4   : > { %v3640_v7 = vpop.xlane.xlu0 %3639 }
 0xec5   : > { %7741 = vrcp.f32 %v3640_v7 }
 0xec8   : > { %v3643_v9 = vpop.xlane.xlu1 %3642 }
 0xec9   : > { %7743 = vrcp.f32 %v3643_v9 }
 0xecc   : > { %v3646_v0 = vpop.xlane.xlu0 %3645  ;;  %v3649_v58 = vpop.xlane.xlu1 %3648 }
 0xecd   : > { %7745 = vrcp.f32 %v3646_v0 }
 0xece   : > { %7747 = vrcp.f32 %v3649_v58 }
 0xecf   : > { %v7742_v45 = vpop.eup %7741 }
 0xed0   : > { %v3666_v26 = vmul.f32 %v7742_v45, %v7726_v2  ;;  %v3652_v29 = vpop.xlane.xlu0 %3651 }
 0xed1   : > { %7749 = vrcp.f32 %v3652_v29 }
 0xed3   : > { %v7744_v42 = vpop.eup %7743 }
 0xed4   : > { %v3667_v28 = vmul.f32 %v7744_v42, %v7728_v48  ;;  %v3867_v57 = vpop.permute.xlu0 %3866  ;;  %v3918_v48 = vpop.permute.xlu1 %3917 }
 0xed5   : > { %v3872_v22 = vsel %vm1458_vm5, %v3867_v57, 0 }
 0xed6   : > { %v3673_v18 = vpack.c.bf16 %v3667_v28, %v3666_v26  ;;  %v3923_v26 = vsel %vm1458_vm5, %v3918_v48, 0 }
 0xed7   : > { %v7746_v60 = vpop.eup %7745 }
 0xed8   : > { %v7748_v40 = vpop.eup %7747  ;;  %v3668_v55 = vmul.f32 %v7746_v60, %v7732_v56  ;;  %7112 = vmatmul.mubr.msk.bf16.vlgmr.msra.gmra.mrb[88].mxu1 %vm1647_vm6, %v3673_v18  ;;  %v3865_v2 = vpop.permute.xlu0 %3864 }
 0xed9   : > { %v3669_v37 = vmul.f32 %v7748_v40, %v7730_v63  ;;  %7122 = vmatpush3.bf16.msra.mxu1 %v3818_v32  ;;  %7123 = vmatprep.mubr.msk.bf16.mxu1 %vm8018_vm4, %v10028_v20 }
 0xeda   : > { %7133 = vmatprep.subr.bf16.mxu1 %v10028_v20 }
 0xedb   : > { %v3674_v23 = vpack.c.bf16 %v3669_v37, %v3668_v55  ;;  %v7750_v7 = vpop.eup %7749 }
 0xedc   : > { %v3916_v4 = vpop.permute.xlu0 %3915  ;;  %v3670_v0 = vmul.f32 %v7750_v7, %v9007_v43 }
 0xedd   : > { %7118 = vmatmul.mubr.msk.bf16.vlgmr.msra.gmra.mrb[84].mxu0 %vm1647_vm6, %v3674_v23 }
 0xede   : > { %7128 = vmatpush3.bf16.xpose.msra.mxu0 %v3872_v22  ;;  %7129 = vmatprep.mubr.msk.bf16.mxu0 %vm8018_vm4, %v10028_v20 }
 0xedf   : > { %7139 = vmatprep.subr.bf16.mxu0 %v10028_v20 }
 0xee0   : > { %v3967_v58 = vpop.permute.xlu0 %3966 }
 0xee5   : > { %7130 = vmatmul.mubr.msk.bf16.vlgmr.msra.gmra.mrb[88].mxu0 %vm1458_vm5, %v3865_v2 }
 0xee6   : > { %7141 = vmatprep.mubr.msk.bf16.mxu0 %vm8018_vm4, %v10028_v20 }
 0xf01   : > { %v3655_v63 = vpop.xlane.xlu1 %3654 }
 0xf02   : > { %7751 = vrcp.f32 %v3655_v63 }
 0xf05   : > { %v3969_v56 = vpop.permute.xlu1 %3968 }
 0xf06   : > { %v3974_v32 = vsel %vm1458_vm5, %v3969_v56, 0 }
 0xf07   : > { %7140 = vmatpush3.bf16.xpose.msra.mxu0 %v3974_v32 }
 0xf08   : > { %7151 = vmatprep.subr.bf16.mxu0 %v10028_v20 }
 0xf09   : > { %v4020_v43 = vpop.permute.xlu1 %4019 }
 0xf0a   : > { %v4025_v28 = vsel %vm1458_vm5, %v4020_v43, 0 }
 0xf0c   : > { %v7752_v9 = vpop.eup %7751 }
 0xf0d   : > { %v3671_v45 = vmul.f32 %v7752_v9, %v9022_v24  ;;  %v4018_v24 = vpop.permute.xlu1 %4017 }
 0xf0e   : > { %7142 = vmatmul.mubr.msk.bf16.vlgmr.msra.gmra.mrb[92].mxu0 %vm1458_vm5, %v3967_v58 }
 0xf0f   : > { %v3675_v42 = vpack.c.bf16 %v3671_v45, %v3670_v0  ;;  %7153 = vmatprep.mubr.msk.bf16.mxu0 %vm8018_vm4, %v10028_v20 }
 0xf11   : > { %7124 = vmatmul.mubr.msk.bf16.vlgmr.msra.gmra.mrb[92].mxu1 %vm1647_vm6, %v3675_v42 }
 0xf12   : > { %7134 = vmatpush3.bf16.xpose.msra.mxu1 %v3923_v26  ;;  %7135 = vmatprep.mubr.msk.bf16.mxu1 %vm8018_vm4, %v10028_v20 }
 0xf13   : > { %7145 = vmatprep.subr.bf16.mxu1 %v10028_v20 }
 0xf19   : > { %7136 = vmatmul.mubr.msk.bf16.vlgmr.msra.gmra.mrb[96].mxu1 %vm1458_vm5, %v3916_v4 }
 0xf1a   : > { %7146 = vmatpush3.bf16.xpose.msra.mxu1 %v4025_v28  ;;  %7147 = vmatprep.mubr.msk.bf16.mxu1 %vm8018_vm4, %v10028_v20 }
 0xf1b   : > { %7157 = vmatprep.subr.bf16.mxu1 %v10028_v20 }
 0xf21   : > { %7148 = vmatmul.mubr.msk.bf16.vlgmr.msra.gmra.mrb[100].mxu1 %vm1458_vm5, %v4018_v24 }
 0xf22   : > { %7159 = vmatprep.mubr.msk.bf16.mxu1 %vm8018_vm4, %v10028_v20 }
 0xf75   : > { %v9070_v29 = vpop.f32.mrb[80].mxu0 }
 0xf76   : > { %v7107_v18 = vpop.f32.mrb[81].mxu0 }
 0xf77   : > { %v9072_v60 = vpop.f32.mrb[82].mxu0 }
 0xf78   : > { %v7108_v55 = vpop.f32.mrb[83].mxu0 }
 0xfab   : > { %v9076_v37 = vpop.f32.mrb[88].mxu1 }
 0xfac   : > { %10029 = vst [vmem:[#allocation40_spill] sm:$0xff] %v9076_v37  ;;  %v7113_v57 = vpop.f32.mrb[89].mxu1 }
 0xfad   : > { %v9078_v23 = vpop.f32.mrb[90].mxu1 }
 0xfae   : > { %10030 = vst [vmem:[#allocation41_spill] sm:$0xff] %v9078_v23  ;;  %v7114_v2 = vpop.f32.mrb[91].mxu1 }
 0xfb0   : > { %v9082_v48 = vpop.f32.mrb[84].mxu0 }
 0xfb1   : > { %v7119_v63 = vpop.f32.mrb[85].mxu0 }
 0xfb2   : > { %v9084_v56 = vpop.f32.mrb[86].mxu0 }
 0xfb3   : > { %v7120_v4 = vpop.f32.mrb[87].mxu0 }
 0xfb8   : > { %v3908_v7 = vpop.f32.mrb[88].mxu0 }
 0xfb9   : > { %v7131_v9 = vpop.f32.mrb[89].mxu0  ;;  %v4068_v0 = vsel %vm1647_vm6, %v3908_v7, -inf }
 0xfba   : > { %4069 = vmax.xlane.f32.xlu0 %v4068_v0  ;;  %v3911_v58 = vpop.f32.mrb[90].mxu0 }
 0xfbb   : > { %v7132_v45 = vpop.f32.mrb[91].mxu0  ;;  %v4071_v42 = vsel %vm1647_vm6, %v3911_v58, -inf }
 0xfbc   : > { %4072 = vmax.xlane.f32.xlu1 %v4071_v42 }
 0xfe1   : > { %v9090_v26 = vpop.f32.mrb[92].mxu0 }
 0xfe2   : > { %v7143_v43 = vpop.f32.mrb[93].mxu0 }
 0xfe3   : > { %v4013_v28 = vpop.f32.mrb[94].mxu0 }
 0xfe4   : > { %v9092_v24 = vpop.f32.mrb[92].mxu1  ;;  %v7144_v18 = vpop.f32.mrb[95].mxu0  ;;  %v4083_v55 = vsel %vm1647_vm6, %v4013_v28, -inf }
 0xfe5   : > { %10031 = vst [vmem:[#allocation42_spill] sm:$0xff] %v9092_v24  ;;  %4084 = vmax.xlane.f32.xlu1 %v4083_v55  ;;  %v7125_v57 = vpop.f32.mrb[93].mxu1  ;;  %v4080_v55 = vsel %vm1647_vm6, %v9090_v26, -inf }
 0xfe6   : > { %v9095_v2 = vpop.f32.mrb[94].mxu1 }
 0xfe7   : > { %10032 = vst [vmem:[#allocation43_spill] sm:$0xff] %v9095_v2  ;;  %v7126_v4 = vpop.f32.mrb[95].mxu1 }
 0xfec   : > { %v3959_v9 = vpop.f32.mrb[96].mxu1 }
 0xfed   : > { %v7137_v0 = vpop.f32.mrb[97].mxu1  ;;  %v4074_v45 = vsel %vm1647_vm6, %v3959_v9, -inf }
 0xfee   : > { %4075 = vmax.xlane.f32.xlu0 %v4074_v45  ;;  %v3962_v42 = vpop.f32.mrb[98].mxu1 }
 0xfef   : > { %v7138_v43 = vpop.f32.mrb[99].mxu1  ;;  %v4077_v22 = vsel %vm1647_vm6, %v3962_v42, -inf }
 0xff2   : > { %4078 = vmax.xlane.f32.xlu0 %v4077_v22 }
 0xff4   : > { %v4061_v18 = vpop.f32.mrb[100].mxu1 }
 0xff5   : > { %v7149_v32 = vpop.f32.mrb[101].mxu1  ;;  %v4086_v0 = vsel %vm1647_vm6, %v4061_v18, -inf }
 0xff6   : > { %4207 = vrot.lane.b32.xlu1 %v8467_v15, %s8023_s21  ;;  %4081 = vmax.xlane.f32.xlu0 %v4080_v55  ;;  %v9105_v57 = vpop.f32.mrb[102].mxu1 }
 0xff7   : > { %v7150_v4 = vpop.f32.mrb[103].mxu1  ;;  %v4089_v22 = vsel %vm1647_vm6, %v9105_v57, -inf }
 0xffa   : > { %4254 = vrot.lane.b32.xlu1 %v8485_v47, %s8023_s21  ;;  %4087 = vmax.xlane.f32.xlu0 %v4086_v0 }
0x1010   : > { %4160 = vrot.lane.b32.xlu0 %v8471_v39, %s8023_s21 }
0x101e   : > { %4090 = vmax.xlane.f32.xlu1 %v4089_v22 }
0x102f   : > { %4301 = vrot.lane.b32.xlu1 %v8483_v46, %s8023_s21 }
0x1047   : > { %v4070_v32 = vpop.xlane.xlu0 %4069 }
0x1048   : > { %v4092_v45 = vsub.f32 %v3908_v7, %v4070_v32 }
0x1049   : > { %v4073_v43 = vpop.xlane.xlu1 %4072 }
0x104a   : > { %v4100_v55 = vmul.f32 1.442695, %v4092_v45  ;;  %v4093_v4 = vsub.f32 %v3911_v58, %v4073_v43 }
0x104c   : > { %7753 = vpow2.f32 %v4100_v55  ;;  %v4102_v63 = vmul.f32 1.442695, %v4093_v4 }
0x104e   : > { %7755 = vpow2.f32 %v4102_v63 }
0x1056   : > { %v9116_v40 = vpop.eup %7753 }
0x1057   : > { %v4116_v0 = vsel %vm1647_vm6, %v9116_v40, 0.0 }
0x1058   : > { %v9120_v27 = vpop.eup %7755  ;;  %4117 = vadd.xlane.f32.xlu0 %v4116_v0 }
0x1059   : > { %v4119_v22 = vsel %vm1647_vm6, %v9120_v27, 0.0 }
0x105a   : > { %4120 = vadd.xlane.f32.xlu1 %v4119_v22 }
0x1072   : > { %v4085_v30 = vpop.xlane.xlu1 %4084 }
0x1073   : > { %v4097_v63 = vsub.f32 %v4013_v28, %v4085_v30 }
0x1075   : > { %v4110_v4 = vmul.f32 1.442695, %v4097_v63 }
0x1076   : > { %v4208_v7 = vpop.permute.xlu1 %4207 }
0x1077   : > { %7158 = vmatpush3.bf16.msra.mxu1 %v4208_v7 }
0x1078   : > { %7169 = vmatprep.subr.bf16.mxu1 %v10028_v20 }
0x107b   : > { %v4076_v58 = vpop.xlane.xlu0 %4075 }
0x107c   : > { %v4094_v32 = vsub.f32 %v3959_v9, %v4076_v58 }
0x107e   : > { %v4104_v45 = vmul.f32 1.442695, %v4094_v32 }
0x107f   : > { %v4079_v43 = vpop.xlane.xlu0 %4078 }
0x1080   : > { %7757 = vpow2.f32 %v4104_v45  ;;  %v4095_v55 = vsub.f32 %v3962_v42, %v4079_v43 }
0x1082   : > { %v4106_v24 = vmul.f32 1.442695, %v4095_v55 }
0x1083   : > { %v4082_v2 = vpop.xlane.xlu0 %4081 }
0x1084   : > { %7759 = vpow2.f32 %v4106_v24  ;;  %v4096_v0 = vsub.f32 %v9090_v26, %v4082_v2 }
0x1085   : > { %7761 = vpow2.f32 %v4110_v4 }
0x1086   : > { %v4108_v22 = vmul.f32 1.442695, %v4096_v0 }
0x1087   : > { %v4088_v35 = vpop.xlane.xlu0 %4087 }
0x1088   : > { %7763 = vpow2.f32 %v4108_v22  ;;  %v4098_v7 = vsub.f32 %v4061_v18, %v4088_v35 }
0x108a   : > { %v7758_v12 = vpop.eup %7757  ;;  %v4112_v19 = vmul.f32 1.442695, %v4098_v7 }
0x108b   : > { %v4161_v25 = vpop.permute.xlu0 %4160  ;;  %v4122_v30 = vsel %vm1647_vm6, %v7758_v12, 0.0 }
0x108c   : > { %7765 = vpow2.f32 %v4112_v19  ;;  %4123 = vadd.xlane.f32.xlu0 %v4122_v30  ;;  %7152 = vmatpush3.bf16.msra.mxu0 %v4161_v25  ;;  %v4255_v25 = vpop.permute.xlu1 %4254 }
0x108d   : > { %7163 = vmatprep.subr.bf16.mxu0 %v10028_v20 }
0x108e   : > { %v7760_v28 = vpop.eup %7759 }
0x108f   : > { %v4125_v24 = vsel %vm1647_vm6, %v7760_v28, 0.0  ;;  %v7762_v9 = vpop.eup %7761 }
0x1090   : > { %4126 = vadd.xlane.f32.xlu1 %v4125_v24  ;;  %v4131_v35 = vsel %vm1647_vm6, %v7762_v9, 0.0 }
0x1092   : > { %v7764_v26 = vpop.eup %7763 }
0x1093   : > { %v4128_v2 = vsel %vm1647_vm6, %v7764_v26, 0.0 }
0x1094   : > { %4129 = vadd.xlane.f32.xlu0 %v4128_v2  ;;  %4132 = vadd.xlane.f32.xlu1 %v4131_v35 }
0x1096   : > { %v9131_v42 = vpop.eup %7765 }
0x1097   : > { %v4134_v19 = vsel %vm1647_vm6, %v9131_v42, 0.0 }
0x1098   : > { %4135 = vadd.xlane.f32.xlu0 %v4134_v19 }
0x10a5   : > { %4401 = vrot.lane.b32.xlu1 %v8451_v14, %s8024_s29 }
0x10ab   : > { %v4091_v18 = vpop.xlane.xlu1 %4090 }
0x10ac   : > { %v4099_v58 = vsub.f32 %v9105_v57, %v4091_v18 }
0x10ae   : > { %4350 = vrot.lane.b32.xlu0 %v8455_v61, %s8024_s29  ;;  %v4114_v32 = vmul.f32 1.442695, %v4099_v58 }
0x10af   : > { %v4302_v57 = vpop.permute.xlu1 %4301 }
0x10b0   : > { %7767 = vpow2.f32 %v4114_v32 }
0x10b2   : > { %4348 = vrot.lane.b32.xlu0 %v8453_v16, %s8024_s29 }
0x10b6   : > { %4399 = vrot.lane.b32.xlu0 %v8449_v13, %s8024_s29 }
0x10ba   : > { %4450 = vrot.lane.b32.xlu0 %v8442_v53, %s8024_s29  ;;  %v9146_v63 = vpop.eup %7767 }
0x10bb   : > { %v4137_v45 = vsel %vm1647_vm6, %v9146_v63, 0.0 }
0x10c9   : > { %4138 = vadd.xlane.f32.xlu1 %v4137_v45 }
0x10da   : > { %4452 = vrot.lane.b32.xlu1 %v8469_v38, %s8024_s29 }
0x10de   : > { %4503 = vrot.lane.b32.xlu1 %v8465_v6, %s8024_s29 }
0x10e2   : > { %4501 = vrot.lane.b32.xlu1 %v8440_v52, %s8024_s29 }
0x10e5   : > { %v4118_v43 = vpop.xlane.xlu0 %4117 }
0x10e6   : > { %7769 = vrcp.f32 %v4118_v43 }
0x10e7   : > { %v4121_v55 = vpop.xlane.xlu1 %4120 }
0x10e8   : > { %7771 = vrcp.f32 %v4121_v55 }
0x10f0   : > { %v7770_v4 = vpop.eup %7769 }
0x10f1   : > { %v4148_v22 = vmul.f32 %v7770_v4, %v9116_v40 }
0x10f2   : > { %v7772_v0 = vpop.eup %7771 }
0x10f3   : > { %v4149_v7 = vmul.f32 %v7772_v0, %v9120_v27 }
0x10f5   : > { %v4156_v30 = vpack.c.bf16 %v4149_v7, %v4148_v22 }
0x10f7   : > { %7154 = vmatmul.mubr.msk.bf16.vlgmr.msra.gmra.mrb[96].mxu0 %vm1647_vm6, %v4156_v30 }
0x10f8   : > { %7164 = vmatpush3.bf16.msra.mxu0 %v4255_v25  ;;  %7165 = vmatprep.mubr.msk.bf16.mxu0 %vm8018_vm4, %v10028_v20 }
0x10f9   : > { %7175 = vmatprep.subr.bf16.mxu0 %v10028_v20 }
0x1119   : > { %v4124_v24 = vpop.xlane.xlu0 %4123 }
0x111a   : > { %7773 = vrcp.f32 %v4124_v24 }
0x111d   : > { %v4127_v2 = vpop.xlane.xlu1 %4126 }
0x111e   : > { %7775 = vrcp.f32 %v4127_v2 }
0x1121   : > { %v4130_v35 = vpop.xlane.xlu0 %4129  ;;  %v4133_v19 = vpop.xlane.xlu1 %4132 }
0x1122   : > { %7777 = vrcp.f32 %v4130_v35 }
0x1123   : > { %7779 = vrcp.f32 %v4133_v19 }
0x1124   : > { %v7774_v40 = vpop.eup %7773 }
0x1125   : > { %v4150_v27 = vmul.f32 %v7774_v40, %v7758_v12  ;;  %v4136_v32 = vpop.xlane.xlu0 %4135 }
0x1126   : > { %7781 = vrcp.f32 %v4136_v32 }
0x1128   : > { %v7776_v18 = vpop.eup %7775 }
0x1129   : > { %v4151_v58 = vmul.f32 %v7776_v18, %v7760_v28  ;;  %v4351_v0 = vpop.permute.xlu0 %4350  ;;  %v4402_v28 = vpop.permute.xlu1 %4401 }
0x112a   : > { %v4356_v7 = vsel %vm1458_vm5, %v4351_v0, 0 }
0x112b   : > { %v4157_v45 = vpack.c.bf16 %v4151_v58, %v4150_v27  ;;  %v4407_v27 = vsel %vm1458_vm5, %v4402_v28, 0 }
0x112c   : > { %v7778_v25 = vpop.eup %7777 }
0x112d   : > { %v7780_v43 = vpop.eup %7779  ;;  %v4152_v55 = vmul.f32 %v7778_v25, %v7764_v26  ;;  %7160 = vmatmul.mubr.msk.bf16.vlgmr.msra.gmra.mrb[104].mxu1 %vm1647_vm6, %v4157_v45  ;;  %v4349_v12 = vpop.permute.xlu0 %4348 }
0x112e   : > { %v4153_v4 = vmul.f32 %v7780_v43, %v7762_v9  ;;  %7170 = vmatpush3.bf16.msra.mxu1 %v4302_v57  ;;  %7171 = vmatprep.mubr.msk.bf16.mxu1 %vm8018_vm4, %v10028_v20 }
0x112f   : > { %7181 = vmatprep.subr.bf16.mxu1 %v10028_v20 }
0x1130   : > { %v4158_v22 = vpack.c.bf16 %v4153_v4, %v4152_v55  ;;  %v7782_v24 = vpop.eup %7781 }
0x1131   : > { %v4400_v30 = vpop.permute.xlu0 %4399  ;;  %v4154_v35 = vmul.f32 %v7782_v24, %v9131_v42 }
0x1132   : > { %7166 = vmatmul.mubr.msk.bf16.vlgmr.msra.gmra.mrb[100].mxu0 %vm1647_vm6, %v4158_v22 }
0x1133   : > { %7176 = vmatpush3.bf16.xpose.msra.mxu0 %v4356_v7  ;;  %7177 = vmatprep.mubr.msk.bf16.mxu0 %vm8018_vm4, %v10028_v20 }
0x1134   : > { %7187 = vmatprep.subr.bf16.mxu0 %v10028_v20 }
0x1135   : > { %v4451_v19 = vpop.permute.xlu0 %4450 }
0x113a   : > { %7178 = vmatmul.mubr.msk.bf16.vlgmr.msra.gmra.mrb[104].mxu0 %vm1458_vm5, %v4349_v12 }
0x113b   : > { %7189 = vmatprep.mubr.msk.bf16.mxu0 %vm8018_vm4, %v10028_v20 }
0x1156   : > { %v4139_v9 = vpop.xlane.xlu1 %4138 }
0x1157   : > { %7783 = vrcp.f32 %v4139_v9 }
0x115a   : > { %v4453_v26 = vpop.permute.xlu1 %4452 }
0x115b   : > { %v4458_v57 = vsel %vm1458_vm5, %v4453_v26, 0 }
0x115c   : > { %7188 = vmatpush3.bf16.xpose.msra.mxu0 %v4458_v57 }
0x115d   : > { %7199 = vmatprep.subr.bf16.mxu0 %v10028_v20 }
0x115e   : > { %v4504_v42 = vpop.permute.xlu1 %4503 }
0x115f   : > { %v4509_v58 = vsel %vm1458_vm5, %v4504_v42, 0 }
0x1161   : > { %v7784_v2 = vpop.eup %7783 }
0x1162   : > { %v4155_v40 = vmul.f32 %v7784_v2, %v9146_v63  ;;  %v4502_v63 = vpop.permute.xlu1 %4501 }
0x1163   : > { %7190 = vmatmul.mubr.msk.bf16.vlgmr.msra.gmra.mrb[108].mxu0 %vm1458_vm5, %v4451_v19 }
0x1164   : > { %v4159_v18 = vpack.c.bf16 %v4155_v40, %v4154_v35  ;;  %7201 = vmatprep.mubr.msk.bf16.mxu0 %vm8018_vm4, %v10028_v20 }
0x1166   : > { %7172 = vmatmul.mubr.msk.bf16.vlgmr.msra.gmra.mrb[108].mxu1 %vm1647_vm6, %v4159_v18 }
0x1167   : > { %7182 = vmatpush3.bf16.xpose.msra.mxu1 %v4407_v27  ;;  %7183 = vmatprep.mubr.msk.bf16.mxu1 %vm8018_vm4, %v10028_v20 }
0x1168   : > { %7193 = vmatprep.subr.bf16.mxu1 %v10028_v20 }
0x116e   : > { %7184 = vmatmul.mubr.msk.bf16.vlgmr.msra.gmra.mrb[112].mxu1 %vm1458_vm5, %v4400_v30 }
0x116f   : > { %7194 = vmatpush3.bf16.xpose.msra.mxu1 %v4509_v58  ;;  %7195 = vmatprep.mubr.msk.bf16.mxu1 %vm8018_vm4, %v10028_v20 }
0x1170   : > { %7205 = vmatprep.subr.bf16.mxu1 %v10028_v20 }
0x1176   : > { %7196 = vmatmul.mubr.msk.bf16.vlgmr.msra.gmra.mrb[116].mxu1 %vm1458_vm5, %v4502_v63 }
0x1177   : > { %7207 = vmatprep.mubr.msk.bf16.mxu1 %vm8018_vm4, %v10028_v20 }
0x11ca   : > { %v9194_v32 = vpop.f32.mrb[96].mxu0 }
0x11cb   : > { %v7155_v45 = vpop.f32.mrb[97].mxu0 }
0x11cc   : > { %v9196_v25 = vpop.f32.mrb[98].mxu0 }
0x11cd   : > { %v7156_v55 = vpop.f32.mrb[99].mxu0 }
0x1200   : > { %v9200_v4 = vpop.f32.mrb[104].mxu1 }
0x1201   : > { %10033 = vst [vmem:[#allocation44_spill] sm:$0xff] %v9200_v4  ;;  %v7161_v0 = vpop.f32.mrb[105].mxu1 }
0x1202   : > { %v9202_v22 = vpop.f32.mrb[106].mxu1 }
0x1203   : > { %10034 = vst [vmem:[#allocation45_spill] sm:$0xff] %v9202_v22  ;;  %v7162_v12 = vpop.f32.mrb[107].mxu1 }
0x1205   : > { %v9206_v28 = vpop.f32.mrb[100].mxu0 }
0x1206   : > { %v7167_v9 = vpop.f32.mrb[101].mxu0 }
0x1207   : > { %v9208_v26 = vpop.f32.mrb[102].mxu0 }
0x1208   : > { %v7168_v30 = vpop.f32.mrb[103].mxu0 }
0x120d   : > { %v4392_v24 = vpop.f32.mrb[104].mxu0 }
0x120e   : > { %v7179_v2 = vpop.f32.mrb[105].mxu0  ;;  %v4552_v35 = vsel %vm1647_vm6, %v4392_v24, -inf }
0x120f   : > { %4553 = vmax.xlane.f32.xlu0 %v4552_v35  ;;  %v4395_v19 = vpop.f32.mrb[106].mxu0 }
0x1210   : > { %v7180_v40 = vpop.f32.mrb[107].mxu0  ;;  %v4555_v18 = vsel %vm1647_vm6, %v4395_v19, -inf }
0x1211   : > { %4556 = vmax.xlane.f32.xlu1 %v4555_v18 }
0x1236   : > { %v9214_v27 = vpop.f32.mrb[108].mxu0 }
0x1237   : > { %v7191_v42 = vpop.f32.mrb[109].mxu0 }
0x1238   : > { %v4497_v58 = vpop.f32.mrb[110].mxu0 }
0x1239   : > { %v9216_v63 = vpop.f32.mrb[108].mxu1  ;;  %v7192_v45 = vpop.f32.mrb[111].mxu0  ;;  %v4567_v55 = vsel %vm1647_vm6, %v4497_v58, -inf }
0x123a   : > { %10035 = vst [vmem:[#allocation46_spill] sm:$0xff] %v9216_v63  ;;  %4568 = vmax.xlane.f32.xlu1 %v4567_v55  ;;  %v7173_v0 = vpop.f32.mrb[109].mxu1  ;;  %v4564_v55 = vsel %vm1647_vm6, %v9214_v27, -inf }
0x123b   : > { %v9219_v12 = vpop.f32.mrb[110].mxu1 }
0x123c   : > { %10036 = vst [vmem:[#allocation47_spill] sm:$0xff] %v9219_v12  ;;  %v7174_v30 = vpop.f32.mrb[111].mxu1 }
0x1241   : > { %v4443_v2 = vpop.f32.mrb[112].mxu1 }
0x1242   : > { %v7185_v35 = vpop.f32.mrb[113].mxu1  ;;  %v4558_v40 = vsel %vm1647_vm6, %v4443_v2, -inf }
0x1243   : > { %4559 = vmax.xlane.f32.xlu0 %v4558_v40  ;;  %v4446_v18 = vpop.f32.mrb[114].mxu1 }
0x1244   : > { %v7186_v42 = vpop.f32.mrb[115].mxu1  ;;  %v4561_v7 = vsel %vm1647_vm6, %v4446_v18, -inf }
0x1247   : > { %4562 = vmax.xlane.f32.xlu0 %v4561_v7 }
0x1249   : > { %v4545_v45 = vpop.f32.mrb[116].mxu1 }
0x124a   : > { %v7197_v57 = vpop.f32.mrb[117].mxu1  ;;  %v4570_v35 = vsel %vm1647_vm6, %v4545_v45, -inf }
0x124b   : > { %4691 = vrot.lane.b32.xlu1 %v8467_v15, %s8024_s29  ;;  %4565 = vmax.xlane.f32.xlu0 %v4564_v55  ;;  %v9229_v0 = vpop.f32.mrb[118].mxu1 }
0x124c   : > { %v7198_v30 = vpop.f32.mrb[119].mxu1  ;;  %v4573_v7 = vsel %vm1647_vm6, %v9229_v0, -inf }
0x124f   : > { %4738 = vrot.lane.b32.xlu1 %v8485_v47, %s8024_s29  ;;  %4571 = vmax.xlane.f32.xlu0 %v4570_v35 }
0x1265   : > { %4644 = vrot.lane.b32.xlu0 %v8471_v39, %s8024_s29 }
0x1273   : > { %4574 = vmax.xlane.f32.xlu1 %v4573_v7 }
0x1284   : > { %4785 = vrot.lane.b32.xlu1 %v8483_v46, %s8024_s29 }
0x129c   : > { %v4554_v57 = vpop.xlane.xlu0 %4553 }
0x129d   : > { %v4576_v40 = vsub.f32 %v4392_v24, %v4554_v57 }
0x129e   : > { %v4557_v42 = vpop.xlane.xlu1 %4556 }
0x129f   : > { %v4584_v55 = vmul.f32 1.442695, %v4576_v40  ;;  %v4577_v30 = vsub.f32 %v4395_v19, %v4557_v42 }
0x12a1   : > { %7785 = vpow2.f32 %v4584_v55  ;;  %v4586_v9 = vmul.f32 1.442695, %v4577_v30 }
0x12a3   : > { %7787 = vpow2.f32 %v4586_v9 }
0x12ab   : > { %v9240_v43 = vpop.eup %7785 }
0x12ac   : > { %v4600_v35 = vsel %vm1647_vm6, %v9240_v43, 0.0 }
0x12ad   : > { %v9244_v63 = vpop.eup %7787  ;;  %4601 = vadd.xlane.f32.xlu0 %v4600_v35 }
0x12ae   : > { %v4603_v7 = vsel %vm1647_vm6, %v9244_v63, 0.0 }
0x12af   : > { %4604 = vadd.xlane.f32.xlu1 %v4603_v7 }
0x12c7   : > { %v4569_v12 = vpop.xlane.xlu1 %4568 }
0x12c8   : > { %v4581_v9 = vsub.f32 %v4497_v58, %v4569_v12 }
0x12ca   : > { %v4594_v30 = vmul.f32 1.442695, %v4581_v9 }
0x12cb   : > { %v4692_v24 = vpop.permute.xlu1 %4691 }
0x12cc   : > { %7206 = vmatpush3.bf16.msra.mxu1 %v4692_v24 }
0x12cd   : > { %7217 = vmatprep.subr.bf16.mxu1 %v10028_v20 }
0x12d0   : > { %v4560_v19 = vpop.xlane.xlu0 %4559 }
0x12d1   : > { %v4578_v57 = vsub.f32 %v4443_v2, %v4560_v19 }
0x12d3   : > { %v4588_v40 = vmul.f32 1.442695, %v4578_v57 }
0x12d4   : > { %v4563_v42 = vpop.xlane.xlu0 %4562 }
0x12d5   : > { %7789 = vpow2.f32 %v4588_v40  ;;  %v4579_v55 = vsub.f32 %v4446_v18, %v4563_v42 }
0x12d7   : > { %v4590_v33 = vmul.f32 1.442695, %v4579_v55 }
0x12d8   : > { %v4566_v34 = vpop.xlane.xlu0 %4565 }
0x12d9   : > { %7791 = vpow2.f32 %v4590_v33  ;;  %v4580_v35 = vsub.f32 %v9214_v27, %v4566_v34 }
0x12da   : > { %7793 = vpow2.f32 %v4594_v30 }
0x12db   : > { %v4592_v7 = vmul.f32 1.442695, %v4580_v35 }
0x12dc   : > { %v4572_v4 = vpop.xlane.xlu0 %4571 }
0x12dd   : > { %7795 = vpow2.f32 %v4592_v7  ;;  %v4582_v24 = vsub.f32 %v4545_v45, %v4572_v4 }
0x12df   : > { %v7790_v22 = vpop.eup %7789  ;;  %v4596_v37 = vmul.f32 1.442695, %v4582_v24 }
0x12e0   : > { %v4645_v23 = vpop.permute.xlu0 %4644  ;;  %v4606_v58 = vsel %vm1647_vm6, %v7790_v22, 0.0 }
0x12e1   : > { %7797 = vpow2.f32 %v4596_v37  ;;  %4607 = vadd.xlane.f32.xlu0 %v4606_v58  ;;  %7200 = vmatpush3.bf16.msra.mxu0 %v4645_v23  ;;  %v4739_v23 = vpop.permute.xlu1 %4738 }
0x12e2   : > { %7211 = vmatprep.subr.bf16.mxu0 %v10028_v20 }
0x12e3   : > { %v7792_v12 = vpop.eup %7791 }
0x12e4   : > { %v4609_v33 = vsel %vm1647_vm6, %v7792_v12, 0.0  ;;  %v7794_v2 = vpop.eup %7793 }
0x12e5   : > { %4610 = vadd.xlane.f32.xlu1 %v4609_v33  ;;  %v4615_v4 = vsel %vm1647_vm6, %v7794_v2, 0.0 }
0x12e7   : > { %v7796_v34 = vpop.eup %7795 }
0x12e8   : > { %v4612_v27 = vsel %vm1647_vm6, %v7796_v34, 0.0 }
0x12e9   : > { %4613 = vadd.xlane.f32.xlu0 %v4612_v27  ;;  %4616 = vadd.xlane.f32.xlu1 %v4615_v4 }
0x12eb   : > { %v9255_v18 = vpop.eup %7797 }
0x12ec   : > { %v4618_v37 = vsel %vm1647_vm6, %v9255_v18, 0.0 }
0x12ed   : > { %4619 = vadd.xlane.f32.xlu0 %v4618_v37 }
0x12fa   : > { %4885 = vrot.lane.b32.xlu1 %v8451_v14, %s8025_s25 }
0x1300   : > { %v4575_v45 = vpop.xlane.xlu1 %4574 }
0x1301   : > { %v4583_v19 = vsub.f32 %v9229_v0, %v4575_v45 }
0x1303   : > { %4834 = vrot.lane.b32.xlu0 %v8455_v61, %s8025_s25  ;;  %v4598_v57 = vmul.f32 1.442695, %v4583_v19 }
0x1305   : > { %7799 = vpow2.f32 %v4598_v57 }
0x1307   : > { %4832 = vrot.lane.b32.xlu0 %v8453_v16, %s8025_s25 }
0x130b   : > { %4883 = vrot.lane.b32.xlu0 %v8449_v13, %s8025_s25  ;;  %v4786_v13 = vpop.permute.xlu1 %4785 }
0x130f   : > { %4934 = vrot.lane.b32.xlu0 %v8442_v53, %s8025_s25  ;;  %v9270_v9 = vpop.eup %7799 }
0x1310   : > { %v4621_v14 = vsel %vm1647_vm6, %v9270_v9, 0.0 }
0x131e   : > { %4622 = vadd.xlane.f32.xlu1 %v4621_v14 }
0x132f   : > { %4936 = vrot.lane.b32.xlu1 %v8469_v38, %s8025_s25 }
0x1333   : > { %4987 = vrot.lane.b32.xlu1 %v8465_v6, %s8025_s25 }
0x1337   : > { %4985 = vrot.lane.b32.xlu1 %v8440_v52, %s8025_s25 }
0x133a   : > { %v4602_v16 = vpop.xlane.xlu0 %4601 }
0x133b   : > { %7801 = vrcp.f32 %v4602_v16 }
0x133c   : > { %v4605_v53 = vpop.xlane.xlu1 %4604 }
0x133d   : > { %7803 = vrcp.f32 %v4605_v53 }
0x1345   : > { %v7802_v61 = vpop.eup %7801 }
0x1346   : > { %v4632_v40 = vmul.f32 %v7802_v61, %v9240_v43 }
0x1347   : > { %v7804_v0 = vpop.eup %7803 }
0x1348   : > { %v4633_v42 = vmul.f32 %v7804_v0, %v9244_v63 }
0x134a   : > { %v4640_v55 = vpack.c.bf16 %v4633_v42, %v4632_v40 }
0x134c   : > { %7202 = vmatmul.mubr.msk.bf16.vlgmr.msra.gmra.mrb[112].mxu0 %vm1647_vm6, %v4640_v55 }
0x134d   : > { %7212 = vmatpush3.bf16.msra.mxu0 %v4739_v23  ;;  %7213 = vmatprep.mubr.msk.bf16.mxu0 %vm8018_vm4, %v10028_v20 }
0x134e   : > { %7223 = vmatprep.subr.bf16.mxu0 %v10028_v20 }
0x136e   : > { %v4608_v52 = vpop.xlane.xlu0 %4607 }
0x136f   : > { %7805 = vrcp.f32 %v4608_v52 }
0x1372   : > { %v4611_v6 = vpop.xlane.xlu1 %4610 }
0x1373   : > { %7807 = vrcp.f32 %v4611_v6 }
0x1376   : > { %v4614_v38 = vpop.xlane.xlu0 %4613  ;;  %v4617_v30 = vpop.xlane.xlu1 %4616 }
0x1377   : > { %7809 = vrcp.f32 %v4614_v38 }
0x1378   : > { %7811 = vrcp.f32 %v4617_v30 }
0x1379   : > { %v7806_v43 = vpop.eup %7805 }
0x137a   : > { %v4634_v63 = vmul.f32 %v7806_v43, %v7790_v22  ;;  %v4620_v24 = vpop.xlane.xlu0 %4619 }
0x137b   : > { %7813 = vrcp.f32 %v4620_v24 }
0x137d   : > { %v7808_v35 = vpop.eup %7807 }
0x137e   : > { %v4635_v7 = vmul.f32 %v7808_v35, %v7792_v12  ;;  %v4835_v23 = vpop.permute.xlu0 %4834  ;;  %v4886_v12 = vpop.permute.xlu1 %4885 }
0x137f   : > { %v4840_v19 = vsel %vm1458_vm5, %v4835_v23, 0  ;;  %v4891_v42 = vsel %vm1458_vm5, %v4886_v12, 0 }
0x1380   : > { %v4641_v58 = vpack.c.bf16 %v4635_v7, %v4634_v63 }
0x1381   : > { %v7810_v33 = vpop.eup %7809 }
0x1382   : > { %v7812_v27 = vpop.eup %7811  ;;  %v4636_v4 = vmul.f32 %v7810_v33, %v7796_v34  ;;  %7208 = vmatmul.mubr.msk.bf16.vlgmr.msra.gmra.mrb[120].mxu1 %vm1647_vm6, %v4641_v58  ;;  %v4833_v22 = vpop.permute.xlu0 %4832 }
0x1383   : > { %v4637_v37 = vmul.f32 %v7812_v27, %v7794_v2  ;;  %7218 = vmatpush3.bf16.msra.mxu1 %v4786_v13  ;;  %7219 = vmatprep.mubr.msk.bf16.mxu1 %vm8018_vm4, %v10028_v20 }
0x1384   : > { %7229 = vmatprep.subr.bf16.mxu1 %v10028_v20 }
0x1385   : > { %v4642_v45 = vpack.c.bf16 %v4637_v37, %v4636_v4  ;;  %v7814_v13 = vpop.eup %7813 }
0x1386   : > { %v4884_v14 = vpop.permute.xlu0 %4883  ;;  %v4638_v53 = vmul.f32 %v7814_v13, %v9255_v18 }
0x1387   : > { %7214 = vmatmul.mubr.msk.bf16.vlgmr.msra.gmra.mrb[116].mxu0 %vm1647_vm6, %v4642_v45 }
0x1388   : > { %7224 = vmatpush3.bf16.xpose.msra.mxu0 %v4840_v19  ;;  %7225 = vmatprep.mubr.msk.bf16.mxu0 %vm8018_vm4, %v10028_v20 }
0x1389   : > { %7235 = vmatprep.subr.bf16.mxu0 %v10028_v20 }
0x138a   : > { %v4935_v61 = vpop.permute.xlu0 %4934 }
0x138f   : > { %7226 = vmatmul.mubr.msk.bf16.vlgmr.msra.gmra.mrb[120].mxu0 %vm1458_vm5, %v4833_v22 }
0x1390   : > { %7237 = vmatprep.mubr.msk.bf16.mxu0 %vm8018_vm4, %v10028_v20 }
0x13ab   : > { %v4623_v2 = vpop.xlane.xlu1 %4622 }
0x13ac   : > { %7815 = vrcp.f32 %v4623_v2 }
0x13af   : > { %v4937_v34 = vpop.permute.xlu1 %4936 }
0x13b0   : > { %v4942_v57 = vsel %vm1458_vm5, %v4937_v34, 0 }
0x13b1   : > { %7236 = vmatpush3.bf16.xpose.msra.mxu0 %v4942_v57 }
0x13b2   : > { %7247 = vmatprep.subr.bf16.mxu0 %v10028_v20 }
0x13b3   : > { %v4988_v18 = vpop.permute.xlu1 %4987 }
0x13b4   : > { %v4993_v55 = vsel %vm1458_vm5, %v4988_v18, 0 }
0x13b6   : > { %v7816_v16 = vpop.eup %7815 }
0x13b7   : > { %v4639_v0 = vmul.f32 %v7816_v16, %v9270_v9  ;;  %v4986_v9 = vpop.permute.xlu1 %4985 }
0x13b8   : > { %7238 = vmatmul.mubr.msk.bf16.vlgmr.msra.gmra.mrb[124].mxu0 %vm1458_vm5, %v4935_v61 }
0x13b9   : > { %v4643_v40 = vpack.c.bf16 %v4639_v0, %v4638_v53  ;;  %7249 = vmatprep.mubr.msk.bf16.mxu0 %vm8018_vm4, %v10028_v20 }
0x13bb   : > { %7220 = vmatmul.mubr.msk.bf16.vlgmr.msra.gmra.mrb[124].mxu1 %vm1647_vm6, %v4643_v40 }
0x13bc   : > { %7230 = vmatpush3.bf16.xpose.msra.mxu1 %v4891_v42  ;;  %7231 = vmatprep.mubr.msk.bf16.mxu1 %vm8018_vm4, %v10028_v20 }
0x13bd   : > { %7241 = vmatprep.subr.bf16.mxu1 %v10028_v20 }
0x13c3   : > { %7232 = vmatmul.mubr.msk.bf16.vlgmr.msra.gmra.mrb[128].mxu1 %vm1458_vm5, %v4884_v14 }
0x13c4   : > { %7242 = vmatpush3.bf16.xpose.msra.mxu1 %v4993_v55  ;;  %7243 = vmatprep.mubr.msk.bf16.mxu1 %vm8018_vm4, %v10028_v20 }
0x13c5   : > { %7253 = vmatprep.subr.bf16.mxu1 %v10028_v20 }
0x13cb   : > { %7244 = vmatmul.mubr.msk.bf16.vlgmr.msra.gmra.mrb[132].mxu1 %vm1458_vm5, %v4986_v9 }
0x13cc   : > { %7255 = vmatprep.mubr.msk.bf16.mxu1 %vm8018_vm4, %v10028_v20 }
0x141f   : > { %v9318_v52 = vpop.f32.mrb[112].mxu0 }
0x1420   : > { %v7203_v6 = vpop.f32.mrb[113].mxu0 }
0x1421   : > { %v9320_v38 = vpop.f32.mrb[114].mxu0 }
0x1422   : > { %v7473_v30 = vpack.i.bf16 %v9320_v38, %v9318_v52  ;;  %v7204_v43 = vpop.f32.mrb[115].mxu0  ;;  %v10066_v38 = vld [vmem:[#allocation43_spill] sm:$0xff] }
0x1455   : > { %v9324_v35 = vpop.f32.mrb[120].mxu1 }
0x1456   : > { %v7209_v63 = vpop.f32.mrb[121].mxu1 }
0x1457   : > { %v9326_v7 = vpop.f32.mrb[122].mxu1 }
0x1458   : > { %v7210_v58 = vpop.f32.mrb[123].mxu1 }
0x145a   : > { %v9330_v33 = vpop.f32.mrb[116].mxu0 }
0x145b   : > { %v7215_v27 = vpop.f32.mrb[117].mxu0 }
0x145c   : > { %v9332_v4 = vpop.f32.mrb[118].mxu0 }
0x145d   : > { %v7216_v23 = vpop.f32.mrb[119].mxu0 }
0x1462   : > { %v4876_v45 = vpop.f32.mrb[120].mxu0 }
0x1463   : > { %v7227_v19 = vpop.f32.mrb[121].mxu0  ;;  %v5036_v22 = vsel %vm1647_vm6, %v4876_v45, -inf }
0x1464   : > { %5037 = vmax.xlane.f32.xlu0 %v5036_v22  ;;  %v4879_v12 = vpop.f32.mrb[122].mxu0 }
0x1465   : > { %v7228_v2 = vpop.f32.mrb[123].mxu0  ;;  %v5039_v34 = vsel %vm1647_vm6, %v4879_v12, -inf }
0x1466   : > { %5040 = vmax.xlane.f32.xlu1 %v5039_v34 }
0x148b   : > { %v4978_v57 = vpop.f32.mrb[124].mxu0 }
0x148c   : > { %v7239_v14 = vpop.f32.mrb[125].mxu0  ;;  %v5048_v19 = vsel %vm1647_vm6, %v4978_v57, -inf }
0x148d   : > { %v4981_v13 = vpop.f32.mrb[126].mxu0 }
0x148e   : > { %v9338_v16 = vpop.f32.mrb[124].mxu1  ;;  %v7240_v53 = vpop.f32.mrb[127].mxu0  ;;  %v5051_v61 = vsel %vm1647_vm6, %v4981_v13, -inf }
0x148f   : > { %5052 = vmax.xlane.f32.xlu1 %v5051_v61  ;;  %v7221_v0 = vpop.f32.mrb[125].mxu1 }
0x1490   : > { %v9341_v40 = vpop.f32.mrb[126].mxu1 }
0x1491   : > { %v7222_v18 = vpop.f32.mrb[127].mxu1 }
0x1496   : > { %v4927_v55 = vpop.f32.mrb[128].mxu1 }
0x1497   : > { %v7233_v9 = vpop.f32.mrb[129].mxu1  ;;  %v5042_v6 = vsel %vm1647_vm6, %v4927_v55, -inf }
0x1498   : > { %5043 = vmax.xlane.f32.xlu0 %v5042_v6  ;;  %v4930_v43 = vpop.f32.mrb[130].mxu1 }
0x1499   : > { %v7234_v63 = vpop.f32.mrb[131].mxu1  ;;  %v5045_v58 = vsel %vm1647_vm6, %v4930_v43, -inf }
0x149c   : > { %5046 = vmax.xlane.f32.xlu0 %v5045_v58 }
0x149e   : > { %v5029_v27 = vpop.f32.mrb[132].mxu1 }
0x149f   : > { %v7245_v23 = vpop.f32.mrb[133].mxu1  ;;  %v5054_v14 = vsel %vm1647_vm6, %v5029_v27, -inf }
0x14a0   : > { %5049 = vmax.xlane.f32.xlu0 %v5048_v19  ;;  %v9348_v22 = vpop.f32.mrb[134].mxu1 }
0x14a1   : > { %v7246_v2 = vpop.f32.mrb[135].mxu1  ;;  %v5057_v34 = vsel %vm1647_vm6, %v9348_v22, -inf }
0x14a2   : > { %5058 = vmax.xlane.f32.xlu1 %v5057_v34 }
0x14a4   : > { %5055 = vmax.xlane.f32.xlu0 %v5054_v14 }
0x14f1   : > { %v5038_v53 = vpop.xlane.xlu0 %5037 }
0x14f2   : > { %v5060_v61 = vsub.f32 %v4876_v45, %v5038_v53 }
0x14f3   : > { %v5041_v0 = vpop.xlane.xlu1 %5040 }
0x14f4   : > { %v5068_v18 = vmul.f32 1.442695, %v5060_v61  ;;  %v5061_v9 = vsub.f32 %v4879_v12, %v5041_v0 }
0x14f6   : > { %7817 = vpow2.f32 %v5068_v18  ;;  %v5070_v6 = vmul.f32 1.442695, %v5061_v9 }
0x14f8   : > { %7819 = vpow2.f32 %v5070_v6 }
0x1500   : > { %v9353_v63 = vpop.eup %7817 }
0x1501   : > { %v5084_v58 = vsel %vm1647_vm6, %v9353_v63, 0.0 }
0x1502   : > { %v9357_v23 = vpop.eup %7819  ;;  %5085 = vadd.xlane.f32.xlu0 %v5084_v58 }
0x1503   : > { %v5087_v19 = vsel %vm1647_vm6, %v9357_v23, 0.0 }
0x1504   : > { %5088 = vadd.xlane.f32.xlu1 %v5087_v19 }
0x151c   : > { %v5053_v2 = vpop.xlane.xlu1 %5052 }
0x151d   : > { %v5065_v14 = vsub.f32 %v4981_v13, %v5053_v2 }
0x151f   : > { %v5078_v0 = vmul.f32 1.442695, %v5065_v14 }
0x1525   : > { %v5044_v45 = vpop.xlane.xlu0 %5043 }
0x1526   : > { %v5062_v34 = vsub.f32 %v4927_v55, %v5044_v45 }
0x1528   : > { %v5072_v12 = vmul.f32 1.442695, %v5062_v34  ;;  %v10037_v34 = vpack.i.bf16 %v8700_v50, %v8698_v49  ;;  %v10040_v49 = vpack.i.bf16 %v9072_v60, %v9070_v29  ;;  %v10041_v50 = vpack.i.bf16 %v9196_v25, %v9194_v32 }
0x1529   : > { %v5047_v53 = vpop.xlane.xlu0 %5046  ;;  %v10044_v29 = vpack.i.bf16 %v8960_v3, %v8958_v11  ;;  %v10045_v60 = vpack.i.bf16 %v9084_v56, %v9082_v48  ;;  %v10050_v11 = vld [vmem:[#allocation41_spill] sm:$0xff]  ;;  %v10051_v3 = vld [vmem:[#allocation40_spill] sm:$0xff] }
0x152a   : > { %7821 = vpow2.f32 %v5072_v12  ;;  %v5063_v61 = vsub.f32 %v4930_v43, %v5047_v53  ;;  %v10038_v12 = vpack.i.bf16 %v8824_v62, %v8822_v5  ;;  %v10042_v62 = vpack.i.bf16 %v8712_v54, %v8710_v10  ;;  %v10053_v56 = vld [vmem:[#allocation45_spill] sm:$0xff] }
0x152b   : > { %v10046_v10 = vpack.i.bf16 %v9208_v26, %v9206_v28  ;;  %v10047_v54 = vpack.i.bf16 %v8706_v1, %v8704_v59  ;;  %v10052_v48 = vpack.i.bf16 %v10050_v11, %v10051_v3  ;;  %v10056_v59 = vpack.i.bf16 %v9326_v7, %v9324_v35  ;;  %v10057_v1 = vld [vmem:[#allocation35_spill] sm:$0xff]  ;;  %v10064_v26 = vld [vmem:[#allocation38_spill] sm:$0xff] }
0x152c   : > { %v5074_v18 = vmul.f32 1.442695, %v5063_v61  ;;  %v10063_v28 = vld [vmem:[#allocation39_spill] sm:$0xff]  ;;  %v10070_v7 = vld [vmem:[#allocation46_spill] sm:$0xff] }
0x152d   : > { %v5050_v9 = vpop.xlane.xlu0 %5049  ;;  %v10065_v52 = vpack.i.bf16 %v10063_v28, %v10064_v26  ;;  %v10069_v35 = vld [vmem:[#allocation47_spill] sm:$0xff] }
0x152e   : > { %7823 = vpow2.f32 %v5074_v18  ;;  %v5064_v6 = vsub.f32 %v4978_v57, %v5050_v9  ;;  %v10071_v53 = vpack.i.bf16 %v10069_v35, %v10070_v7 }
0x152f   : > { %7825 = vpow2.f32 %v5078_v0  ;;  %v5059_v14 = vpop.xlane.xlu1 %5058 }
0x1530   : > { %v5076_v42 = vmul.f32 1.442695, %v5064_v6 }
0x1531   : > { %v5056_v58 = vpop.xlane.xlu0 %5055 }
0x1532   : > { %7827 = vpow2.f32 %v5076_v42  ;;  %v5066_v37 = vsub.f32 %v5029_v27, %v5056_v58 }
0x1534   : > { %v9361_v24 = vpop.eup %7821  ;;  %v5080_v19 = vmul.f32 1.442695, %v5066_v37 }
0x1535   : > { %v5090_v13 = vsel %vm1647_vm6, %v9361_v24, 0.0 }
0x1536   : > { %7829 = vpow2.f32 %v5080_v19  ;;  %5091 = vadd.xlane.f32.xlu0 %v5090_v13 }
0x1538   : > { %v9365_v55 = vpop.eup %7823 }
0x1539   : > { %v5093_v43 = vsel %vm1647_vm6, %v9365_v55, 0.0  ;;  %v9369_v2 = vpop.eup %7825 }
0x153a   : > { %5094 = vadd.xlane.f32.xlu1 %v5093_v43  ;;  %v5099_v37 = vsel %vm1647_vm6, %v9369_v2, 0.0 }
0x153c   : > { %v9371_v57 = vpop.eup %7827 }
0x153d   : > { %v5096_v42 = vsel %vm1647_vm6, %v9371_v57, 0.0 }
0x153e   : > { %5097 = vadd.xlane.f32.xlu0 %v5096_v42  ;;  %5100 = vadd.xlane.f32.xlu1 %v5099_v37 }
0x1540   : > { %v9377_v27 = vpop.eup %7829 }
0x1541   : > { %v5102_v45 = vsel %vm1647_vm6, %v9377_v27, 0.0 }
0x1542   : > { %5103 = vadd.xlane.f32.xlu0 %v5102_v45 }
0x154f   : > { %5175 = vrot.lane.b32.xlu1 %v8467_v15, %s8025_s25  ;;  %v5067_v15 = vsub.f32 %v9348_v22, %v5059_v14 }
0x1553   : > { %5222 = vrot.lane.b32.xlu1 %v8485_v47, %s8025_s25  ;;  %v10039_v47 = vpack.i.bf16 %v8948_v51, %v8946_v41  ;;  %v10043_v51 = vpack.i.bf16 %v8836_v17, %v8834_v44  ;;  %v10048_v44 = vpack.i.bf16 %v8830_v21, %v8828_v31  ;;  %v10049_v17 = vpack.i.bf16 %v8954_v36, %v8952_v8  ;;  %v10058_v31 = vld [vmem:[#allocation34_spill] sm:$0xff]  ;;  %v10060_v8 = vld [vmem:[#allocation37_spill] sm:$0xff]  ;;  %v10061_v36 = vld [vmem:[#allocation36_spill] sm:$0xff] }
0x1554   : > { %v10059_v21 = vpack.i.bf16 %v10057_v1, %v10058_v31  ;;  %v10062_v25 = vpack.i.bf16 %v10060_v8, %v10061_v36 }
0x1558   : > { %5128 = vrot.lane.b32.xlu0 %v8471_v39, %s8025_s25  ;;  %v5082_v39 = vmul.f32 1.442695, %v5067_v15 }
0x155a   : > { %7831 = vpow2.f32 %v5082_v39 }
0x155c   : > { %7424 = vrot.lane.b32.xlu0 %v10037_v34, %s8026_s19 }
0x1560   : > { %7434 = vrot.lane.b32.xlu0 %v10038_v12, %s8027_s3 }
0x1564   : > { %7444 = vrot.lane.b32.xlu0 %v10039_v47, %s8028_s4  ;;  %v9409_v5 = vpop.eup %7831 }
0x1565   : > { %v5105_v41 = vsel %vm1647_vm6, %v9409_v5, 0.0 }
0x1568   : > { %7454 = vrot.lane.b32.xlu0 %v10040_v49, %s8029_s0 }
0x156c   : > { %7464 = vrot.lane.b32.xlu0 %v10041_v50, %s8030_s20 }
0x1570   : > { %7474 = vrot.lane.b32.xlu0 %v7473_v30, %s8031_s5  ;;  %v10067_v30 = vld [vmem:[#allocation42_spill] sm:$0xff] }
0x1571   : > { %v10068_v22 = vpack.i.bf16 %v10066_v38, %v10067_v30 }
0x1574   : > { %7484 = vrot.lane.b32.xlu0 %v10042_v62, %s8026_s19 }
0x1577   : > { %5106 = vadd.xlane.f32.xlu1 %v5105_v41 }
0x1578   : > { %7494 = vrot.lane.b32.xlu0 %v10043_v51, %s8027_s3 }
0x157c   : > { %7504 = vrot.lane.b32.xlu0 %v10044_v29, %s8028_s4 }
0x1580   : > { %7514 = vrot.lane.b32.xlu0 %v10045_v60, %s8029_s0 }
0x1584   : > { %7524 = vrot.lane.b32.xlu0 %v10046_v10, %s8030_s20 }
0x1588   : > { %5269 = vrot.lane.b32.xlu1 %v8483_v46, %s8025_s25  ;;  %v10054_v46 = vld [vmem:[#allocation44_spill] sm:$0xff] }
0x1589   : > { %v10055_v32 = vpack.i.bf16 %v10053_v56, %v10054_v46 }
0x158c   : > { %7429 = vrot.lane.b32.xlu1 %v10047_v54, %s8026_s19 }
0x158f   : > { %v5086_v61 = vpop.xlane.xlu0 %5085 }
0x1590   : > { %7439 = vrot.lane.b32.xlu1 %v10048_v44, %s8027_s3 }
0x1591   : > { %v5089_v0 = vpop.xlane.xlu1 %5088 }
0x1592   : > { %7833 = vrcp.f32 %v5089_v0  ;;  %v7570_v0 = vld [vmem:[%s8274_s30 + $0x8] sm:$0xff]  }
0x1593   : > { %7835 = vrcp.f32 %v5086_v61  ;;  %v7569_v61 = vld [vmem:[%s8274_s30] sm:$0xff]  }
0x1594   : > { %7449 = vrot.lane.b32.xlu1 %v10049_v17, %s8028_s4 }
0x1598   : > { %7459 = vrot.lane.b32.xlu1 %v10052_v48, %s8029_s0 }
0x159c   : > { %7469 = vrot.lane.b32.xlu1 %v10055_v32, %s8030_s20  ;;  %v7834_v19 = vpop.eup %7833  ;;  %v10072_v32 = vld [vmem:[#allocation33_spill] sm:$0xff] }
0x159d   : > { %v7836_v13 = vpop.eup %7835  ;;  %v5117_v45 = vmul.f32 %v7834_v19, %v9357_v23 }
0x159e   : > { %v5116_v14 = vmul.f32 %v7836_v13, %v9353_v63 }
0x15a0   : > { %7479 = vrot.lane.b32.xlu1 %v10056_v59, %s8031_s5  ;;  %v5124_v39 = vpack.c.bf16 %v5117_v45, %v5116_v14  ;;  %v10074_v14 = vpack.i.bf16 %v9332_v4, %v9330_v33 }
0x15a4   : > { %7489 = vrot.lane.b32.xlu1 %v10059_v21, %s8026_s19 }
0x15a8   : > { %7499 = vrot.lane.b32.xlu1 %v10062_v25, %s8027_s3 }
0x15ac   : > { %7509 = vrot.lane.b32.xlu1 %v10065_v52, %s8028_s4 }
0x15b0   : > { %7519 = vrot.lane.b32.xlu1 %v10068_v22, %s8029_s0 }
0x15b4   : > { %7529 = vrot.lane.b32.xlu1 %v10071_v53, %s8030_s20 }
0x15c3   : > { %v5092_v18 = vpop.xlane.xlu0 %5091 }
0x15c4   : > { %7837 = vrcp.f32 %v5092_v18 }
0x15c7   : > { %v5095_v9 = vpop.xlane.xlu1 %5094 }
0x15c8   : > { %7839 = vrcp.f32 %v5095_v9 }
0x15cb   : > { %v5098_v6 = vpop.xlane.xlu0 %5097  ;;  %v5101_v58 = vpop.xlane.xlu1 %5100 }
0x15cc   : > { %7841 = vrcp.f32 %v5098_v6 }
0x15cd   : > { %7843 = vrcp.f32 %v5101_v58 }
0x15ce   : > { %v7838_v37 = vpop.eup %7837 }
0x15cf   : > { %v5104_v43 = vpop.xlane.xlu0 %5103  ;;  %v5176_v42 = vpop.permute.xlu1 %5175  ;;  %v5118_v12 = vmul.f32 %v7838_v37, %v9361_v24 }
0x15d0   : > { %7254 = vmatpush3.bf16.msra.mxu1 %v5176_v42  ;;  %7845 = vrcp.f32 %v5104_v43 }
0x15d1   : > { %7265 = vmatprep.subr.bf16.mxu1 %v10028_v20 }
0x15d2   : > { %v7840_v34 = vpop.eup %7839 }
0x15d3   : > { %v5119_v15 = vmul.f32 %v7840_v34, %v9365_v55  ;;  %v5129_v47 = vpop.permute.xlu0 %5128  ;;  %v5223_v41 = vpop.permute.xlu1 %5222 }
0x15d4   : > { %7248 = vmatpush3.bf16.msra.mxu0 %v5129_v47 }
0x15d5   : > { %7259 = vmatprep.subr.bf16.mxu0 %v10028_v20  ;;  %v5125_v49 = vpack.c.bf16 %v5119_v15, %v5118_v12  ;;  %v10075_v15 = vpack.i.bf16 %v9341_v40, %v9338_v16 }
0x15d6   : > { %v7842_v50 = vpop.eup %7841 }
0x15d7   : > { %v7844_v62 = vpop.eup %7843  ;;  %7250 = vmatmul.mubr.msk.bf16.vlgmr.msra.gmra.mrb[128].mxu0 %vm1647_vm6, %v5124_v39  ;;  %7256 = vmatmul.mubr.msk.bf16.vlgmr.msra.gmra.mrb[136].mxu1 %vm1647_vm6, %v5125_v49  ;;  %v5120_v24 = vmul.f32 %v7842_v50, %v9371_v57  ;;  %v7425_v50 = vpop.permute.xlu0 %7424 }
0x15d8   : > { %7260 = vmatpush3.bf16.msra.mxu0 %v5223_v41  ;;  %7261 = vmatprep.mubr.msk.bf16.mxu0 %vm8018_vm4, %v10028_v20  ;;  %v5121_v63 = vmul.f32 %v7844_v62, %v9369_v2 }
0x15d9   : > { %7267 = vmatprep.mubr.msk.bf16.mxu1 %vm8018_vm4, %v10028_v20  ;;  %7271 = vmatprep.subr.bf16.mxu0 %v7569_v61 }
0x15da   : > { %v5126_v23 = vpack.c.bf16 %v5121_v63, %v5120_v24  ;;  %v7846_v60 = vpop.eup %7845 }
0x15db   : > { %v5122_v54 = vmul.f32 %v7846_v60, %v9377_v27  ;;  %v7435_v62 = vpop.permute.xlu0 %7434 }
0x15df   : > { %7262 = vmatmul.mubr.msk.bf16.vlgmr.msra.gmra.mrb[132].mxu0 %vm1647_vm6, %v5126_v23  ;;  %v7445_v33 = vpop.permute.xlu0 %7444 }
0x15e0   : > { %7272 = vmatpush3.bf16.msra.mxu0 %v7569_v61 }
0x15e1   : > { %7273 = vmatprep.subr.bf16.mxu0 %v7570_v0 }
0x15e3   : > { %v7455_v4 = vpop.permute.xlu0 %7454 }
0x15e4   : > { %7274 = vmatpush3.bf16.msra.mxu0 %v7570_v0 }
0x1604   : > { %v5107_v55 = vpop.xlane.xlu1 %5106 }
0x1605   : > { %7847 = vrcp.f32 %v5107_v55 }
0x1608   : > { %v5270_v51 = vpop.permute.xlu1 %5269 }
0x1609   : > { %7266 = vmatpush3.bf16.msra.mxu1 %v5270_v51  ;;  %v7465_v51 = vpop.permute.xlu0 %7464 }
0x160c   : > { %v9485_v29 = vpop.permute.xlu1 %7429 }
0x160d   : > { %v7475_v60 = vpop.permute.xlu0 %7474 }
0x160e   : > { %v7477_v61 = vunpack.i.h.bf16 %v7475_v60 }
0x160f   : > { %v7848_v10 = vpop.eup %7847 }
0x1610   : > { %v5123_v57 = vmul.f32 %v7848_v10, %v9409_v5  ;;  %v9489_v2 = vpop.permute.xlu1 %7439  ;;  %v10073_v5 = vld [vmem:[#allocation32_spill] sm:$0xff] }
0x1611   : > { %v9524_v10 = vpop.permute.xlu0 %7484  ;;  %v7442_v0 = vunpack.i.h.bf16 %v9489_v2 }
0x1612   : > { %v5127_v44 = vpack.c.bf16 %v5123_v57, %v5122_v54  ;;  %v7427_v54 = vunpack.i.h.bf16 %v7425_v50  ;;  %v7426_v57 = vunpack.i.l.bf16 %v7425_v50 }
0x1614   : > { %7268 = vmatmul.mubr.msk.bf16.vlgmr.msra.gmra.mrb[140].mxu1 %vm1647_vm6, %v5127_v44  ;;  %v9492_v20 = vpop.permute.xlu1 %7449  ;;  %v7437_v44 = vunpack.i.h.bf16 %v7435_v62 }
0x1615   : > { %v9526_v16 = vpop.permute.xlu0 %7494 }
0x1618   : > { %v9494_v17 = vpop.permute.xlu1 %7459 }
0x1619   : > { %v9528_v40 = vpop.permute.xlu0 %7504 }
0x161c   : > { %v9496_v11 = vpop.permute.xlu1 %7469 }
0x1620   : > { %v9498_v3 = vpop.permute.xlu1 %7479 }
0x1624   : > { %v7490_v48 = vpop.permute.xlu1 %7489 }
0x1625   : > { %v7492_v56 = vunpack.i.h.bf16 %v7490_v48  ;;  %v7491_v46 = vunpack.i.l.bf16 %v7490_v48  ;;  %v7436_v48 = vunpack.i.l.bf16 %v7435_v62 }
0x1627   : > { %v5547_v27 = vsel %vm1458_vm5, %v10072_v32, %v7492_v56  ;;  %v5546_v59 = vsel %vm1458_vm5, %v10073_v5, %v7491_v46  ;;  %v7447_v56 = vunpack.i.h.bf16 %v7445_v33  ;;  %v7446_v46 = vunpack.i.l.bf16 %v7445_v33 }
0x1628   : > { %v7500_v1 = vpop.permute.xlu1 %7499  ;;  %v7456_v32 = vunpack.i.l.bf16 %v7455_v4  ;;  %v7496_v33 = vunpack.i.l.bf16 %v9526_v16 }
0x1629   : > { %v7502_v31 = vunpack.i.h.bf16 %v7500_v1  ;;  %v7501_v21 = vunpack.i.l.bf16 %v7500_v1 }
0x162b   : > { %v5555_v8 = vsel %vm5548_vm7, %v5546_v59, %v7501_v21  ;;  %v5556_v36 = vsel %vm5548_vm7, %v5547_v27, %v7502_v31  ;;  %v10076_v27 = vld [vmem:[#allocation27_spill] sm:$0xff]  ;;  %v10077_v59 = vld [vmem:[#allocation26_spill] sm:$0xff]  ;;  %v7457_v31 = vunpack.i.h.bf16 %v7455_v4  ;;  %v7466_v21 = vunpack.i.l.bf16 %v7465_v51 }
0x162c   : > { %v7510_v25 = vpop.permute.xlu1 %7509  ;;  %v5541_v5 = vsel %vm1458_vm5, %v10076_v27, %v7427_v54  ;;  %v5540_v1 = vsel %vm1458_vm5, %v10077_v59, %v7426_v57 }
0x162d   : > { %v7512_v28 = vunpack.i.h.bf16 %v7510_v25  ;;  %v7511_v26 = vunpack.i.l.bf16 %v7510_v25  ;;  %v5550_v25 = vsel %vm5548_vm7, %v5541_v5, %v7437_v44 }
0x162f   : > { %v5564_v52 = vsel %vm5557_vm8, %v5555_v8, %v7511_v26  ;;  %v5565_v38 = vsel %vm5557_vm8, %v5556_v36, %v7512_v28  ;;  %v9534_v8 = vpop.permute.xlu0 %7514  ;;  %v5549_v36 = vsel %vm5548_vm7, %v5540_v1, %v7436_v48  ;;  %v7467_v28 = vunpack.i.h.bf16 %v7465_v51 }
0x1630   : > { %v7520_v30 = vpop.permute.xlu1 %7519  ;;  %v7476_v26 = vunpack.i.l.bf16 %v7475_v60  ;;  %v7517_v1 = vunpack.i.h.bf16 %v9534_v8 }
0x1631   : > { %v7522_v22 = vunpack.i.h.bf16 %v7520_v30  ;;  %v7521_v35 = vunpack.i.l.bf16 %v7520_v30  ;;  %v7432_v30 = vunpack.i.h.bf16 %v9485_v29 }
0x1633   : > { %v9509_v7 = vsel %vm1647_vm6, %v5564_v52, %v7521_v35  ;;  %v9512_v53 = vsel %vm1647_vm6, %v5565_v38, %v7522_v22  ;;  %v5558_v52 = vsel %vm5557_vm8, %v5549_v36, %v7446_v46  ;;  %v5559_v38 = vsel %vm5557_vm8, %v5550_v25, %v7447_v56 }
0x1634   : > { %v7431_v22 = vunpack.i.l.bf16 %v9485_v29  ;;  %v5566_v35 = vsel %vm1647_vm6, %v5558_v52, %v7456_v32  ;;  %v7462_v29 = vunpack.i.h.bf16 %v9494_v17  ;;  %v7506_v56 = vunpack.i.l.bf16 %v9528_v40 }
0x16aa   : > { %v5168_v18 = vpop.f32.mrb[128].mxu0  ;;  %v5215_v9 = vpop.f32.mrb[136].mxu1 }
0x16ab   : > { %v7251_v6 = vpop.f32.mrb[129].mxu0  ;;  %v7257_v58 = vpop.f32.mrb[137].mxu1 }
0x16ac   : > { %v5171_v19 = vpop.f32.mrb[130].mxu0  ;;  %v5218_v13 = vpop.f32.mrb[138].mxu1  ;;  %v5575_v6 = vsel %vm5574_vm9, %v5566_v35, %v7466_v21  ;;  %v7452_v58 = vunpack.i.h.bf16 %v9492_v20 }
0x16ad   : > { %v7533_v43 = vpack.i.bf16 %v5171_v19, %v5168_v18  ;;  %v7543_v42 = vpack.i.bf16 %v5218_v13, %v5215_v9  ;;  %v7252_v37 = vpop.f32.mrb[131].mxu0  ;;  %v7258_v45 = vpop.f32.mrb[139].mxu1  ;;  %v7441_v18 = vunpack.i.l.bf16 %v9489_v2  ;;  %v5567_v9 = vsel %vm1647_vm6, %v5559_v38, %v7457_v31 }
0x16ae   : > { %v7451_v19 = vunpack.i.l.bf16 %v9492_v20  ;;  %v5576_v13 = vsel %vm5574_vm9, %v5567_v9, %v7467_v28  ;;  %v7525_v37 = vpop.permute.xlu0 %7524  ;;  %v10078_v45 = vld [vmem:[#allocation29_spill] sm:$0xff]  ;;  %v9559_v20 = vpop.permute.xlu1 %7529  ;;  %v7516_v31 = vunpack.i.l.bf16 %v9534_v8 }
0x16af   : > { %7534 = vrot.lane.b32.xlu0 %v7533_v43, %s8032_s7  ;;  %7544 = vrot.lane.b32.xlu1 %v7543_v42, %s8032_s7  ;;  %v5584_v43 = vsel %vm5583_vm10, %v5575_v6, %v7476_v26  ;;  %v7461_v42 = vunpack.i.l.bf16 %v9494_v17  ;;  %v5543_v2 = vsel %vm1458_vm5, %v10078_v45, %v7432_v30  ;;  %v10081_v26 = vld [vmem:[#allocation30_spill] sm:$0xff]  ;;  %v7527_v38 = vunpack.i.h.bf16 %v7525_v37 }
0x16b0   : > { %v5552_v17 = vsel %vm5548_vm7, %v5543_v2, %v7442_v0  ;;  %v7526_v30 = vunpack.i.l.bf16 %v7525_v37 }
0x16b1   : > { %v5561_v62 = vsel %vm5557_vm8, %v5552_v17, %v7452_v58 }
0x16b2   : > { %v5262_v34 = vpop.f32.mrb[132].mxu0 }
0x16b3   : > { %7539 = vrot.lane.b32.xlu0 %v10074_v14, %s8031_s5  ;;  %v7263_v12 = vpop.f32.mrb[133].mxu0  ;;  %7549 = vrot.lane.b32.xlu1 %v10075_v15, %s8031_s5  ;;  %v7471_v15 = vunpack.i.l.bf16 %v9496_v11 }
0x16b4   : > { %v5265_v47 = vpop.f32.mrb[134].mxu0  ;;  %v7472_v12 = vunpack.i.h.bf16 %v9496_v11  ;;  %v7486_v11 = vunpack.i.l.bf16 %v9524_v10 }
0x16b5   : > { %v7553_v39 = vpack.i.bf16 %v5265_v47, %v5262_v34  ;;  %v7264_v49 = vpop.f32.mrb[135].mxu0  ;;  %v10079_v34 = vld [vmem:[#allocation28_spill] sm:$0xff]  ;;  %v5585_v47 = vsel %vm5583_vm10, %v5576_v13, %v7477_v61 }
0x16b6   : > { %v5542_v14 = vsel %vm1458_vm5, %v10079_v34, %v7431_v22  ;;  %v5544_v52 = vsel %vm1458_vm5, %v10081_v26, %v7486_v11 }
0x16b7   : > { %7554 = vrot.lane.b32.xlu0 %v7553_v39, %s8032_s7  ;;  %v7487_v39 = vunpack.i.h.bf16 %v9524_v10  ;;  %v5551_v49 = vsel %vm5548_vm7, %v5542_v14, %v7441_v18  ;;  %v7507_v10 = vunpack.i.h.bf16 %v9528_v40  ;;  %v10080_v40 = vld [vmem:[#allocation31_spill] sm:$0xff]  ;;  %v5553_v22 = vsel %vm5548_vm7, %v5544_v52, %v7496_v33  ;;  %v7897_v33 = vld [vmem:[#allocation2 + $0x10] sm:$0xff] }
0x16b8   : > { %v5560_v50 = vsel %vm5557_vm8, %v5551_v49, %v7451_v19  ;;  %v5562_v8 = vsel %vm5557_vm8, %v5553_v22, %v7506_v56  ;;  %v7900_v56 = vld [vmem:[#allocation2 + $0x18] sm:$0xff] }
0x16b9   : > { %v5545_v28 = vsel %vm1458_vm5, %v10080_v40, %v7487_v39  ;;  %v5570_v9 = vsel %vm1647_vm6, %v5562_v8, %v7516_v31  ;;  %v7902_v40 = vld [vmem:[#allocation2 + $0x20] sm:$0xff] }
0x16ba   : > { %v5579_v19 = vsel %vm5574_vm9, %v5570_v9, %v7526_v30 }
0x16e7   : > { %v5309_v41 = vpop.f32.mrb[140].mxu1 }
0x16e8   : > { %v7269_v24 = vpop.f32.mrb[141].mxu1 }
0x16e9   : > { %v5312_v63 = vpop.f32.mrb[142].mxu1  ;;  %v7481_v24 = vunpack.i.l.bf16 %v9498_v3 }
0x16ea   : > { %v7558_v23 = vpack.i.bf16 %v5312_v63, %v5309_v41  ;;  %v7270_v55 = vpop.f32.mrb[143].mxu1  ;;  %v7482_v41 = vunpack.i.h.bf16 %v9498_v3  ;;  %v7497_v63 = vunpack.i.h.bf16 %v9526_v16 }
0x16eb   : > { %v5569_v55 = vsel %vm1647_vm6, %v5561_v62, %v7462_v29 }
0x16ec   : > { %7559 = vrot.lane.b32.xlu1 %v7558_v23, %s8032_s7  ;;  %v5568_v23 = vsel %vm1647_vm6, %v5560_v50, %v7461_v42  ;;  %v5578_v51 = vsel %vm5574_vm9, %v5569_v55, %v7472_v12  ;;  %v5554_v35 = vsel %vm5548_vm7, %v5545_v28, %v7497_v63  ;;  %v7532_v12 = vunpack.i.h.bf16 %v9559_v20 }
0x16ed   : > { %v5577_v4 = vsel %vm5574_vm9, %v5568_v23, %v7471_v15  ;;  %v5587_v32 = vsel %vm5583_vm10, %v5578_v51, %v7482_v41  ;;  %v5563_v18 = vsel %vm5557_vm8, %v5554_v35, %v7507_v10  ;;  %v7531_v15 = vunpack.i.l.bf16 %v9559_v20  ;;  %v7898_v51 = vld [vmem:[#allocation2] sm:$0xff] }
0x16ee   : > { %v5586_v46 = vsel %vm5583_vm10, %v5577_v4, %v7481_v24  ;;  %v5571_v6 = vsel %vm1647_vm6, %v5563_v18, %v7517_v1  ;;  %v5582_v50 = vsel %vm5574_vm9, %v9512_v53, %v7532_v12 }
0x16ef   : > { %v5580_v13 = vsel %vm5574_vm9, %v5571_v6, %v7527_v38  ;;  %v5581_v17 = vsel %vm5574_vm9, %v9509_v7, %v7531_v15  ;;  %v6638_v7 = vld [vmem:[%s10083_s23] ss:$0 sm:$0xff]  ;;  %v7903_v38 = vld [vmem:[#allocation2 + $0x38] sm:$0xff] }
0x1721   : > { %v7535_v60 = vpop.permute.xlu0 %7534  ;;  %v7545_v54 = vpop.permute.xlu1 %7544 }
0x1722   : > { %v7537_v57 = vunpack.i.h.bf16 %v7535_v60  ;;  %v7536_v44 = vunpack.i.l.bf16 %v7535_v60  ;;  %v7547_v3 = vunpack.i.h.bf16 %v7545_v54  ;;  %v7546_v48 = vunpack.i.l.bf16 %v7545_v54 }
0x1724   : > { %v5594_v16 = vsel %vm5592_vm11, %v5585_v47, %v7537_v57  ;;  %v5593_v27 = vsel %vm5592_vm11, %v5584_v43, %v7536_v44  ;;  %v5596_v5 = vsel %vm5592_vm11, %v5587_v32, %v7547_v3  ;;  %v5595_v59 = vsel %vm5592_vm11, %v5586_v46, %v7546_v48  ;;  %v7899_v3 = vld [vmem:[#allocation2 + $0x8] sm:$0xff] }
0x1725   : > { %v5601_v21 = vpack.c.bf16 %v5594_v16, %v5593_v27  ;;  %v5602_v36 = vpack.c.bf16 %v5596_v5, %v5595_v59  ;;  %v7540_v25 = vpop.permute.xlu0 %7539  ;;  %v7550_v14 = vpop.permute.xlu1 %7549 }
0x1726   : > { %v7542_v61 = vunpack.i.h.bf16 %v7540_v25  ;;  %v7541_v0 = vunpack.i.l.bf16 %v7540_v25  ;;  %v7552_v47 = vunpack.i.h.bf16 %v7550_v14  ;;  %v7551_v39 = vunpack.i.l.bf16 %v7550_v14 }
0x1727   : > { %7275 = vmatprep.mubr.msk.bf16.mxu0 %vm1051_vm3, %v5601_v21  ;;  %v7901_v21 = vld [vmem:[#allocation2 + $0x30] sm:$0xff] }
0x1728   : > { %7276 = vmatmul.mubr.msk.bf16.vlgmr.msra.gmra.mrb[136].mxu0 %vm1051_vm3, %v5602_v36  ;;  %v5589_v42 = vsel %vm5583_vm10, %v5580_v13, %v7542_v61  ;;  %v5588_v37 = vsel %vm5583_vm10, %v5579_v19, %v7541_v0  ;;  %v5591_v24 = vsel %vm5583_vm10, %v5582_v50, %v7552_v47  ;;  %v5590_v11 = vsel %vm5583_vm10, %v5581_v17, %v7551_v39  ;;  %v7904_v61 = vld [vmem:[#allocation2 + $0x28] sm:$0xff] }
0x1729   : > { %v7555_v58 = vpop.permute.xlu0 %7554 }
0x172a   : > { %v7557_v43 = vunpack.i.h.bf16 %v7555_v58  ;;  %v7556_v29 = vunpack.i.l.bf16 %v7555_v58 }
0x172c   : > { %v5598_v45 = vsel %vm5592_vm11, %v5589_v42, %v7557_v43  ;;  %v5597_v2 = vsel %vm5592_vm11, %v5588_v37, %v7556_v29 }
0x172d   : > { %v5603_v34 = vpack.c.bf16 %v5598_v45, %v5597_v2 }
0x172f   : > { %7279 = vmatprep.mubr.msk.bf16.mxu0 %vm1051_vm3, %v5603_v34 }
0x175e   : > { %v7560_v49 = vpop.permute.xlu1 %7559 }
0x175f   : > { %v7562_v62 = vunpack.i.h.bf16 %v7560_v49  ;;  %v7561_v41 = vunpack.i.l.bf16 %v7560_v49 }
0x1761   : > { %v5600_v63 = vsel %vm5592_vm11, %v5591_v24, %v7562_v62  ;;  %v5599_v23 = vsel %vm5592_vm11, %v5590_v11, %v7561_v41 }
0x1762   : > { %v5604_v20 = vpack.c.bf16 %v5600_v63, %v5599_v23  ;;  %v7571_v63 = vld [vmem:[%s8288_s9] sm:$0xff]   ;;  %v7572_v23 = vld [vmem:[%s8288_s9 + $0x8] sm:$0xff]  }
0x1763   : > { %7283 = vmatprep.subr.bf16.mxu1 %v7571_v63 }
0x1764   : > { %7280 = vmatmul.mubr.msk.bf16.gmra.mrb[140].mxu0 %vm1051_vm3, %v5604_v20  ;;  %7284 = vmatpush3.bf16.msra.mxu1 %v7571_v63 }
0x1765   : > { %7285 = vmatprep.subr.bf16.mxu1 %v7572_v23 }
0x1768   : > { %7286 = vmatpush3.bf16.msra.mxu1 %v7572_v23 }
0x17fb   : > { %v7277_v55 = vpop.f32.mrb[136].mxu0 }
0x17fc   : > { %v5663_v53 = vpop.f32.mrb[137].mxu0  ;;  %v5696_v4 = vadd.f32 %v7897_v33, %v7277_v55 }
0x17fd   : > { %v5694_v60 = vadd.f32 %v7898_v51, %v5663_v53  ;;  %v7278_v54 = vpop.f32.mrb[138].mxu0 }
0x17fe   : > { %v5666_v57 = vpop.f32.mrb[139].mxu0  ;;  %v9623_v10 = vadd.f32 %v6638_v7, %v5696_v4  ;;  %v5697_v46 = vadd.f32 %v7900_v56, %v7278_v54 }
0x17ff   : > { %v9621_v44 = vadd.f32 %v6638_v7, %v5694_v60  ;;  %v5695_v48 = vadd.f32 %v7899_v3, %v5666_v57 }
0x1800   : > { %v9631_v5 = vadd.f32 %v6638_v7, %v5697_v46  ;;  %v5722_v59 = vsel %vm1051_vm3, %v9623_v10, 0.0 }
0x1801   : > { %v9625_v32 = vadd.f32 %v6638_v7, %v5695_v48  ;;  %v5716_v16 = vsel %vm1051_vm3, %v9621_v44, 0.0 }
0x1802   : > { %5717 = vadd.xlane.f32.xlu0 %v5716_v16  ;;  %v5725_v1 = vsel %vm1051_vm3, %v9631_v5, 0.0 }
0x1803   : > { %v5719_v27 = vsel %vm1051_vm3, %v9625_v32, 0.0 }
0x1804   : > { %5720 = vadd.xlane.f32.xlu1 %v5719_v27 }
0x1806   : > { %5723 = vadd.xlane.f32.xlu0 %v5722_v59 }
0x180a   : > { %5726 = vadd.xlane.f32.xlu0 %v5725_v1 }
0x1837   : > { %v7281_v31 = vpop.f32.mrb[140].mxu0 }
0x1838   : > { %v5700_v36 = vadd.f32 %v7901_v21, %v7281_v31  ;;  %v5679_v25 = vpop.f32.mrb[141].mxu0 }
0x1839   : > { %v5698_v28 = vadd.f32 %v7902_v40, %v5679_v25  ;;  %v7282_v26 = vpop.f32.mrb[142].mxu0 }
0x183a   : > { %v9637_v52 = vadd.f32 %v6638_v7, %v5700_v36  ;;  %v5701_v30 = vadd.f32 %v7903_v38, %v7282_v26  ;;  %v5682_v22 = vpop.f32.mrb[143].mxu0 }
0x183b   : > { %v9639_v35 = vadd.f32 %v6638_v7, %v5698_v28  ;;  %v5699_v0 = vadd.f32 %v7904_v61, %v5682_v22 }
0x183c   : > { %v9641_v8 = vadd.f32 %v6638_v7, %v5701_v30  ;;  %v5734_v58 = vsel %vm1051_vm3, %v9637_v52, 0.0 }
0x183d   : > { %v9643_v18 = vadd.f32 %v6638_v7, %v5699_v0  ;;  %v5728_v9 = vsel %vm1051_vm3, %v9639_v35, 0.0 }
0x183e   : > { %5729 = vadd.xlane.f32.xlu0 %v5728_v9  ;;  %v5737_v19 = vsel %vm1051_vm3, %v9641_v8, 0.0 }
0x183f   : > { %v5731_v6 = vsel %vm1051_vm3, %v9643_v18, 0.0 }
0x1840   : > { %5732 = vadd.xlane.f32.xlu1 %v5731_v6  ;;  %v1027_v6 = vld [vmem:[%s8283_s27] sm:$0x3] }
0x1842   : > { %5735 = vadd.xlane.f32.xlu0 %v5734_v58 }
0x1844   : > { %5738 = vadd.xlane.f32.xlu1 %v5737_v19  ;;  %v10084_v19 = vld [vmem:[#allocation24_spill] sm:$0xff] }
0x188f   : > { %v5718_v13 = vpop.xlane.xlu0 %5717 }
0x1890   : > { %v5740_v43 = vmul.f32 0.03125, %v5718_v13  ;;  %v5823_v13 = vrot.slane %v1027_v6, %v10084_v19 }
0x1891   : > { %v5721_v29 = vpop.xlane.xlu1 %5720 }
0x1892   : > { %v9654_v42 = vsub.f32 %v9621_v44, %v5740_v43  ;;  %v5741_v37 = vmul.f32 0.03125, %v5721_v29 }
0x1893   : > { %v5724_v45 = vpop.xlane.xlu0 %5723 }
0x1894   : > { %v9657_v2 = vsub.f32 %v9625_v32, %v5741_v37  ;;  %v5742_v34 = vmul.f32 0.03125, %v5724_v45  ;;  %v5756_v14 = vmul.f32 %v9654_v42, %v9654_v42 }
0x1896   : > { %v9662_v12 = vsub.f32 %v9623_v10, %v5742_v34  ;;  %v5764_v15 = vsel %vm1051_vm3, %v5756_v14, 0.0  ;;  %v5757_v47 = vmul.f32 %v9657_v2, %v9657_v2  ;;  %v10085_v14 = vld [vmem:[#allocation25_spill] sm:$0xff] }
0x1897   : > { %v5727_v39 = vpop.xlane.xlu0 %5726  ;;  %5765 = vadd.xlane.f32.xlu0 %v5764_v15  ;;  %v5835_v15 = vrot.slane %v1027_v6, %v10085_v14  ;;  %v7574_v6 = vld [vmem:[%s8302_s16 + $0x8] sm:$0xff]  }
0x1898   : > { %v5743_v49 = vmul.f32 0.03125, %v5727_v39  ;;  %v5767_v17 = vsel %vm1051_vm3, %v5757_v47, 0.0  ;;  %v5758_v50 = vmul.f32 %v9662_v12, %v9662_v12 }
0x1899   : > { %5768 = vadd.xlane.f32.xlu1 %v5767_v17 }
0x189a   : > { %v9671_v62 = vsub.f32 %v9631_v5, %v5743_v49  ;;  %v5770_v41 = vsel %vm1051_vm3, %v5758_v50, 0.0 }
0x189b   : > { %5771 = vadd.xlane.f32.xlu0 %v5770_v41 }
0x189c   : > { %v5759_v24 = vmul.f32 %v9671_v62, %v9671_v62 }
0x189e   : > { %v5773_v11 = vsel %vm1051_vm3, %v5759_v24, 0.0 }
0x189f   : > { %5774 = vadd.xlane.f32.xlu1 %v5773_v11 }
0x18cb   : > { %v5730_v20 = vpop.xlane.xlu0 %5729 }
0x18cc   : > { %v5744_v55 = vmul.f32 0.03125, %v5730_v20 }
0x18cd   : > { %v5733_v7 = vpop.xlane.xlu1 %5732 }
0x18ce   : > { %v9680_v53 = vsub.f32 %v9639_v35, %v5744_v55  ;;  %v5745_v33 = vmul.f32 0.03125, %v5733_v7 }
0x18cf   : > { %v5736_v4 = vpop.xlane.xlu0 %5735 }
0x18d0   : > { %v9683_v51 = vsub.f32 %v9643_v18, %v5745_v33  ;;  %v5746_v60 = vmul.f32 0.03125, %v5736_v4  ;;  %v5760_v54 = vmul.f32 %v9680_v53, %v9680_v53 }
0x18d1   : > { %v5739_v57 = vpop.xlane.xlu1 %5738 }
0x18d2   : > { %v9688_v3 = vsub.f32 %v9637_v52, %v5746_v60  ;;  %v5747_v48 = vmul.f32 0.03125, %v5739_v57  ;;  %v5776_v56 = vsel %vm1051_vm3, %v5760_v54, 0.0  ;;  %v5761_v46 = vmul.f32 %v9683_v51, %v9683_v51 }
0x18d3   : > { %5777 = vadd.xlane.f32.xlu0 %v5776_v56 }
0x18d4   : > { %v9694_v16 = vsub.f32 %v9641_v8, %v5747_v48  ;;  %v5779_v27 = vsel %vm1051_vm3, %v5761_v46, 0.0  ;;  %v5762_v59 = vmul.f32 %v9688_v3, %v9688_v3 }
0x18d5   : > { %5780 = vadd.xlane.f32.xlu1 %v5779_v27 }
0x18d6   : > { %v5782_v1 = vsel %vm1051_vm3, %v5762_v59, 0.0  ;;  %v5763_v31 = vmul.f32 %v9694_v16, %v9694_v16 }
0x18d7   : > { %5783 = vadd.xlane.f32.xlu0 %v5782_v1 }
0x18d8   : > { %v5785_v21 = vsel %vm1051_vm3, %v5763_v31, 0.0 }
0x18d9   : > { %5786 = vadd.xlane.f32.xlu1 %v5785_v21 }
0x1924   : > { %v5766_v36 = vpop.xlane.xlu0 %5765 }
0x1925   : > { %v5788_v25 = vmul.f32 0.03125, %v5766_v36 }
0x1926   : > { %v5769_v40 = vpop.xlane.xlu1 %5768 }
0x1927   : > { %v5796_v28 = vadd.f32 1e-06, %v5788_v25  ;;  %v5789_v26 = vmul.f32 0.03125, %v5769_v40 }
0x1928   : > { %v5772_v38 = vpop.xlane.xlu0 %5771 }
0x1929   : > { %7849 = vrsqrt.f32 %v5796_v28  ;;  %v5797_v30 = vadd.f32 1e-06, %v5789_v26  ;;  %v5790_v22 = vmul.f32 0.03125, %v5772_v38 }
0x192b   : > { %7851 = vrsqrt.f32 %v5797_v30  ;;  %v5798_v61 = vadd.f32 1e-06, %v5790_v22 }
0x192c   : > { %v5775_v0 = vpop.xlane.xlu1 %5774 }
0x192d   : > { %7853 = vrsqrt.f32 %v5798_v61  ;;  %v5791_v9 = vmul.f32 0.03125, %v5775_v0 }
0x192f   : > { %v5799_v58 = vadd.f32 1e-06, %v5791_v9 }
0x1931   : > { %7855 = vrsqrt.f32 %v5799_v58  ;;  %v7576_v58 = vld [vmem:[%s8302_s16 + $0x18] sm:$0xff]  }
0x1933   : > { %v7850_v43 = vpop.eup %7849 }
0x1934   : > { %v5812_v29 = vmul.f32 %v7850_v43, %v9654_v42 }
0x1935   : > { %v7852_v37 = vpop.eup %7851 }
0x1936   : > { %v5813_v45 = vmul.f32 %v7852_v37, %v9657_v2  ;;  %v5824_v34 = vmul.f32 %v5823_v13, %v5812_v29 }
0x1937   : > { %v7854_v47 = vpop.eup %7853 }
0x1938   : > { %v5814_v39 = vmul.f32 %v7854_v47, %v9662_v12  ;;  %v5825_v49 = vmul.f32 %v5823_v13, %v5813_v45  ;;  %v5836_v17 = vadd.f32 %v5835_v15, %v5824_v34 }
0x193a   : > { %v5837_v50 = vadd.f32 %v5835_v15, %v5825_v49  ;;  %v5826_v24 = vmul.f32 %v5823_v13, %v5814_v39 }
0x193b   : > { %v7856_v41 = vpop.eup %7855 }
0x193c   : > { %v5815_v11 = vmul.f32 %v7856_v41, %v9671_v62  ;;  %v5844_v63 = vpack.c.bf16 %v5837_v50, %v5836_v17  ;;  %v5838_v42 = vadd.f32 %v5835_v15, %v5826_v24 }
0x193e   : > { %v5827_v23 = vmul.f32 %v5823_v13, %v5815_v11  ;;  %7287 = vmatprep.mubr.msk.bf16.mxu1 %vm1051_vm3, %v5844_v63 }
0x1940   : > { %v5839_v20 = vadd.f32 %v5835_v15, %v5827_v23 }
0x1942   : > { %v5845_v2 = vpack.c.bf16 %v5839_v20, %v5838_v42 }
0x1944   : > { %7288 = vmatmul.mubr.msk.bf16.vlgmr.msra.gmra.mrb[144].mxu1 %vm1051_vm3, %v5845_v2 }
0x1960   : > { %v5778_v55 = vpop.xlane.xlu0 %5777 }
0x1961   : > { %v5792_v7 = vmul.f32 0.03125, %v5778_v55 }
0x1962   : > { %v5781_v33 = vpop.xlane.xlu1 %5780 }
0x1963   : > { %v5800_v12 = vadd.f32 1e-06, %v5792_v7  ;;  %v5793_v4 = vmul.f32 0.03125, %v5781_v33 }
0x1964   : > { %v5784_v60 = vpop.xlane.xlu0 %5783 }
0x1965   : > { %7857 = vrsqrt.f32 %v5800_v12  ;;  %v5801_v54 = vadd.f32 1e-06, %v5793_v4  ;;  %v5794_v57 = vmul.f32 0.03125, %v5784_v60 }
0x1966   : > { %v5787_v48 = vpop.xlane.xlu1 %5786 }
0x1967   : > { %7859 = vrsqrt.f32 %v5801_v54  ;;  %v5802_v62 = vadd.f32 1e-06, %v5794_v57  ;;  %v5795_v56 = vmul.f32 0.03125, %v5787_v48 }
0x1969   : > { %7861 = vrsqrt.f32 %v5802_v62  ;;  %v5803_v46 = vadd.f32 1e-06, %v5795_v56 }
0x196b   : > { %7863 = vrsqrt.f32 %v5803_v46 }
0x196f   : > { %v7858_v27 = vpop.eup %7857 }
0x1970   : > { %v5816_v59 = vmul.f32 %v7858_v27, %v9680_v53 }
0x1971   : > { %v7860_v1 = vpop.eup %7859 }
0x1972   : > { %v5817_v31 = vmul.f32 %v7860_v1, %v9683_v51  ;;  %v5828_v21 = vmul.f32 %v5823_v13, %v5816_v59 }
0x1973   : > { %v7862_v36 = vpop.eup %7861 }
0x1974   : > { %v5818_v25 = vmul.f32 %v7862_v36, %v9688_v3  ;;  %v5829_v40 = vmul.f32 %v5823_v13, %v5817_v31  ;;  %v5840_v38 = vadd.f32 %v5835_v15, %v5828_v21  ;;  %v7573_v3 = vld [vmem:[%s8302_s16] sm:$0xff]  }
0x1975   : > { %v7864_v28 = vpop.eup %7863  ;;  %7295 = vmatprep.subr.bf16.mxu0 %v7573_v3 }
0x1976   : > { %v5819_v26 = vmul.f32 %v7864_v28, %v9694_v16  ;;  %v5841_v30 = vadd.f32 %v5835_v15, %v5829_v40  ;;  %v5830_v22 = vmul.f32 %v5823_v13, %v5818_v25  ;;  %7296 = vmatpush3.bf16.msra.mxu0 %v7573_v3  ;;  %v7575_v16 = vld [vmem:[%s8302_s16 + $0x10] sm:$0xff]  }
0x1977   : > { %7297 = vmatprep.subr.bf16.mxu0 %v7574_v6 }
0x1978   : > { %v5846_v61 = vpack.c.bf16 %v5841_v30, %v5840_v38  ;;  %v5831_v53 = vmul.f32 %v5823_v13, %v5819_v26  ;;  %v5842_v0 = vadd.f32 %v5835_v15, %v5830_v22  ;;  %v6639_v13 = vld [vmem:[%s870_s2] ss:$0 sm:$0xff] }
0x197a   : > { %7291 = vmatprep.mubr.msk.bf16.mxu1 %vm1051_vm3, %v5846_v61  ;;  %v5843_v51 = vadd.f32 %v5835_v15, %v5831_v53  ;;  %7298 = vmatpush3.bf16.msra.mxu0 %v7574_v6 }
0x197b   : > { %7299 = vmatprep.subr.bf16.mxu0 %v7575_v16 }
0x197c   : > { %v5847_v9 = vpack.c.bf16 %v5843_v51, %v5842_v0 }
0x197e   : > { %7292 = vmatmul.mubr.msk.bf16.gmra.mrb[148].mxu1 %vm1051_vm3, %v5847_v9  ;;  %7300 = vmatpush3.bf16.msra.mxu0 %v7575_v16 }
0x197f   : > { %7301 = vmatprep.subr.bf16.mxu0 %v7576_v58 }
0x1982   : > { %7302 = vmatpush3.bf16.msra.mxu0 %v7576_v58 }
0x1a17   : > { %v7289_v43 = vpop.f32.mrb[144].mxu1 }
0x1a18   : > { %v5921_v29 = vadd.f32 %v7289_v43, %v6639_v13  ;;  %v5912_v37 = vpop.f32.mrb[145].mxu1 }
0x1a19   : > { %v5913_v45 = vadd.f32 %v6639_v13, %v5912_v37  ;;  %v7290_v34 = vpop.f32.mrb[146].mxu1 }
0x1a1a   : > { %v5953_v15 = vmul.f32 0.70710677, %v5921_v29  ;;  %v5924_v47 = vadd.f32 %v7290_v34, %v6639_v13  ;;  %v5915_v39 = vpop.f32.mrb[147].mxu1  ;;  %v5945_v2 = vmul.f32 0.5, %v5921_v29 }
0x1a1b   : > { %v5951_v49 = vmul.f32 0.70710677, %v5913_v45  ;;  %v5916_v17 = vadd.f32 %v6639_v13, %v5915_v39  ;;  %v5943_v33 = vmul.f32 0.5, %v5913_v45 }
0x1a1c   : > { %7865 = verf.f32 %v5953_v15  ;;  %v5954_v50 = vmul.f32 0.70710677, %v5924_v47  ;;  %v5946_v55 = vmul.f32 0.5, %v5924_v47  ;;  %v6654_v47 = vld [vmem:[%s878_s1] ss:$0 sm:$0xff] }
0x1a1d   : > { %7867 = verf.f32 %v5951_v49  ;;  %v5952_v41 = vmul.f32 0.70710677, %v5916_v17  ;;  %v5944_v12 = vmul.f32 0.5, %v5916_v17 }
0x1a1e   : > { %7869 = verf.f32 %v5954_v50 }
0x1a1f   : > { %7871 = verf.f32 %v5952_v41 }
0x1a26   : > { %v7866_v24 = vpop.eup %7865 }
0x1a27   : > { %v7868_v11 = vpop.eup %7867  ;;  %v5969_v63 = vadd.f32 1.0, %v7866_v24 }
0x1a28   : > { %v7870_v23 = vpop.eup %7869  ;;  %v5967_v42 = vadd.f32 1.0, %v7868_v11 }
0x1a29   : > { %v7872_v20 = vpop.eup %7871  ;;  %v5970_v7 = vadd.f32 1.0, %v7870_v23  ;;  %v5977_v60 = vmul.f32 %v5969_v63, %v5945_v2 }
0x1a2a   : > { %v5968_v4 = vadd.f32 1.0, %v7872_v20  ;;  %v5975_v57 = vmul.f32 %v5967_v42, %v5943_v33 }
0x1a2b   : > { %v5978_v54 = vmul.f32 %v5970_v7, %v5946_v55 }
0x1a2c   : > { %v5976_v48 = vmul.f32 %v5968_v4, %v5944_v12 }
0x1a2d   : > { %v5984_v62 = vpack.c.bf16 %v5978_v54, %v5977_v60 }
0x1a2e   : > { %v5983_v56 = vpack.c.bf16 %v5976_v48, %v5975_v57 }
0x1a30   : > { %7303 = vmatprep.mubr.msk.bf16.mxu0 %vm6011_vm12, %v5983_v56 }
0x1a31   : > { %7304 = vmatmul.mubr.msk.bf16.vlgmr.msra.gmra.mrb[144].mxu0 %vm6011_vm12, %v5984_v62 }
0x1a51   : > { %v7293_v46 = vpop.f32.mrb[148].mxu1 }
0x1a52   : > { %v5937_v27 = vadd.f32 %v7293_v46, %v6639_v13  ;;  %v5928_v59 = vpop.f32.mrb[149].mxu1 }
0x1a53   : > { %v5929_v1 = vadd.f32 %v6639_v13, %v5928_v59  ;;  %v7294_v31 = vpop.f32.mrb[150].mxu1 }
0x1a54   : > { %v5957_v21 = vmul.f32 0.70710677, %v5937_v27  ;;  %v5940_v36 = vadd.f32 %v7294_v31, %v6639_v13  ;;  %v5931_v25 = vpop.f32.mrb[151].mxu1  ;;  %v5949_v9 = vmul.f32 0.5, %v5937_v27 }
0x1a55   : > { %v5955_v40 = vmul.f32 0.70710677, %v5929_v1  ;;  %v5932_v28 = vadd.f32 %v6639_v13, %v5931_v25  ;;  %v5947_v16 = vmul.f32 0.5, %v5929_v1 }
0x1a56   : > { %7873 = verf.f32 %v5957_v21  ;;  %v5958_v26 = vmul.f32 0.70710677, %v5940_v36  ;;  %v5950_v3 = vmul.f32 0.5, %v5940_v36 }
0x1a57   : > { %7875 = verf.f32 %v5955_v40  ;;  %v5956_v38 = vmul.f32 0.70710677, %v5932_v28  ;;  %v5948_v58 = vmul.f32 0.5, %v5932_v28 }
0x1a58   : > { %7877 = verf.f32 %v5958_v26 }
0x1a59   : > { %7879 = verf.f32 %v5956_v38 }
0x1a60   : > { %v7874_v30 = vpop.eup %7873 }
0x1a61   : > { %v7876_v22 = vpop.eup %7875  ;;  %v5973_v61 = vadd.f32 1.0, %v7874_v30 }
0x1a62   : > { %v7878_v53 = vpop.eup %7877  ;;  %v5971_v0 = vadd.f32 1.0, %v7876_v22 }
0x1a63   : > { %v7880_v51 = vpop.eup %7879  ;;  %v5974_v6 = vadd.f32 1.0, %v7878_v53  ;;  %v5981_v13 = vmul.f32 %v5973_v61, %v5949_v9 }
0x1a64   : > { %v5972_v43 = vadd.f32 1.0, %v7880_v51  ;;  %v5979_v37 = vmul.f32 %v5971_v0, %v5947_v16 }
0x1a65   : > { %v5982_v29 = vmul.f32 %v5974_v6, %v5950_v3 }
0x1a66   : > { %v5980_v45 = vmul.f32 %v5972_v43, %v5948_v58 }
0x1a67   : > { %v5986_v34 = vpack.c.bf16 %v5982_v29, %v5981_v13 }
0x1a68   : > { %v5985_v15 = vpack.c.bf16 %v5980_v45, %v5979_v37 }
0x1a6a   : > { %7307 = vmatprep.mubr.msk.bf16.mxu0 %vm6011_vm12, %v5985_v15 }
0x1a6b   : > { %7308 = vmatmul.mubr.msk.bf16.gmra.mrb[148].mxu0 %vm6011_vm12, %v5986_v34 }
0x1b04   : > { %v7305_v39 = vpop.f32.mrb[144].mxu0 }
0x1b05   : > { %v6091_v49 = vadd.f32 %v7305_v39, %v9623_v10  ;;  %v6058_v17 = vpop.f32.mrb[145].mxu0 }
0x1b06   : > { %v6089_v50 = vadd.f32 %v6058_v17, %v9621_v44  ;;  %v7306_v41 = vpop.f32.mrb[146].mxu0 }
0x1b07   : > { %v6105_v24 = vadd.f32 %v6654_v47, %v6091_v49  ;;  %v6092_v11 = vadd.f32 %v7306_v41, %v9631_v5  ;;  %v6061_v63 = vpop.f32.mrb[147].mxu0 }
0x1b08   : > { %v6090_v23 = vadd.f32 %v6061_v63, %v9625_v32  ;;  %v6103_v42 = vadd.f32 %v6654_v47, %v6089_v50 }
0x1b09   : > { %v6106_v20 = vadd.f32 %v6654_v47, %v6092_v11  ;;  %v6117_v2 = vsel %vm1051_vm3, %v6105_v24, 0.0 }
0x1b0a   : > { %6118 = vadd.xlane.f32.xlu0 %v6117_v2  ;;  %v6104_v55 = vadd.f32 %v6654_v47, %v6090_v23  ;;  %v6111_v10 = vsel %vm1051_vm3, %v6103_v42, 0.0 }
0x1b0b   : > { %v6120_v7 = vsel %vm1051_vm3, %v6106_v20, 0.0 }
0x1b0c   : > { %6121 = vadd.xlane.f32.xlu1 %v6120_v7  ;;  %v6114_v44 = vsel %vm1051_vm3, %v6104_v55, 0.0 }
0x1b0e   : > { %6112 = vadd.xlane.f32.xlu0 %v6111_v10 }
0x1b10   : > { %6115 = vadd.xlane.f32.xlu1 %v6114_v44 }
0x1b3e   : > { %v7309_v33 = vpop.f32.mrb[148].mxu0 }
0x1b3f   : > { %v6074_v5 = vpop.f32.mrb[149].mxu0  ;;  %v6095_v12 = vadd.f32 %v7309_v33, %v9637_v52 }
0x1b40   : > { %v6093_v32 = vadd.f32 %v6074_v5, %v9639_v35  ;;  %v7310_v4 = vpop.f32.mrb[150].mxu0 }
0x1b41   : > { %v6096_v60 = vadd.f32 %v7310_v4, %v9641_v8  ;;  %v6077_v54 = vpop.f32.mrb[151].mxu0  ;;  %v6109_v56 = vadd.f32 %v6654_v47, %v6095_v12 }
0x1b42   : > { %v6107_v57 = vadd.f32 %v6654_v47, %v6093_v32  ;;  %v6094_v48 = vadd.f32 %v6077_v54, %v9643_v18  ;;  %v1050_v54 = vld [vmem:[%s10086_s24] sm:$0x3] }
0x1b43   : > { %v6110_v62 = vadd.f32 %v6654_v47, %v6096_v60  ;;  %v6129_v52 = vsel %vm1051_vm3, %v6109_v56, 0.0 }
0x1b44   : > { %v6108_v46 = vadd.f32 %v6654_v47, %v6094_v48  ;;  %v6123_v27 = vsel %vm1051_vm3, %v6107_v57, 0.0 }
0x1b45   : > { %6124 = vadd.xlane.f32.xlu0 %v6123_v27  ;;  %v6132_v35 = vsel %vm1051_vm3, %v6110_v62, 0.0 }
0x1b46   : > { %v6126_v59 = vsel %vm1051_vm3, %v6108_v46, 0.0 }
0x1b47   : > { %6127 = vadd.xlane.f32.xlu1 %v6126_v59 }
0x1b49   : > { %6130 = vadd.xlane.f32.xlu0 %v6129_v52 }
0x1b4b   : > { %6133 = vadd.xlane.f32.xlu1 %v6132_v35 }
0x1b97   : > { %v6119_v8 = vpop.xlane.xlu0 %6118 }
0x1b98   : > { %v6137_v1 = vmul.f32 0.03125, %v6119_v8 }
0x1b99   : > { %v6122_v31 = vpop.xlane.xlu1 %6121 }
0x1b9a   : > { %v9752_v21 = vsub.f32 %v6105_v24, %v6137_v1  ;;  %v6138_v18 = vmul.f32 0.03125, %v6122_v31 }
0x1b9b   : > { %v6113_v36 = vpop.xlane.xlu0 %6112 }
0x1b9c   : > { %v9754_v25 = vsub.f32 %v6106_v20, %v6138_v18  ;;  %v6135_v40 = vmul.f32 0.03125, %v6113_v36  ;;  %v6153_v28 = vmul.f32 %v9752_v21, %v9752_v21 }
0x1b9d   : > { %v6116_v26 = vpop.xlane.xlu1 %6115 }
0x1b9e   : > { %v9758_v38 = vsub.f32 %v6103_v42, %v6135_v40  ;;  %v6136_v30 = vmul.f32 0.03125, %v6116_v26  ;;  %v6165_v22 = vsel %vm1051_vm3, %v6153_v28, 0.0  ;;  %v6154_v61 = vmul.f32 %v9754_v25, %v9754_v25 }
0x1b9f   : > { %6166 = vadd.xlane.f32.xlu0 %v6165_v22 }
0x1ba0   : > { %v9763_v53 = vsub.f32 %v6104_v55, %v6136_v30  ;;  %v6168_v0 = vsel %vm1051_vm3, %v6154_v61, 0.0  ;;  %v6151_v51 = vmul.f32 %v9758_v38, %v9758_v38 }
0x1ba1   : > { %6169 = vadd.xlane.f32.xlu1 %v6168_v0 }
0x1ba2   : > { %v6159_v9 = vsel %vm1051_vm3, %v6151_v51, 0.0  ;;  %v6152_v3 = vmul.f32 %v9763_v53, %v9763_v53 }
0x1ba3   : > { %6160 = vadd.xlane.f32.xlu0 %v6159_v9 }
0x1ba4   : > { %v6162_v6 = vsel %vm1051_vm3, %v6152_v3, 0.0 }
0x1ba5   : > { %6163 = vadd.xlane.f32.xlu1 %v6162_v6 }
0x1bd2   : > { %v6125_v16 = vpop.xlane.xlu0 %6124 }
0x1bd3   : > { %v6139_v58 = vmul.f32 0.03125, %v6125_v16 }
0x1bd4   : > { %v6128_v43 = vpop.xlane.xlu1 %6127 }
0x1bd5   : > { %v9772_v13 = vsub.f32 %v6107_v57, %v6139_v58  ;;  %v6140_v29 = vmul.f32 0.03125, %v6128_v43  ;;  %v6218_v57 = vrot.slane %v1050_v54, %v10084_v19 }
0x1bd6   : > { %v6131_v37 = vpop.xlane.xlu0 %6130 }
0x1bd7   : > { %v9774_v45 = vsub.f32 %v6108_v46, %v6140_v29  ;;  %v6141_v34 = vmul.f32 0.03125, %v6131_v37  ;;  %v6155_v15 = vmul.f32 %v9772_v13, %v9772_v13 }
0x1bd8   : > { %v6134_v47 = vpop.xlane.xlu1 %6133 }
0x1bd9   : > { %v9778_v39 = vsub.f32 %v6109_v56, %v6141_v34  ;;  %v6142_v49 = vmul.f32 0.03125, %v6134_v47  ;;  %v6171_v17 = vsel %vm1051_vm3, %v6155_v15, 0.0  ;;  %v6156_v50 = vmul.f32 %v9774_v45, %v9774_v45 }
0x1bda   : > { %6172 = vadd.xlane.f32.xlu0 %v6171_v17 }
0x1bdb   : > { %v9783_v41 = vsub.f32 %v6110_v62, %v6142_v49  ;;  %v6174_v24 = vsel %vm1051_vm3, %v6156_v50, 0.0  ;;  %v6157_v11 = vmul.f32 %v9778_v39, %v9778_v39  ;;  %v6230_v62 = vrot.slane %v1050_v54, %v10085_v14 }
0x1bdc   : > { %6175 = vadd.xlane.f32.xlu1 %v6174_v24 }
0x1bdd   : > { %v6177_v63 = vsel %vm1051_vm3, %v6157_v11, 0.0  ;;  %v6158_v23 = vmul.f32 %v9783_v41, %v9783_v41 }
0x1bde   : > { %6178 = vadd.xlane.f32.xlu0 %v6177_v63 }
0x1bdf   : > { %v6180_v42 = vsel %vm1051_vm3, %v6158_v23, 0.0 }
0x1be0   : > { %6181 = vadd.xlane.f32.xlu1 %v6180_v42 }
0x1c2c   : > { %v6167_v20 = vpop.xlane.xlu0 %6166 }
0x1c2d   : > { %v6185_v2 = vmul.f32 0.03125, %v6167_v20 }
0x1c2e   : > { %v6170_v55 = vpop.xlane.xlu1 %6169 }
0x1c2f   : > { %v6193_v7 = vadd.f32 1e-06, %v6185_v2  ;;  %v6186_v10 = vmul.f32 0.03125, %v6170_v55 }
0x1c30   : > { %v6161_v44 = vpop.xlane.xlu0 %6160 }
0x1c31   : > { %7881 = vrsqrt.f32 %v6193_v7  ;;  %v6194_v33 = vadd.f32 1e-06, %v6186_v10  ;;  %v6183_v5 = vmul.f32 0.03125, %v6161_v44 }
0x1c32   : > { %v6164_v12 = vpop.xlane.xlu1 %6163 }
0x1c33   : > { %7883 = vrsqrt.f32 %v6194_v33  ;;  %v6191_v32 = vadd.f32 1e-06, %v6183_v5  ;;  %v6184_v4 = vmul.f32 0.03125, %v6164_v12 }
0x1c35   : > { %7885 = vrsqrt.f32 %v6191_v32  ;;  %v6192_v60 = vadd.f32 1e-06, %v6184_v4 }
0x1c37   : > { %7887 = vrsqrt.f32 %v6192_v60 }
0x1c3b   : > { %v7882_v48 = vpop.eup %7881 }
0x1c3c   : > { %v6209_v56 = vmul.f32 %v7882_v48, %v9752_v21 }
0x1c3d   : > { %v7884_v46 = vpop.eup %7883 }
0x1c3e   : > { %v6221_v27 = vmul.f32 %v6218_v57, %v6209_v56  ;;  %v6210_v59 = vmul.f32 %v7884_v46, %v9754_v25 }
0x1c3f   : > { %v7886_v52 = vpop.eup %7885 }
0x1c40   : > { %v6233_v35 = vadd.f32 %v6230_v62, %v6221_v27  ;;  %v6222_v8 = vmul.f32 %v6218_v57, %v6210_v59  ;;  %v6207_v1 = vmul.f32 %v7886_v52, %v9758_v38 }
0x1c41   : > { %v7888_v31 = vpop.eup %7887 }
0x1c42   : > { %6241 = vst.msk [vmem:[#allocation2 + $0x10] sm:$0xff] %vm1051_vm3, %v6233_v35  ;;  %v6234_v18 = vadd.f32 %v6230_v62, %v6222_v8  ;;  %v6219_v36 = vmul.f32 %v6218_v57, %v6207_v1  ;;  %v6208_v19 = vmul.f32 %v7888_v31, %v9763_v53  ;;  %6253 = vst.msk [vmem:[%s8305_s28 + $0x10] sm:$0xff] (!%p6655_p3), %vm1051_vm3, %v6233_v35 }
0x1c44   : > { %6242 = vst.msk [vmem:[#allocation2 + $0x18] sm:$0xff] %vm1051_vm3, %v6234_v18  ;;  %v6231_v14 = vadd.f32 %v6230_v62, %v6219_v36  ;;  %v6220_v21 = vmul.f32 %v6218_v57, %v6208_v19  ;;  %6254 = vst.msk [vmem:[%s8305_s28 + $0x18] sm:$0xff] (!%p6655_p3), %vm1051_vm3, %v6234_v18 }
0x1c46   : > { %6239 = vst.msk [vmem:[#allocation2] sm:$0xff] %vm1051_vm3, %v6231_v14  ;;  %v6232_v40 = vadd.f32 %v6230_v62, %v6220_v21  ;;  %6251 = vst.msk [vmem:[%s8305_s28] sm:$0xff] (!%p6655_p3), %vm1051_vm3, %v6231_v14 }
0x1c48   : > { %6240 = vst.msk [vmem:[#allocation2 + $0x8] sm:$0xff] %vm1051_vm3, %v6232_v40  ;;  %6252 = vst.msk [vmem:[%s8305_s28 + $0x8] sm:$0xff] (!%p6655_p3), %vm1051_vm3, %v6232_v40 }
0x1c67   : > { %v6173_v25 = vpop.xlane.xlu0 %6172 }
0x1c68   : > { %v6187_v28 = vmul.f32 0.03125, %v6173_v25 }
0x1c69   : > { %v6176_v26 = vpop.xlane.xlu1 %6175 }
0x1c6a   : > { %v6195_v38 = vadd.f32 1e-06, %v6187_v28  ;;  %v6188_v30 = vmul.f32 0.03125, %v6176_v26 }
0x1c6b   : > { %v6179_v22 = vpop.xlane.xlu0 %6178 }
0x1c6c   : > { %7889 = vrsqrt.f32 %v6195_v38  ;;  %v6196_v61 = vadd.f32 1e-06, %v6188_v30  ;;  %v6189_v0 = vmul.f32 0.03125, %v6179_v22 }
0x1c6d   : > { %v6182_v51 = vpop.xlane.xlu1 %6181 }
0x1c6e   : > { %7891 = vrsqrt.f32 %v6196_v61  ;;  %v6197_v53 = vadd.f32 1e-06, %v6189_v0  ;;  %v6190_v9 = vmul.f32 0.03125, %v6182_v51 }
0x1c70   : > { %7893 = vrsqrt.f32 %v6197_v53  ;;  %v6198_v3 = vadd.f32 1e-06, %v6190_v9 }
0x1c72   : > { %7895 = vrsqrt.f32 %v6198_v3 }
0x1c76   : > { %v7890_v6 = vpop.eup %7889 }
0x1c77   : > { %v6211_v16 = vmul.f32 %v7890_v6, %v9772_v13 }
0x1c78   : > { %v7892_v58 = vpop.eup %7891 }
0x1c79   : > { %v6223_v43 = vmul.f32 %v6218_v57, %v6211_v16  ;;  %v6212_v29 = vmul.f32 %v7892_v58, %v9774_v45 }
0x1c7a   : > { %v7894_v37 = vpop.eup %7893 }
0x1c7b   : > { %v6235_v34 = vadd.f32 %v6230_v62, %v6223_v43  ;;  %v6224_v15 = vmul.f32 %v6218_v57, %v6212_v29  ;;  %v6213_v47 = vmul.f32 %v7894_v37, %v9778_v39 }
0x1c7c   : > { %v7896_v49 = vpop.eup %7895 }
0x1c7d   : > { %6243 = vst.msk [vmem:[#allocation2 + $0x20] sm:$0xff] %vm1051_vm3, %v6235_v34  ;;  %v6236_v17 = vadd.f32 %v6230_v62, %v6224_v15  ;;  %v6225_v50 = vmul.f32 %v6218_v57, %v6213_v47  ;;  %v6214_v24 = vmul.f32 %v7896_v49, %v9783_v41  ;;  %6250 = sbr.rel (%p6655_p3) target bundleno = 7300 (0x1c84), region = 104  ;;  %6255 = vst.msk [vmem:[%s8305_s28 + $0x20] sm:$0xff] (!%p6655_p3), %vm1051_vm3, %v6235_v34 }
0x1c7f   : > { %6244 = vst.msk [vmem:[#allocation2 + $0x28] sm:$0xff] %vm1051_vm3, %v6236_v17  ;;  %v6237_v11 = vadd.f32 %v6230_v62, %v6225_v50  ;;  %v6226_v13 = vmul.f32 %v6218_v57, %v6214_v24  ;;  %6256 = vst.msk [vmem:[%s8305_s28 + $0x28] sm:$0xff] (!%p6655_p3), %vm1051_vm3, %v6236_v17 }
0x1c81   : > { %6245 = vst.msk [vmem:[#allocation2 + $0x30] sm:$0xff] %vm1051_vm3, %v6237_v11  ;;  %v6238_v63 = vadd.f32 %v6230_v62, %v6226_v13  ;;  %6257 = vst.msk [vmem:[%s8305_s28 + $0x30] sm:$0xff] (!%p6655_p3), %vm1051_vm3, %v6237_v11 }
0x1c83   : > { %6246 = vst.msk [vmem:[#allocation2 + $0x38] sm:$0xff] %vm1051_vm3, %v6238_v63  ;;  %6258 = vst.msk [vmem:[%s8305_s28 + $0x38] sm:$0xff] (!%p6655_p3), %vm1051_vm3, %v6238_v63 }
0x1c84 PF: > { %s10088_s21 = sld [smem:[#allocation10_spill]]  ;;  %s10089_s29 = sld [smem:[#allocation11_spill]] }
0x1c85   : > { %s10090_s25 = sld [smem:[#allocation7_spill]]  ;;  %s6276_s20 = sshll.u32 %s8305_s28, 4  ;;  %s9833_s20 = int_to_ptr.vmem [resolvable:$true] %s6276_s20 }
0x1c86   : > { %s10092_s12 = sld [smem:[#allocation60_spill]]  ;;  %s7905_s2 = scalar_lea.vmem %s9833_s20, 1024 }
0x1c87   : > { %p7906_p4 = scmp.ne.s32.totalorder %s9833_s20, %s7905_s2  ;;  %s8033_s28 = smov [#allocation3]  }
0x1c88   : > { %s7909_s16 = sshll.u32 %s8033_s28, 4  ;;  %s7910_s16 = int_to_ptr.vmem [resolvable:$false] %s7909_s16 }
0x1c89   : > { %p7907_p5 = pnand %p7906_p4, %p8197_p6  ;;  %s7911_s18 = scalar_lea.vmem %s7910_s16, 2048 }
0x1c8a   : > { %s6669_s4 = sshll.u32 %s10088_s21, 3  ;;  %s6659_s0 = sshll.u32 %s10089_s29, 4 }
0x1c8b   : > { %s6273_s5 = sadd.s32 %s6669_s4, %s6659_s0  ;;  %s10093_s9 = sand.u32 1, %s10090_s25  }
0x1c8c   : > { %s6660_s7 = sshll.u32 %s6273_s5, 7  ;;  %s9842_s27 = scalar_lea.sflag [#allocation4], %s10093_s9 }
0x1c8d   : > { %s9838_s23 = scalar_lea.hbm %s10092_s12, %s6660_s7  ;;  %p7908_p8 = pneg %p7907_p5 }
0x1c8e   : > { %p7912_p9 = scmp.lt.s32.totalorder %s9833_s20, %s7910_s16  ;;  %p7913_p10 = scmp.lt.s32.totalorder %s7911_s18, %s7905_s2 }
0x1c90   : > { %p7914_p11 = por %p7913_p10, %p7912_p9 }
0x1c92   : > { %p7915_p12 = pnand %p7914_p11, %p7908_p8 }
0x1c94   : > { %7918 = shalt.err (!%p7915_p12)
}
0x1c95   : > { %s7919_s1 = scalar_lea.hbm %s9838_s23, 1024  ;;  %s7923_s21 = scalar_lea.hbm %s10092_s12, 4096 }
0x1c96   : > { %p7920_p13 = scmp.ne.s32.totalorder %s9838_s23, %s7919_s1  ;;  %p7924_p2 = scmp.lt.u32.totalorder %s9838_s23, %s10092_s12 }
0x1c97   : > { %p7925_p3 = scmp.lt.u32.totalorder %s7923_s21, %s7919_s1  ;;  %p7927_p5 = scmp.lt.u32.totalorder %s7919_s1, %s9838_s23 }
0x1c98   : > { %p7921_p0 = pnand %p7920_p13, %p8197_p6 }
0x1c99   : > { %p7926_p4 = por %p7925_p3, %p7924_p2 }
0x1c9a   : > { %p7922_p1 = pneg %p7921_p0 }
0x1c9b   : > { %p7928_p8 = por %p7927_p5, %p7926_p4 }
0x1c9d   : > { %p7929_p9 = pnand %p7928_p8, %p7922_p1 }
0x1c9f   : > { %7932 = shalt.err (!%p7929_p9)
}
0x1ca0   : > { %s8034_s4 = smov 128  }
0x1ca1   : > { %7319 = dma.vmem_to_hbm [thread:$0]  (%p8197_p6), %s9833_s20, 1024, %s9838_s23, %s9842_s27, %s8034_s4, %s8034_s4, %s8027_s3  }
0x1ca2 PF: > { %s10094_s0 = sld [smem:[#allocation15_spill]]  ;;  %s10095_s5 = sld [smem:[#allocation6_spill]] }
0x1ca8   : > { %p7325_p10 = scmp.ge.s32.totalorder %s10094_s0, 2  ;;  %s6291_s30 = sand.u32 1, %s10095_s5  }
0x1ca9   : > { %s6292_s11 = scalar_lea.sflag [#allocation4], %s6291_s30 }
0x1caa   : > { %p7322_p11 = pnand %p7325_p10, %p8204_p7 }
0x1cac   : > { %7974 = dma.done.wait (!%p7322_p11), %s6292_s11, 1024  }
0x1cad   : > { %7976 = vsyncadd (!%p7322_p11), %s6292_s11, 4294966272  ;;  %s32_s25 = sadd.s32 1, %s10094_s0   ;;  %s10097_s0 = sld [smem:[#allocation7_spill]] }
0x1cae   : > { %p29_p12 = scmp.ge.s32.totalorder %s32_s25, 10   ;;  %s10098_s30 = sld [smem:[#allocation8_spill]] }
0x1caf   : > { %s10099_s20 = sld [smem:[#allocation21_spill]]  ;;  %s10100_s21 = sld [smem:[#allocation12_spill]] }
0x1cb0   : > { %s10101_s1 = sld [smem:[#allocation13_spill]]  ;;  %s10102_s22 = sld [smem:[#allocation14_spill]] }
0x1cb1   : > { %s10103_s2 = sld [smem:[#allocation16_spill]]  ;;  %s10104_s23 = sld [smem:[#allocation18_spill]] }
0x1cb2   : > { %s10105_s24 = sld [smem:[#allocation20_spill]]  ;;  %31 = sbr.rel (!%p29_p12) target bundleno = 20 (0x14), region = 181 }
0x1cb9   :  { %6297 = vsyncpa [#allocation4], 1 }
0x1cba   :  { %6299 = vsyncpa [#allocation4 + $0x1], 1 }

</bundles_post_ra>
